<compile_context>
chip_gen: v7x
topology: tpu7x:2x2x1
jax: 0.10.0
libtpu: 0.0.40
codegen_flags: <defaults>
</compile_context>

<pallas_src>
import collections
import functools

import jax
import jax.numpy as jnp
from jax.experimental import pallas as pl
from jax.experimental.pallas import tpu as pltpu

CH_SCALE = 16                    # divide VGG-16 channel widths by this (1 = real widths)
C_PAD = 128                      # stored-activation channel padding (lane-dense)
ROW_TILE = 8                     # max output rows per fused-conv grid step
POOL_TILE = 32                   # max pooled-output rows per maxpool grid step
GEMM_TK_CAP = 2048               # max K tile for the classifier GEMMs
VMEM_LIMIT = 32 * 1024 * 1024    # conservative scoped-VMEM cap, safe on v5e/v6e/v7x

# VGG-16 "features" configuration (conv widths, 'M' = 2x2 max-pool).
VGG16_CFG = (64, 64, 'M', 128, 128, 'M', 256, 256, 256, 'M',
             512, 512, 512, 'M', 512, 512, 512, 'M')

# cin: real input channels, cs_in: stored (possibly lane-padded) input channels.
ConvSpec = collections.namedtuple("ConvSpec", "cin cs_in cout kh kw pad relu")


def _round_up(x, m):
    return ((x + m - 1) // m) * m


def _pick_divisor_tile(n, cap):
    """Largest t <= cap dividing n, so every grid is exact (no edge blocks)."""
    for t in range(min(cap, n), 0, -1):
        if n % t == 0:
            return t
    return 1


def _pick_tk(k, cap=GEMM_TK_CAP):
    """Largest 128-multiple divisor of k that is <= cap."""
    best = 128
    for t in range(128, min(k, cap) + 1, 128):
        if k % t == 0:
            best = t
    return best


# --------------------------------------------------------------------------
# Pallas kernel 1: fused 3x3 conv (im2col fused into the kernel) + bias + ReLU
# --------------------------------------------------------------------------
def _conv3x3_kernel(xa_ref, xb0_ref, xb1_ref, w_ref, b_ref, o_ref, acc_ref,
                    *, kh, kw, relu):
    # xa_ref : (1, TR, Wp, Cs)  padded input rows for this output-row block
    # xb0/1  : (1, 1,  Wp, Cs)  the two halo rows directly below the block
    # w_ref  : (kh*kw, Cs, TN)  per-tap weight matrices for this Cout tile
    # b_ref  : (1, TN) f32, o_ref: (1, TR, Wo, TN) bf16, acc_ref: (Wo, TN) f32
    tr = o_ref.shape[1]
    wo = o_ref.shape[2]
    cs = w_ref.shape[1]
    bias = b_ref[...]                                   # (1, TN)

    def lhs_slice(t, ki, kj):
        u = t + ki                                      # local padded-row index
        if u < tr:
            return xa_ref[0, u, kj:kj + wo, :]
        if u == tr:
            return xb0_ref[0, 0, kj:kj + wo, :]
        return xb1_ref[0, 0, kj:kj + wo, :]

    for t in range(tr):
        first = True
        for ki in range(kh):
            for kj in range(kw):
                lhs = lhs_slice(t, ki, kj)              # (Wo, Cs) bf16
                w_tap = w_ref[ki * kw + kj]             # (Cs, TN) bf16
                if cs >= 128:
                    contrib = jnp.dot(lhs, w_tap,
                                      preferred_element_type=jnp.float32)
                else:
                    # Tiny-Cin layer (the 3-channel network input): contract on
                    # the VPU via lane/sublane broadcasts instead of an MXU
                    # matmul with a degenerate K.
                    contrib = None
                    for c in range(cs):
                        term = (lhs[:, c:c + 1].astype(jnp.float32) *
                                w_tap[c:c + 1, :].astype(jnp.float32))
                        contrib = term if contrib is None else contrib + term
                if first:
                    acc_ref[...] = contrib
                    first = False
                else:
                    acc_ref[...] += contrib
        y = acc_ref[...] + bias
        if relu:
            y = jnp.maximum(y, 0.0)
        o_ref[0, t] = y.astype(o_ref.dtype)


def conv3x3_fused(x, param, spec):
    """3x3 / stride-1 conv + bias + ReLU with the im2col fused into the kernel.

    x: (N, H, W, Cs) bf16 stored activation.  The same padded array is passed
    three times: a TR-row block plus the two single halo rows below it, so no
    shifted HBM copies of the activation are ever materialized.
    """
    wtap, b = param                       # (kh*kw, Cs, Cout_pad) bf16, (1, Cout_pad) f32
    kh, kw, pad = spec.kh, spec.kw, spec.pad
    assert kh == 3 and kw == 3
    _, cs, cout_pad = wtap.shape
    assert x.shape[-1] == cs

    if pad:
        x = jnp.pad(x, ((0, 0), (pad, pad), (pad, pad), (0, 0)))
    n, hp, wp, _ = x.shape
    ho, wo = hp - kh + 1, wp - kw + 1

    tr = _pick_divisor_tile(ho, ROW_TILE)
    tn = 256 if cout_pad % 256 == 0 else 128

    out = pl.pallas_call(
        functools.partial(_conv3x3_kernel, kh=kh, kw=kw, relu=spec.relu),
        out_shape=jax.ShapeDtypeStruct((n, ho, wo, cout_pad), jnp.bfloat16),
        grid_spec=pltpu.PrefetchScalarGridSpec(
            num_scalar_prefetch=0,
            grid=(n, cout_pad // tn, ho // tr),
            in_specs=[
                # TR padded input rows of the current output-row block ...
                pl.BlockSpec((1, tr, wp, cs), lambda b_, j, r: (b_, r, 0, 0)),
                # ... plus the two halo rows just below it (always in range:
                # the padded input has Ho + 2 rows).
                pl.BlockSpec((1, 1, wp, cs),
                             lambda b_, j, r: (b_, r * tr + tr, 0, 0)),
                pl.BlockSpec((1, 1, wp, cs),
                             lambda b_, j, r: (b_, r * tr + tr + 1, 0, 0)),
                # all kh*kw tap weight matrices for the current Cout tile
                pl.BlockSpec((kh * kw, cs, tn), lambda b_, j, r: (0, 0, j)),
                pl.BlockSpec((1, tn), lambda b_, j, r: (0, j)),
            ],
            out_specs=pl.BlockSpec((1, tr, wo, tn),
                                   lambda b_, j, r: (b_, r, 0, j)),
            scratch_shapes=[pltpu.VMEM((wo, tn), jnp.float32)],
        ),
        compiler_params=pltpu.CompilerParams(
            dimension_semantics=("parallel", "parallel", "parallel"),
            vmem_limit_bytes=VMEM_LIMIT),
    )(x, x, x, wtap, b)
    return out


# --------------------------------------------------------------------------
# Pallas kernel 2: M/N/K-tiled GEMM (classifier convs), fused bias + ReLU
# --------------------------------------------------------------------------
def _gemm_bias_act_kernel(x_ref, w_ref, b_ref, o_ref, acc_ref, *, relu):
    @pl.when(pl.program_id(2) == 0)
    def _():
        acc_ref[...] = jnp.zeros_like(acc_ref)

    acc_ref[...] += jnp.dot(x_ref[...], w_ref[...],
                            preferred_element_type=jnp.float32)

    @pl.when(pl.program_id(2) == pl.num_programs(2) - 1)
    def _():
        y = acc_ref[...] + b_ref[...]
        if relu:
            y = jnp.maximum(y, 0.0)
        o_ref[...] = y.astype(o_ref.dtype)


def pallas_gemm_bias_act(x, w, b, relu):
    """relu?(x @ w + b) in bf16/f32-acc.  Used for the classifier convolutions,
    where M == batch (tiny) and K, N are 128-multiples by construction."""
    m, k = x.shape
    k2, n = w.shape
    assert k == k2 and k % 128 == 0 and n % 128 == 0

    if m <= 512:                        # single full-M block: no M-pad copy
        tm, m_pad = m, m
    else:                               # robustness fallback (not hit in this script)
        tm = 512
        m_pad = _round_up(m, tm)
        x = jnp.pad(x, ((0, m_pad - m), (0, 0)))
    tn = next(c for c in (512, 256, 128) if n % c == 0)
    tk = _pick_tk(k)                    # e.g. fc6: K=6272 -> tk=896 (7 K-steps)

    out = pl.pallas_call(
        functools.partial(_gemm_bias_act_kernel, relu=relu),
        out_shape=jax.ShapeDtypeStruct((m_pad, n), jnp.bfloat16),
        grid_spec=pltpu.PrefetchScalarGridSpec(
            num_scalar_prefetch=0,
            grid=(m_pad // tm, n // tn, k // tk),
            in_specs=[
                pl.BlockSpec((tm, tk), lambda i, j, kk: (i, kk)),   # activations
                pl.BlockSpec((tk, tn), lambda i, j, kk: (kk, j)),   # weights
                pl.BlockSpec((1, tn), lambda i, j, kk: (0, j)),     # bias row
            ],
            out_specs=pl.BlockSpec((tm, tn), lambda i, j, kk: (i, j)),
            scratch_shapes=[pltpu.VMEM((tm, tn), jnp.float32)],
        ),
        compiler_params=pltpu.CompilerParams(
            dimension_semantics=("parallel", "parallel", "arbitrary"),
            vmem_limit_bytes=VMEM_LIMIT),
    )(x, w, b)
    return out[:m] if m_pad != m else out


# --------------------------------------------------------------------------
# Pallas kernel 3: gridded 2x2/stride-2 max-pool (NHWC, single input array)
# --------------------------------------------------------------------------
def _maxpool_kernel(x_ref, o_ref, *, c):
    v = x_ref[...]                                 # (TH, 2, Wo, 2*C)
    vh = jnp.maximum(v[:, 0], v[:, 1])             # H-direction pool
    o_ref[...] = jnp.maximum(vh[..., :c], vh[..., c:])   # W-direction (lane slice @128)


def maxpool2x2(x):
    """nn.MaxPool2d(2, 2), floor mode.  x: (N, H, W, C) bf16, C multiple of 128."""
    n, h, w, c = x.shape
    ho, wo = h // 2, w // 2
    if h != 2 * ho or w != 2 * wo:                 # floor mode drops odd row/col
        x = x[:, :2 * ho, :2 * wo, :]
    xr = x.reshape(n * ho, 2, wo, 2 * c)           # free (metadata-only) reshape
    th = _pick_divisor_tile(n * ho, POOL_TILE)
    out = pl.pallas_call(
        functools.partial(_maxpool_kernel, c=c),
        out_shape=jax.ShapeDtypeStruct((n * ho, wo, c), x.dtype),
        grid_spec=pltpu.PrefetchScalarGridSpec(
            num_scalar_prefetch=0,
            grid=(n * ho // th,),
            in_specs=[pl.BlockSpec((th, 2, wo, 2 * c), lambda i: (i, 0, 0, 0))],
            out_specs=pl.BlockSpec((th, wo, c), lambda i: (i, 0, 0)),
        ),
        compiler_params=pltpu.CompilerParams(
            dimension_semantics=("parallel",),
            vmem_limit_bytes=VMEM_LIMIT),
    )(xr)
    return out.reshape(n, ho, wo, c)


# --------------------------------------------------------------------------
# Classifier-style conv (fc6 7x7, fc7 1x1, score 1x1) = flatten + Pallas GEMM
# --------------------------------------------------------------------------
def conv_gemm(x, param, spec):
    wmat, b = param
    kh, kw = spec.kh, spec.kw
    n, h, w, cs = x.shape
    ho, wo = h - kh + 1, w - kw + 1
    assert spec.pad == 0 and ho >= 1 and wo >= 1
    if kh == 1 and kw == 1:
        patches = x.reshape(n * h * w, cs)
    elif ho == 1 and wo == 1:                       # fc6 on the exact 7x7 map
        patches = x.reshape(n, kh * kw * cs)
    else:
        # TODO(synk): only reached for img_size > 32; ho*wo is tiny here so the
        #             light im2col is cheap (unlike the feature convs).
        taps = [x[:, i:i + ho, j:j + wo, :] for i in range(kh) for j in range(kw)]
        patches = jnp.concatenate(taps, -1).reshape(n * ho * wo, kh * kw * cs)
    assert patches.shape[1] == wmat.shape[0]
    y = pallas_gemm_bias_act(patches, wmat, b, spec.relu)
    return y.reshape(n, ho, wo, wmat.shape[1])


# --------------------------------------------------------------------------
# Deterministic parameter init (weights packed over STORED channels, once)
# --------------------------------------------------------------------------
def _he_weight(key, cout, cin, kh, kw):
    fan_in = cin * kh * kw
    return jax.random.normal(key, (cout, cin, kh, kw), jnp.float32) * jnp.sqrt(2.0 / fan_in)


def _pack_conv3(w, bias, cs_in, cout_pad):
    """(Cout, Cin, kh, kw) f32 -> (kh*kw, Cs_in, Cout_pad) bf16 + (1, Cout_pad) f32.
    Padded input channels get zero weight rows; padded output channels get zero
    weight columns and zero bias, so they stay exactly zero downstream."""
    cout, cin, kh, kw = w.shape
    wt = jnp.transpose(w, (2, 3, 1, 0)).reshape(kh * kw, cin, cout)
    wtap = jnp.zeros((kh * kw, cs_in, cout_pad), jnp.float32).at[:, :cin, :cout].set(wt)
    b = jnp.zeros((1, cout_pad), jnp.float32).at[0, :cout].set(bias)
    return wtap.astype(jnp.bfloat16), b


def _pack_conv_gemm(w, bias, cs_in, cout_pad):
    """(Cout, Cin, kh, kw) f32 -> (kh*kw*Cs_in, Cout_pad) bf16, rows ordered
    (kh, kw, c_stored) to match the NHWC flatten used in conv_gemm."""
    cout, cin, kh, kw = w.shape
    wt = jnp.transpose(w, (2, 3, 1, 0))                       # (kh, kw, cin, cout)
    wfull = jnp.zeros((kh, kw, cs_in, cout_pad), jnp.float32).at[:, :, :cin, :cout].set(wt)
    b = jnp.zeros((1, cout_pad), jnp.float32).at[0, :cout].set(bias)
    return wfull.reshape(kh * kw * cs_in, cout_pad).astype(jnp.bfloat16), b


def init_conv3(key, spec):
    cout_pad = _round_up(spec.cout, C_PAD)
    w = _he_weight(key, spec.cout, spec.cin, spec.kh, spec.kw)
    return _pack_conv3(w, jnp.zeros((spec.cout,), jnp.float32), spec.cs_in, cout_pad)


def init_conv_gemm(key, spec):
    cout_pad = _round_up(spec.cout, C_PAD)
    w = _he_weight(key, spec.cout, spec.cin, spec.kh, spec.kw)
    return _pack_conv_gemm(w, jnp.zeros((spec.cout,), jnp.float32), spec.cs_in, cout_pad)


def build_segmentation_nn(key, in_ch=3, num_classes=23, ch_scale=CH_SCALE):
    """Returns (static specs, device params) matching SegmentationNN.__init__."""
    specs = {"features": [], "classifier": [], "score": None}
    params = {"features": [], "classifier": [], "score": None}

    c, cs, first = in_ch, in_ch, True          # cs = stored channels of current activation
    for v in VGG16_CFG:
        if v == 'M':
            specs["features"].append("pool")
            continue
        co = max(v // ch_scale, 1)
        # First conv gets padding = [100, 100] (the FCN trick), rest padding=1.
        spec = ConvSpec(c, cs, co, 3, 3, 100 if first else 1, True)
        key, sub = jax.random.split(key)
        specs["features"].append(spec)
        params["features"].append(init_conv3(sub, spec))
        c, cs, first = co, _round_up(co, C_PAD), False

    # fully-conv classifier: fc6 -> 7x7 conv, fc7 -> 1x1 conv (fc8 dropped).
    hid = max(4096 // ch_scale, 1)
    key, k6, k7, kc = jax.random.split(key, 4)
    s6 = ConvSpec(c, cs, hid, 7, 7, 0, True)
    cs_h = _round_up(hid, C_PAD)
    s7 = ConvSpec(hid, cs_h, hid, 1, 1, 0, True)
    ss = ConvSpec(hid, cs_h, num_classes, 1, 1, 0, False)     # self.conv (score)
    specs["classifier"] = [s6, s7]
    params["classifier"] = [init_conv_gemm(k6, s6), init_conv_gemm(k7, s7)]
    specs["score"] = ss
    params["score"] = init_conv_gemm(kc, ss)
    return specs, params


# --------------------------------------------------------------------------
# SegmentationNN.forward
# --------------------------------------------------------------------------
def segmentation_nn_forward(params, x, *, specs, img_size, num_classes, mode=0):
    # NCHW f32 -> NHWC bf16 once at the boundary (the network input keeps its
    # real 3 channels; internal activations use 128-padded channels).
    x = jnp.transpose(x, (0, 2, 3, 1)).astype(jnp.bfloat16)

    if mode in (0, 1):
        fp = iter(params["features"])
        for spec in specs["features"]:
            if isinstance(spec, str):             # 'pool'
                x = maxpool2x2(x)
            else:
                x = conv3x3_fused(x, next(fp), spec)
        # classifier: conv7x7+ReLU+(Dropout=id), conv1x1+ReLU+(Dropout=id)
        for spec, p in zip(specs["classifier"], params["classifier"]):
            x = conv_gemm(x, p, spec)

    if mode in (0, 2):
        x = conv_gemm(x, params["score"], specs["score"])     # 1x1 score conv
        x = x[..., :num_classes].astype(jnp.float32)          # drop channel padding
        ho, wo = x.shape[1], x.shape[2]
        # nn.Upsample(scale_factor=32, nearest) + center crop: gather only the
        # source pixels that land inside the crop window (the 32x-upsampled
        # intermediate is never materialized).
        off_h = (32 * ho - img_size) // 2
        off_w = (32 * wo - img_size) // 2
        rows = (jnp.arange(img_size) + off_h) // 32
        cols = (jnp.arange(img_size) + off_w) // 32
        x = x[:, rows][:, :, cols]
        return jnp.transpose(x, (0, 3, 1, 2))                 # back to NCHW f32

    # mode == 1: return classifier features in NCHW f32 (padding channels dropped)
    hid = specs["classifier"][-1].cout
    return jnp.transpose(x[..., :hid].astype(jnp.float32), (0, 3, 1, 2))


# --------------------------------------------------------------------------
# Small numerical self-check of the fused conv kernel vs. a pure-JAX reference
# --------------------------------------------------------------------------
def _check_fused_conv(key, cin, cs_in):
    kx, kw = jax.random.split(key)
    n, h, w, cout, pad = 1, 10, 12, 5, 1
    x = jax.random.normal(kx, (n, h, w, cin), jnp.float32)
    wt = jax.random.normal(kw, (cout, cin, 3, 3), jnp.float32) * 0.2
    bias = jnp.zeros((cout,), jnp.float32)
    cout_pad = _round_up(cout, C_PAD)

    spec = ConvSpec(cin, cs_in, cout, 3, 3, pad, True)
    param = _pack_conv3(wt, bias, cs_in, cout_pad)
    xs = jnp.zeros((n, h, w, cs_in), jnp.float32).at[..., :cin].set(x).astype(jnp.bfloat16)
    out = conv3x3_fused(xs, param, spec)[..., :cout].astype(jnp.float32)

    xr = x.astype(jnp.bfloat16).astype(jnp.float32)
    wr = wt.astype(jnp.bfloat16).astype(jnp.float32)
    xp = jnp.pad(xr, ((0, 0), (pad, pad), (pad, pad), (0, 0)))
    ref = jnp.zeros((n, h, w, cout), jnp.float32)
    for ki in range(3):
        for kj in range(3):
            ref = ref + jnp.einsum('nhwc,oc->nhwo',
                                   xp[:, ki:ki + h, kj:kj + w, :], wr[:, :, ki, kj])
    ref = jnp.maximum(ref + bias[None, None, None, :], 0.0)
    err = float(jnp.max(jnp.abs(out - ref)))
    assert err < 5e-2, f"fused conv mismatch: max abs err {err}"


if __name__ == "__main__":
    # img_size = 32 is the smallest size for which pool5 output (7x7) feeds the
    # 7x7 fc6 conv with a valid 1x1 result, mirroring the FCN geometry.
    img_size = 32
    num_classes = 23
    batch = 2

    key = jax.random.PRNGKey(0)
    kp, kx, kc1, kc2 = jax.random.split(key, 4)

    # Validate both in-kernel contraction paths of the fused conv kernel.
    _check_fused_conv(kc1, cin=3, cs_in=3)       # tiny-Cin VPU path (network input)
    _check_fused_conv(kc2, cin=4, cs_in=128)     # 128-channel MXU path

    specs, params = build_segmentation_nn(kp, in_ch=3, num_classes=num_classes)
    x = jax.random.normal(kx, (batch, 3, img_size, img_size), jnp.float32)

    fwd = jax.jit(functools.partial(segmentation_nn_forward,
                                    specs=specs, img_size=img_size,
                                    num_classes=num_classes, mode=0))
    y = jax.block_until_ready(fwd(params, x))

    assert y.shape == (batch, num_classes, img_size, img_size), y.shape
    assert y.dtype == jnp.float32
    print("KERNEL_OK")
</pallas_src>

<mosaic_0001>
module attributes {stable_mosaic.version = 11 : i64} {
  func.func @_conv3x3_kernel(%arg0: i32, %arg1: i32, %arg2: i32, %arg3: memref<1x5x14x3xbf16, #tpu.memory_space<vmem>>, %arg4: memref<1x1x14x3xbf16, #tpu.memory_space<vmem>>, %arg5: memref<1x1x14x3xbf16, #tpu.memory_space<vmem>>, %arg6: memref<9x3x128xbf16, #tpu.memory_space<vmem>>, %arg7: memref<1x128xf32, #tpu.memory_space<vmem>>, %arg8: memref<1x5x12x128xbf16, #tpu.memory_space<vmem>>, %arg9: memref<12x128xf32, #tpu.memory_space<vmem>>) attributes {dimension_semantics = [#tpu.dimension_semantics<parallel>, #tpu.dimension_semantics<parallel>, #tpu.dimension_semantics<parallel>], iteration_bounds = array<i64: 1, 1, 2>, scalar_prefetch = 0 : i64, scratch_operands = 1 : i64, tpu.core_type = #tpu.core_type<tc>, window_params = [{transform_indices = @transform_0, window_bounds = array<i64: 1, 5, 14, 3>}, {transform_indices = @transform_1, window_bounds = array<i64: 1, 1, 14, 3>}, {transform_indices = @transform_2, window_bounds = array<i64: 1, 1, 14, 3>}, {transform_indices = @transform_3, window_bounds = array<i64: 9, 3, 128>}, {transform_indices = @transform_4, window_bounds = array<i64: 1, 128>}, {transform_indices = @transform_5, window_bounds = array<i64: 1, 5, 12, 128>}]} {
    %c0 = arith.constant 0 : index
    %c0_0 = arith.constant 0 : index
    %0 = vector.load %arg7[%c0, %c0_0] : memref<1x128xf32, #tpu.memory_space<vmem>>, vector<1x128xf32>
    %c0_1 = arith.constant 0 : index
    %c0_2 = arith.constant 0 : index
    %c0_3 = arith.constant 0 : index
    %c0_4 = arith.constant 0 : index
    %1 = vector.load %arg3[%c0_1, %c0_2, %c0_3, %c0_4] : memref<1x5x14x3xbf16, #tpu.memory_space<vmem>>, vector<1x1x12x3xbf16>
    %2 = vector.shape_cast %1 : vector<1x1x12x3xbf16> to vector<12x3xbf16>
    %c0_5 = arith.constant 0 : index
    %c0_6 = arith.constant 0 : index
    %c0_7 = arith.constant 0 : index
    %3 = vector.load %arg6[%c0_5, %c0_6, %c0_7] : memref<9x3x128xbf16, #tpu.memory_space<vmem>>, vector<1x3x128xbf16>
    %4 = vector.shape_cast %3 : vector<1x3x128xbf16> to vector<3x128xbf16>
    %5 = vector.extract_strided_slice %2 {offsets = [0, 0], sizes = [12, 1], strides = [1, 1]} : vector<12x3xbf16> to vector<12x1xbf16>
    %6 = arith.extf %5 : vector<12x1xbf16> to vector<12x1xf32>
    %7 = vector.extract_strided_slice %4 {offsets = [0, 0], sizes = [1, 128], strides = [1, 1]} : vector<3x128xbf16> to vector<1x128xbf16>
    %8 = arith.extf %7 : vector<1x128xbf16> to vector<1x128xf32>
    %9 = vector.broadcast %6 : vector<12x1xf32> to vector<12x128xf32>
    %10 = vector.broadcast %8 : vector<1x128xf32> to vector<12x128xf32>
    %11 = arith.mulf %9, %10 : vector<12x128xf32>
    %12 = vector.extract_strided_slice %2 {offsets = [0, 1], sizes = [12, 1], strides = [1, 1]} : vector<12x3xbf16> to vector<12x1xbf16>
    %13 = arith.extf %12 : vector<12x1xbf16> to vector<12x1xf32>
    %14 = vector.extract_strided_slice %4 {offsets = [1, 0], sizes = [1, 128], strides = [1, 1]} : vector<3x128xbf16> to vector<1x128xbf16>
    %15 = arith.extf %14 : vector<1x128xbf16> to vector<1x128xf32>
    %16 = vector.broadcast %13 : vector<12x1xf32> to vector<12x128xf32>
    %17 = vector.broadcast %15 : vector<1x128xf32> to vector<12x128xf32>
    %18 = arith.mulf %16, %17 : vector<12x128xf32>
    %19 = arith.addf %11, %18 : vector<12x128xf32>
    %20 = vector.extract_strided_slice %2 {offsets = [0, 2], sizes = [12, 1], strides = [1, 1]} : vector<12x3xbf16> to vector<12x1xbf16>
    %21 = arith.extf %20 : vector<12x1xbf16> to vector<12x1xf32>
    %22 = vector.extract_strided_slice %4 {offsets = [2, 0], sizes = [1, 128], strides = [1, 1]} : vector<3x128xbf16> to vector<1x128xbf16>
    %23 = arith.extf %22 : vector<1x128xbf16> to vector<1x128xf32>
    %24 = vector.broadcast %21 : vector<12x1xf32> to vector<12x128xf32>
    %25 = vector.broadcast %23 : vector<1x128xf32> to vector<12x128xf32>
    %26 = arith.mulf %24, %25 : vector<12x128xf32>
    %27 = arith.addf %19, %26 : vector<12x128xf32>
    %c0_8 = arith.constant 0 : index
    %c0_9 = arith.constant 0 : index
    %28 = vector.load %arg9[%c0_8, %c0_9] : memref<12x128xf32, #tpu.memory_space<vmem>>, vector<12x128xf32>
    tpu.vector_store %arg9[%c0_8, %c0_9], %27 {strides = array<i32>} : memref<12x128xf32, #tpu.memory_space<vmem>>, vector<12x128xf32>,
    %c0_10 = arith.constant 0 : index
    %c0_11 = arith.constant 0 : index
    %c1 = arith.constant 1 : index
    %c0_12 = arith.constant 0 : index
    %29 = vector.load %arg3[%c0_10, %c0_11, %c1, %c0_12] : memref<1x5x14x3xbf16, #tpu.memory_space<vmem>>, vector<1x1x12x3xbf16>
    %30 = vector.shape_cast %29 : vector<1x1x12x3xbf16> to vector<12x3xbf16>
    %c1_13 = arith.constant 1 : index
    %c0_14 = arith.constant 0 : index
    %c0_15 = arith.constant 0 : index
    %31 = vector.load %arg6[%c1_13, %c0_14, %c0_15] : memref<9x3x128xbf16, #tpu.memory_space<vmem>>, vector<1x3x128xbf16>
    %32 = vector.shape_cast %31 : vector<1x3x128xbf16> to vector<3x128xbf16>
    %33 = vector.extract_strided_slice %30 {offsets = [0, 0], sizes = [12, 1], strides = [1, 1]} : vector<12x3xbf16> to vector<12x1xbf16>
    %34 = arith.extf %33 : vector<12x1xbf16> to vector<12x1xf32>
    %35 = vector.extract_strided_slice %32 {offsets = [0, 0], sizes = [1, 128], strides = [1, 1]} : vector<3x128xbf16> to vector<1x128xbf16>
    %36 = arith.extf %35 : vector<1x128xbf16> to vector<1x128xf32>
    %37 = vector.broadcast %34 : vector<12x1xf32> to vector<12x128xf32>
    %38 = vector.broadcast %36 : vector<1x128xf32> to vector<12x128xf32>
    %39 = arith.mulf %37, %38 : vector<12x128xf32>
    %40 = vector.extract_strided_slice %30 {offsets = [0, 1], sizes = [12, 1], strides = [1, 1]} : vector<12x3xbf16> to vector<12x1xbf16>
    %41 = arith.extf %40 : vector<12x1xbf16> to vector<12x1xf32>
    %42 = vector.extract_strided_slice %32 {offsets = [1, 0], sizes = [1, 128], strides = [1, 1]} : vector<3x128xbf16> to vector<1x128xbf16>
    %43 = arith.extf %42 : vector<1x128xbf16> to vector<1x128xf32>
    %44 = vector.broadcast %41 : vector<12x1xf32> to vector<12x128xf32>
    %45 = vector.broadcast %43 : vector<1x128xf32> to vector<12x128xf32>
    %46 = arith.mulf %44, %45 : vector<12x128xf32>
    %47 = arith.addf %39, %46 : vector<12x128xf32>
    %48 = vector.extract_strided_slice %30 {offsets = [0, 2], sizes = [12, 1], strides = [1, 1]} : vector<12x3xbf16> to vector<12x1xbf16>
    %49 = arith.extf %48 : vector<12x1xbf16> to vector<12x1xf32>
    %50 = vector.extract_strided_slice %32 {offsets = [2, 0], sizes = [1, 128], strides = [1, 1]} : vector<3x128xbf16> to vector<1x128xbf16>
    %51 = arith.extf %50 : vector<1x128xbf16> to vector<1x128xf32>
    %52 = vector.broadcast %49 : vector<12x1xf32> to vector<12x128xf32>
    %53 = vector.broadcast %51 : vector<1x128xf32> to vector<12x128xf32>
    %54 = arith.mulf %52, %53 : vector<12x128xf32>
    %55 = arith.addf %47, %54 : vector<12x128xf32>
    %c0_16 = arith.constant 0 : index
    %c0_17 = arith.constant 0 : index
    %56 = vector.load %arg9[%c0_16, %c0_17] : memref<12x128xf32, #tpu.memory_space<vmem>>, vector<12x128xf32>
    %57 = arith.addf %56, %55 : vector<12x128xf32>
    %c0_18 = arith.constant 0 : index
    %c0_19 = arith.constant 0 : index
    %58 = vector.load %arg9[%c0_18, %c0_19] : memref<12x128xf32, #tpu.memory_space<vmem>>, vector<12x128xf32>
    tpu.vector_store %arg9[%c0_18, %c0_19], %57 {strides = array<i32>} : memref<12x128xf32, #tpu.memory_space<vmem>>, vector<12x128xf32>,
    %c0_20 = arith.constant 0 : index
    %c0_21 = arith.constant 0 : index
    %c2 = arith.constant 2 : index
    %c0_22 = arith.constant 0 : index
    %59 = vector.load %arg3[%c0_20, %c0_21, %c2, %c0_22] : memref<1x5x14x3xbf16, #tpu.memory_space<vmem>>, vector<1x1x12x3xbf16>
    %60 = vector.shape_cast %59 : vector<1x1x12x3xbf16> to vector<12x3xbf16>
    %c2_23 = arith.constant 2 : index
    %c0_24 = arith.constant 0 : index
    %c0_25 = arith.constant 0 : index
    %61 = vector.load %arg6[%c2_23, %c0_24, %c0_25] : memref<9x3x128xbf16, #tpu.memory_space<vmem>>, vector<1x3x128xbf16>
    %62 = vector.shape_cast %61 : vector<1x3x128xbf16> to vector<3x128xbf16>
    %63 = vector.extract_strided_slice %60 {offsets = [0, 0], sizes = [12, 1], strides = [1, 1]} : vector<12x3xbf16> to vector<12x1xbf16>
    %64 = arith.extf %63 : vector<12x1xbf16> to vector<12x1xf32>
    %65 = vector.extract_strided_slice %62 {offsets = [0, 0], sizes = [1, 128], strides = [1, 1]} : vector<3x128xbf16> to vector<1x128xbf16>
    %66 = arith.extf %65 : vector<1x128xbf16> to vector<1x128xf32>
    %67 = vector.broadcast %64 : vector<12x1xf32> to vector<12x128xf32>
    %68 = vector.broadcast %66 : vector<1x128xf32> to vector<12x128xf32>
    %69 = arith.mulf %67, %68 : vector<12x128xf32>
    %70 = vector.extract_strided_slice %60 {offsets = [0, 1], sizes = [12, 1], strides = [1, 1]} : vector<12x3xbf16> to vector<12x1xbf16>
    %71 = arith.extf %70 : vector<12x1xbf16> to vector<12x1xf32>
    %72 = vector.extract_strided_slice %62 {offsets = [1, 0], sizes = [1, 128], strides = [1, 1]} : vector<3x128xbf16> to vector<1x128xbf16>
    %73 = arith.extf %72 : vector<1x128xbf16> to vector<1x128xf32>
    %74 = vector.broadcast %71 : vector<12x1xf32> to vector<12x128xf32>
    %75 = vector.broadcast %73 : vector<1x128xf32> to vector<12x128xf32>
    %76 = arith.mulf %74, %75 : vector<12x128xf32>
    %77 = arith.addf %69, %76 : vector<12x128xf32>
    %78 = vector.extract_strided_slice %60 {offsets = [0, 2], sizes = [12, 1], strides = [1, 1]} : vector<12x3xbf16> to vector<12x1xbf16>
    %79 = arith.extf %78 : vector<12x1xbf16> to vector<12x1xf32>
    %80 = vector.extract_strided_slice %62 {offsets = [2, 0], sizes = [1, 128], strides = [1, 1]} : vector<3x128xbf16> to vector<1x128xbf16>
    %81 = arith.extf %80 : vector<1x128xbf16> to vector<1x128xf32>
    %82 = vector.broadcast %79 : vector<12x1xf32> to vector<12x128xf32>
    %83 = vector.broadcast %81 : vector<1x128xf32> to vector<12x128xf32>
    %84 = arith.mulf %82, %83 : vector<12x128xf32>
    %85 = arith.addf %77, %84 : vector<12x128xf32>
    %c0_26 = arith.constant 0 : index
    %c0_27 = arith.constant 0 : index
    %86 = vector.load %arg9[%c0_26, %c0_27] : memref<12x128xf32, #tpu.memory_space<vmem>>, vector<12x128xf32>
    %87 = arith.addf %86, %85 : vector<12x128xf32>
    %c0_28 = arith.constant 0 : index
    %c0_29 = arith.constant 0 : index
    %88 = vector.load %arg9[%c0_28, %c0_29] : memref<12x128xf32, #tpu.memory_space<vmem>>, vector<12x128xf32>
    tpu.vector_store %arg9[%c0_28, %c0_29], %87 {strides = array<i32>} : memref<12x128xf32, #tpu.memory_space<vmem>>, vector<12x128xf32>,
    %c0_30 = arith.constant 0 : index
    %c1_31 = arith.constant 1 : index
    %c0_32 = arith.constant 0 : index
    %c0_33 = arith.constant 0 : index
    %89 = vector.load %arg3[%c0_30, %c1_31, %c0_32, %c0_33] : memref<1x5x14x3xbf16, #tpu.memory_space<vmem>>, vector<1x1x12x3xbf16>
    %90 = vector.shape_cast %89 : vector<1x1x12x3xbf16> to vector<12x3xbf16>
    %c3 = arith.constant 3 : index
    %c0_34 = arith.constant 0 : index
    %c0_35 = arith.constant 0 : index
    %91 = vector.load %arg6[%c3, %c0_34, %c0_35] : memref<9x3x128xbf16, #tpu.memory_space<vmem>>, vector<1x3x128xbf16>
    %92 = vector.shape_cast %91 : vector<1x3x128xbf16> to vector<3x128xbf16>
    %93 = vector.extract_strided_slice %90 {offsets = [0, 0], sizes = [12, 1], strides = [1, 1]} : vector<12x3xbf16> to vector<12x1xbf16>
    %94 = arith.extf %93 : vector<12x1xbf16> to vector<12x1xf32>
    %95 = vector.extract_strided_slice %92 {offsets = [0, 0], sizes = [1, 128], strides = [1, 1]} : vector<3x128xbf16> to vector<1x128xbf16>
    %96 = arith.extf %95 : vector<1x128xbf16> to vector<1x128xf32>
    %97 = vector.broadcast %94 : vector<12x1xf32> to vector<12x128xf32>
    %98 = vector.broadcast %96 : vector<1x128xf32> to vector<12x128xf32>
    %99 = arith.mulf %97, %98 : vector<12x128xf32>
    %100 = vector.extract_strided_slice %90 {offsets = [0, 1], sizes = [12, 1], strides = [1, 1]} : vector<12x3xbf16> to vector<12x1xbf16>
    %101 = arith.extf %100 : vector<12x1xbf16> to vector<12x1xf32>
    %102 = vector.extract_strided_slice %92 {offsets = [1, 0], sizes = [1, 128], strides = [1, 1]} : vector<3x128xbf16> to vector<1x128xbf16>
    %103 = arith.extf %102 : vector<1x128xbf16> to vector<1x128xf32>
    %104 = vector.broadcast %101 : vector<12x1xf32> to vector<12x128xf32>
    %105 = vector.broadcast %103 : vector<1x128xf32> to vector<12x128xf32>
    %106 = arith.mulf %104, %105 : vector<12x128xf32>
    %107 = arith.addf %99, %106 : vector<12x128xf32>
    %108 = vector.extract_strided_slice %90 {offsets = [0, 2], sizes = [12, 1], strides = [1, 1]} : vector<12x3xbf16> to vector<12x1xbf16>
    %109 = arith.extf %108 : vector<12x1xbf16> to vector<12x1xf32>
    %110 = vector.extract_strided_slice %92 {offsets = [2, 0], sizes = [1, 128], strides = [1, 1]} : vector<3x128xbf16> to vector<1x128xbf16>
    %111 = arith.extf %110 : vector<1x128xbf16> to vector<1x128xf32>
    %112 = vector.broadcast %109 : vector<12x1xf32> to vector<12x128xf32>
    %113 = vector.broadcast %111 : vector<1x128xf32> to vector<12x128xf32>
    %114 = arith.mulf %112, %113 : vector<12x128xf32>
    %115 = arith.addf %107, %114 : vector<12x128xf32>
    %c0_36 = arith.constant 0 : index
    %c0_37 = arith.constant 0 : index
    %116 = vector.load %arg9[%c0_36, %c0_37] : memref<12x128xf32, #tpu.memory_space<vmem>>, vector<12x128xf32>
    %117 = arith.addf %116, %115 : vector<12x128xf32>
    %c0_38 = arith.constant 0 : index
    %c0_39 = arith.constant 0 : index
    %118 = vector.load %arg9[%c0_38, %c0_39] : memref<12x128xf32, #tpu.memory_space<vmem>>, vector<12x128xf32>
    tpu.vector_store %arg9[%c0_38, %c0_39], %117 {strides = array<i32>} : memref<12x128xf32, #tpu.memory_space<vmem>>, vector<12x128xf32>,
    %c0_40 = arith.constant 0 : index
    %c1_41 = arith.constant 1 : index
    %c1_42 = arith.constant 1 : index
    %c0_43 = arith.constant 0 : index
    %119 = vector.load %arg3[%c0_40, %c1_41, %c1_42, %c0_43] : memref<1x5x14x3xbf16, #tpu.memory_space<vmem>>, vector<1x1x12x3xbf16>
    %120 = vector.shape_cast %119 : vector<1x1x12x3xbf16> to vector<12x3xbf16>
    %c4 = arith.constant 4 : index
    %c0_44 = arith.constant 0 : index
    %c0_45 = arith.constant 0 : index
    %121 = vector.load %arg6[%c4, %c0_44, %c0_45] : memref<9x3x128xbf16, #tpu.memory_space<vmem>>, vector<1x3x128xbf16>
    %122 = vector.shape_cast %121 : vector<1x3x128xbf16> to vector<3x128xbf16>
    %123 = vector.extract_strided_slice %120 {offsets = [0, 0], sizes = [12, 1], strides = [1, 1]} : vector<12x3xbf16> to vector<12x1xbf16>
    %124 = arith.extf %123 : vector<12x1xbf16> to vector<12x1xf32>
    %125 = vector.extract_strided_slice %122 {offsets = [0, 0], sizes = [1, 128], strides = [1, 1]} : vector<3x128xbf16> to vector<1x128xbf16>
    %126 = arith.extf %125 : vector<1x128xbf16> to vector<1x128xf32>
    %127 = vector.broadcast %124 : vector<12x1xf32> to vector<12x128xf32>
    %128 = vector.broadcast %126 : vector<1x128xf32> to vector<12x128xf32>
    %129 = arith.mulf %127, %128 : vector<12x128xf32>
    %130 = vector.extract_strided_slice %120 {offsets = [0, 1], sizes = [12, 1], strides = [1, 1]} : vector<12x3xbf16> to vector<12x1xbf16>
    %131 = arith.extf %130 : vector<12x1xbf16> to vector<12x1xf32>
    %132 = vector.extract_strided_slice %122 {offsets = [1, 0], sizes = [1, 128], strides = [1, 1]} : vector<3x128xbf16> to vector<1x128xbf16>
    %133 = arith.extf %132 : vector<1x128xbf16> to vector<1x128xf32>
    %134 = vector.broadcast %131 : vector<12x1xf32> to vector<12x128xf32>
    %135 = vector.broadcast %133 : vector<1x128xf32> to vector<12x128xf32>
    %136 = arith.mulf %134, %135 : vector<12x128xf32>
    %137 = arith.addf %129, %136 : vector<12x128xf32>
    %138 = vector.extract_strided_slice %120 {offsets = [0, 2], sizes = [12, 1], strides = [1, 1]} : vector<12x3xbf16> to vector<12x1xbf16>
    %139 = arith.extf %138 : vector<12x1xbf16> to vector<12x1xf32>
    %140 = vector.extract_strided_slice %122 {offsets = [2, 0], sizes = [1, 128], strides = [1, 1]} : vector<3x128xbf16> to vector<1x128xbf16>
    %141 = arith.extf %140 : vector<1x128xbf16> to vector<1x128xf32>
    %142 = vector.broadcast %139 : vector<12x1xf32> to vector<12x128xf32>
    %143 = vector.broadcast %141 : vector<1x128xf32> to vector<12x128xf32>
    %144 = arith.mulf %142, %143 : vector<12x128xf32>
    %145 = arith.addf %137, %144 : vector<12x128xf32>
    %c0_46 = arith.constant 0 : index
    %c0_47 = arith.constant 0 : index
    %146 = vector.load %arg9[%c0_46, %c0_47] : memref<12x128xf32, #tpu.memory_space<vmem>>, vector<12x128xf32>
    %147 = arith.addf %146, %145 : vector<12x128xf32>
    %c0_48 = arith.constant 0 : index
    %c0_49 = arith.constant 0 : index
    %148 = vector.load %arg9[%c0_48, %c0_49] : memref<12x128xf32, #tpu.memory_space<vmem>>, vector<12x128xf32>
    tpu.vector_store %arg9[%c0_48, %c0_49], %147 {strides = array<i32>} : memref<12x128xf32, #tpu.memory_space<vmem>>, vector<12x128xf32>,
    %c0_50 = arith.constant 0 : index
    %c1_51 = arith.constant 1 : index
    %c2_52 = arith.constant 2 : index
    %c0_53 = arith.constant 0 : index
    %149 = vector.load %arg3[%c0_50, %c1_51, %c2_52, %c0_53] : memref<1x5x14x3xbf16, #tpu.memory_space<vmem>>, vector<1x1x12x3xbf16>
    %150 = vector.shape_cast %149 : vector<1x1x12x3xbf16> to vector<12x3xbf16>
    %c5 = arith.constant 5 : index
    %c0_54 = arith.constant 0 : index
    %c0_55 = arith.constant 0 : index
    %151 = vector.load %arg6[%c5, %c0_54, %c0_55] : memref<9x3x128xbf16, #tpu.memory_space<vmem>>, vector<1x3x128xbf16>
    %152 = vector.shape_cast %151 : vector<1x3x128xbf16> to vector<3x128xbf16>
    %153 = vector.extract_strided_slice %150 {offsets = [0, 0], sizes = [12, 1], strides = [1, 1]} : vector<12x3xbf16> to vector<12x1xbf16>
    %154 = arith.extf %153 : vector<12x1xbf16> to vector<12x1xf32>
    %155 = vector.extract_strided_slice %152 {offsets = [0, 0], sizes = [1, 128], strides = [1, 1]} : vector<3x128xbf16> to vector<1x128xbf16>
    %156 = arith.extf %155 : vector<1x128xbf16> to vector<1x128xf32>
    %157 = vector.broadcast %154 : vector<12x1xf32> to vector<12x128xf32>
    %158 = vector.broadcast %156 : vector<1x128xf32> to vector<12x128xf32>
    %159 = arith.mulf %157, %158 : vector<12x128xf32>
    %160 = vector.extract_strided_slice %150 {offsets = [0, 1], sizes = [12, 1], strides = [1, 1]} : vector<12x3xbf16> to vector<12x1xbf16>
    %161 = arith.extf %160 : vector<12x1xbf16> to vector<12x1xf32>
    %162 = vector.extract_strided_slice %152 {offsets = [1, 0], sizes = [1, 128], strides = [1, 1]} : vector<3x128xbf16> to vector<1x128xbf16>
    %163 = arith.extf %162 : vector<1x128xbf16> to vector<1x128xf32>
    %164 = vector.broadcast %161 : vector<12x1xf32> to vector<12x128xf32>
    %165 = vector.broadcast %163 : vector<1x128xf32> to vector<12x128xf32>
    %166 = arith.mulf %164, %165 : vector<12x128xf32>
    %167 = arith.addf %159, %166 : vector<12x128xf32>
    %168 = vector.extract_strided_slice %150 {offsets = [0, 2], sizes = [12, 1], strides = [1, 1]} : vector<12x3xbf16> to vector<12x1xbf16>
    %169 = arith.extf %168 : vector<12x1xbf16> to vector<12x1xf32>
    %170 = vector.extract_strided_slice %152 {offsets = [2, 0], sizes = [1, 128], strides = [1, 1]} : vector<3x128xbf16> to vector<1x128xbf16>
    %171 = arith.extf %170 : vector<1x128xbf16> to vector<1x128xf32>
    %172 = vector.broadcast %169 : vector<12x1xf32> to vector<12x128xf32>
    %173 = vector.broadcast %171 : vector<1x128xf32> to vector<12x128xf32>
    %174 = arith.mulf %172, %173 : vector<12x128xf32>
    %175 = arith.addf %167, %174 : vector<12x128xf32>
    %c0_56 = arith.constant 0 : index
    %c0_57 = arith.constant 0 : index
    %176 = vector.load %arg9[%c0_56, %c0_57] : memref<12x128xf32, #tpu.memory_space<vmem>>, vector<12x128xf32>
    %177 = arith.addf %176, %175 : vector<12x128xf32>
    %c0_58 = arith.constant 0 : index
    %c0_59 = arith.constant 0 : index
    %178 = vector.load %arg9[%c0_58, %c0_59] : memref<12x128xf32, #tpu.memory_space<vmem>>, vector<12x128xf32>
    tpu.vector_store %arg9[%c0_58, %c0_59], %177 {strides = array<i32>} : memref<12x128xf32, #tpu.memory_space<vmem>>, vector<12x128xf32>,
    %c0_60 = arith.constant 0 : index
    %c2_61 = arith.constant 2 : index
    %c0_62 = arith.constant 0 : index
    %c0_63 = arith.constant 0 : index
    %179 = vector.load %arg3[%c0_60, %c2_61, %c0_62, %c0_63] : memref<1x5x14x3xbf16, #tpu.memory_space<vmem>>, vector<1x1x12x3xbf16>
    %180 = vector.shape_cast %179 : vector<1x1x12x3xbf16> to vector<12x3xbf16>
    %c6 = arith.constant 6 : index
    %c0_64 = arith.constant 0 : index
    %c0_65 = arith.constant 0 : index
    %181 = vector.load %arg6[%c6, %c0_64, %c0_65] : memref<9x3x128xbf16, #tpu.memory_space<vmem>>, vector<1x3x128xbf16>
    %182 = vector.shape_cast %181 : vector<1x3x128xbf16> to vector<3x128xbf16>
    %183 = vector.extract_strided_slice %180 {offsets = [0, 0], sizes = [12, 1], strides = [1, 1]} : vector<12x3xbf16> to vector<12x1xbf16>
    %184 = arith.extf %183 : vector<12x1xbf16> to vector<12x1xf32>
    %185 = vector.extract_strided_slice %182 {offsets = [0, 0], sizes = [1, 128], strides = [1, 1]} : vector<3x128xbf16> to vector<1x128xbf16>
    %186 = arith.extf %185 : vector<1x128xbf16> to vector<1x128xf32>
    %187 = vector.broadcast %184 : vector<12x1xf32> to vector<12x128xf32>
    %188 = vector.broadcast %186 : vector<1x128xf32> to vector<12x128xf32>
    %189 = arith.mulf %187, %188 : vector<12x128xf32>
    %190 = vector.extract_strided_slice %180 {offsets = [0, 1], sizes = [12, 1], strides = [1, 1]} : vector<12x3xbf16> to vector<12x1xbf16>
    %191 = arith.extf %190 : vector<12x1xbf16> to vector<12x1xf32>
    %192 = vector.extract_strided_slice %182 {offsets = [1, 0], sizes = [1, 128], strides = [1, 1]} : vector<3x128xbf16> to vector<1x128xbf16>
    %193 = arith.extf %192 : vector<1x128xbf16> to vector<1x128xf32>
    %194 = vector.broadcast %191 : vector<12x1xf32> to vector<12x128xf32>
    %195 = vector.broadcast %193 : vector<1x128xf32> to vector<12x128xf32>
    %196 = arith.mulf %194, %195 : vector<12x128xf32>
    %197 = arith.addf %189, %196 : vector<12x128xf32>
    %198 = vector.extract_strided_slice %180 {offsets = [0, 2], sizes = [12, 1], strides = [1, 1]} : vector<12x3xbf16> to vector<12x1xbf16>
    %199 = arith.extf %198 : vector<12x1xbf16> to vector<12x1xf32>
    %200 = vector.extract_strided_slice %182 {offsets = [2, 0], sizes = [1, 128], strides = [1, 1]} : vector<3x128xbf16> to vector<1x128xbf16>
    %201 = arith.extf %200 : vector<1x128xbf16> to vector<1x128xf32>
    %202 = vector.broadcast %199 : vector<12x1xf32> to vector<12x128xf32>
    %203 = vector.broadcast %201 : vector<1x128xf32> to vector<12x128xf32>
    %204 = arith.mulf %202, %203 : vector<12x128xf32>
    %205 = arith.addf %197, %204 : vector<12x128xf32>
    %c0_66 = arith.constant 0 : index
    %c0_67 = arith.constant 0 : index
    %206 = vector.load %arg9[%c0_66, %c0_67] : memref<12x128xf32, #tpu.memory_space<vmem>>, vector<12x128xf32>
    %207 = arith.addf %206, %205 : vector<12x128xf32>
    %c0_68 = arith.constant 0 : index
    %c0_69 = arith.constant 0 : index
    %208 = vector.load %arg9[%c0_68, %c0_69] : memref<12x128xf32, #tpu.memory_space<vmem>>, vector<12x128xf32>
    tpu.vector_store %arg9[%c0_68, %c0_69], %207 {strides = array<i32>} : memref<12x128xf32, #tpu.memory_space<vmem>>, vector<12x128xf32>,
    %c0_70 = arith.constant 0 : index
    %c2_71 = arith.constant 2 : index
    %c1_72 = arith.constant 1 : index
    %c0_73 = arith.constant 0 : index
    %209 = vector.load %arg3[%c0_70, %c2_71, %c1_72, %c0_73] : memref<1x5x14x3xbf16, #tpu.memory_space<vmem>>, vector<1x1x12x3xbf16>
    %210 = vector.shape_cast %209 : vector<1x1x12x3xbf16> to vector<12x3xbf16>
    %c7 = arith.constant 7 : index
    %c0_74 = arith.constant 0 : index
    %c0_75 = arith.constant 0 : index
    %211 = vector.load %arg6[%c7, %c0_74, %c0_75] : memref<9x3x128xbf16, #tpu.memory_space<vmem>>, vector<1x3x128xbf16>
    %212 = vector.shape_cast %211 : vector<1x3x128xbf16> to vector<3x128xbf16>
    %213 = vector.extract_strided_slice %210 {offsets = [0, 0], sizes = [12, 1], strides = [1, 1]} : vector<12x3xbf16> to vector<12x1xbf16>
    %214 = arith.extf %213 : vector<12x1xbf16> to vector<12x1xf32>
    %215 = vector.extract_strided_slice %212 {offsets = [0, 0], sizes = [1, 128], strides = [1, 1]} : vector<3x128xbf16> to vector<1x128xbf16>
    %216 = arith.extf %215 : vector<1x128xbf16> to vector<1x128xf32>
    %217 = vector.broadcast %214 : vector<12x1xf32> to vector<12x128xf32>
    %218 = vector.broadcast %216 : vector<1x128xf32> to vector<12x128xf32>
    %219 = arith.mulf %217, %218 : vector<12x128xf32>
    %220 = vector.extract_strided_slice %210 {offsets = [0, 1], sizes = [12, 1], strides = [1, 1]} : vector<12x3xbf16> to vector<12x1xbf16>
    %221 = arith.extf %220 : vector<12x1xbf16> to vector<12x1xf32>
    %222 = vector.extract_strided_slice %212 {offsets = [1, 0], sizes = [1, 128], strides = [1, 1]} : vector<3x128xbf16> to vector<1x128xbf16>
    %223 = arith.extf %222 : vector<1x128xbf16> to vector<1x128xf32>
    %224 = vector.broadcast %221 : vector<12x1xf32> to vector<12x128xf32>
    %225 = vector.broadcast %223 : vector<1x128xf32> to vector<12x128xf32>
    %226 = arith.mulf %224, %225 : vector<12x128xf32>
    %227 = arith.addf %219, %226 : vector<12x128xf32>
    %228 = vector.extract_strided_slice %210 {offsets = [0, 2], sizes = [12, 1], strides = [1, 1]} : vector<12x3xbf16> to vector<12x1xbf16>
    %229 = arith.extf %228 : vector<12x1xbf16> to vector<12x1xf32>
    %230 = vector.extract_strided_slice %212 {offsets = [2, 0], sizes = [1, 128], strides = [1, 1]} : vector<3x128xbf16> to vector<1x128xbf16>
    %231 = arith.extf %230 : vector<1x128xbf16> to vector<1x128xf32>
    %232 = vector.broadcast %229 : vector<12x1xf32> to vector<12x128xf32>
    %233 = vector.broadcast %231 : vector<1x128xf32> to vector<12x128xf32>
    %234 = arith.mulf %232, %233 : vector<12x128xf32>
    %235 = arith.addf %227, %234 : vector<12x128xf32>
    %c0_76 = arith.constant 0 : index
    %c0_77 = arith.constant 0 : index
    %236 = vector.load %arg9[%c0_76, %c0_77] : memref<12x128xf32, #tpu.memory_space<vmem>>, vector<12x128xf32>
    %237 = arith.addf %236, %235 : vector<12x128xf32>
    %c0_78 = arith.constant 0 : index
    %c0_79 = arith.constant 0 : index
    %238 = vector.load %arg9[%c0_78, %c0_79] : memref<12x128xf32, #tpu.memory_space<vmem>>, vector<12x128xf32>
    tpu.vector_store %arg9[%c0_78, %c0_79], %237 {strides = array<i32>} : memref<12x128xf32, #tpu.memory_space<vmem>>, vector<12x128xf32>,
    %c0_80 = arith.constant 0 : index
    %c2_81 = arith.constant 2 : index
    %c2_82 = arith.constant 2 : index
    %c0_83 = arith.constant 0 : index
    %239 = vector.load %arg3[%c0_80, %c2_81, %c2_82, %c0_83] : memref<1x5x14x3xbf16, #tpu.memory_space<vmem>>, vector<1x1x12x3xbf16>
    %240 = vector.shape_cast %239 : vector<1x1x12x3xbf16> to vector<12x3xbf16>
    %c8 = arith.constant 8 : index
    %c0_84 = arith.constant 0 : index
    %c0_85 = arith.constant 0 : index
    %241 = vector.load %arg6[%c8, %c0_84, %c0_85] : memref<9x3x128xbf16, #tpu.memory_space<vmem>>, vector<1x3x128xbf16>
    %242 = vector.shape_cast %241 : vector<1x3x128xbf16> to vector<3x128xbf16>
    %243 = vector.extract_strided_slice %240 {offsets = [0, 0], sizes = [12, 1], strides = [1, 1]} : vector<12x3xbf16> to vector<12x1xbf16>
    %244 = arith.extf %243 : vector<12x1xbf16> to vector<12x1xf32>
    %245 = vector.extract_strided_slice %242 {offsets = [0, 0], sizes = [1, 128], strides = [1, 1]} : vector<3x128xbf16> to vector<1x128xbf16>
    %246 = arith.extf %245 : vector<1x128xbf16> to vector<1x128xf32>
    %247 = vector.broadcast %244 : vector<12x1xf32> to vector<12x128xf32>
    %248 = vector.broadcast %246 : vector<1x128xf32> to vector<12x128xf32>
    %249 = arith.mulf %247, %248 : vector<12x128xf32>
    %250 = vector.extract_strided_slice %240 {offsets = [0, 1], sizes = [12, 1], strides = [1, 1]} : vector<12x3xbf16> to vector<12x1xbf16>
    %251 = arith.extf %250 : vector<12x1xbf16> to vector<12x1xf32>
    %252 = vector.extract_strided_slice %242 {offsets = [1, 0], sizes = [1, 128], strides = [1, 1]} : vector<3x128xbf16> to vector<1x128xbf16>
    %253 = arith.extf %252 : vector<1x128xbf16> to vector<1x128xf32>
    %254 = vector.broadcast %251 : vector<12x1xf32> to vector<12x128xf32>
    %255 = vector.broadcast %253 : vector<1x128xf32> to vector<12x128xf32>
    %256 = arith.mulf %254, %255 : vector<12x128xf32>
    %257 = arith.addf %249, %256 : vector<12x128xf32>
    %258 = vector.extract_strided_slice %240 {offsets = [0, 2], sizes = [12, 1], strides = [1, 1]} : vector<12x3xbf16> to vector<12x1xbf16>
    %259 = arith.extf %258 : vector<12x1xbf16> to vector<12x1xf32>
    %260 = vector.extract_strided_slice %242 {offsets = [2, 0], sizes = [1, 128], strides = [1, 1]} : vector<3x128xbf16> to vector<1x128xbf16>
    %261 = arith.extf %260 : vector<1x128xbf16> to vector<1x128xf32>
    %262 = vector.broadcast %259 : vector<12x1xf32> to vector<12x128xf32>
    %263 = vector.broadcast %261 : vector<1x128xf32> to vector<12x128xf32>
    %264 = arith.mulf %262, %263 : vector<12x128xf32>
    %265 = arith.addf %257, %264 : vector<12x128xf32>
    %c0_86 = arith.constant 0 : index
    %c0_87 = arith.constant 0 : index
    %266 = vector.load %arg9[%c0_86, %c0_87] : memref<12x128xf32, #tpu.memory_space<vmem>>, vector<12x128xf32>
    %267 = arith.addf %266, %265 : vector<12x128xf32>
    %c0_88 = arith.constant 0 : index
    %c0_89 = arith.constant 0 : index
    %268 = vector.load %arg9[%c0_88, %c0_89] : memref<12x128xf32, #tpu.memory_space<vmem>>, vector<12x128xf32>
    tpu.vector_store %arg9[%c0_88, %c0_89], %267 {strides = array<i32>} : memref<12x128xf32, #tpu.memory_space<vmem>>, vector<12x128xf32>,
    %c0_90 = arith.constant 0 : index
    %c0_91 = arith.constant 0 : index
    %269 = vector.load %arg9[%c0_90, %c0_91] : memref<12x128xf32, #tpu.memory_space<vmem>>, vector<12x128xf32>
    %270 = vector.broadcast %0 : vector<1x128xf32> to vector<12x128xf32>
    %271 = arith.addf %269, %270 : vector<12x128xf32>
    %cst = arith.constant 0.000000e+00 : f32
    %272 = vector.broadcast %cst : f32 to vector<12x128xf32>
    %273 = arith.maximumf %271, %272 : vector<12x128xf32>
    %274 = arith.truncf %273 : vector<12x128xf32> to vector<12x128xbf16>
    %c0_92 = arith.constant 0 : index
    %c0_93 = arith.constant 0 : index
    %c0_94 = arith.constant 0 : index
    %c0_95 = arith.constant 0 : index
    %275 = vector.load %arg8[%c0_92, %c0_93, %c0_94, %c0_95] : memref<1x5x12x128xbf16, #tpu.memory_space<vmem>>, vector<1x1x12x128xbf16>
    %276 = vector.shape_cast %275 : vector<1x1x12x128xbf16> to vector<12x128xbf16>
    %277 = vector.shape_cast %274 : vector<12x128xbf16> to vector<1x1x12x128xbf16>
    tpu.vector_store %arg8[%c0_92, %c0_93, %c0_94, %c0_95], %277 {strides = array<i32>} : memref<1x5x12x128xbf16, #tpu.memory_space<vmem>>, vector<1x1x12x128xbf16>,
    %c0_96 = arith.constant 0 : index
    %c1_97 = arith.constant 1 : index
    %c0_98 = arith.constant 0 : index
    %c0_99 = arith.constant 0 : index
    %278 = vector.load %arg3[%c0_96, %c1_97, %c0_98, %c0_99] : memref<1x5x14x3xbf16, #tpu.memory_space<vmem>>, vector<1x1x12x3xbf16>
    %279 = vector.shape_cast %278 : vector<1x1x12x3xbf16> to vector<12x3xbf16>
    %c0_100 = arith.constant 0 : index
    %c0_101 = arith.constant 0 : index
    %c0_102 = arith.constant 0 : index
    %280 = vector.load %arg6[%c0_100, %c0_101, %c0_102] : memref<9x3x128xbf16, #tpu.memory_space<vmem>>, vector<1x3x128xbf16>
    %281 = vector.shape_cast %280 : vector<1x3x128xbf16> to vector<3x128xbf16>
    %282 = vector.extract_strided_slice %279 {offsets = [0, 0], sizes = [12, 1], strides = [1, 1]} : vector<12x3xbf16> to vector<12x1xbf16>
    %283 = arith.extf %282 : vector<12x1xbf16> to vector<12x1xf32>
    %284 = vector.extract_strided_slice %281 {offsets = [0, 0], sizes = [1, 128], strides = [1, 1]} : vector<3x128xbf16> to vector<1x128xbf16>
    %285 = arith.extf %284 : vector<1x128xbf16> to vector<1x128xf32>
    %286 = vector.broadcast %283 : vector<12x1xf32> to vector<12x128xf32>
    %287 = vector.broadcast %285 : vector<1x128xf32> to vector<12x128xf32>
    %288 = arith.mulf %286, %287 : vector<12x128xf32>
    %289 = vector.extract_strided_slice %279 {offsets = [0, 1], sizes = [12, 1], strides = [1, 1]} : vector<12x3xbf16> to vector<12x1xbf16>
    %290 = arith.extf %289 : vector<12x1xbf16> to vector<12x1xf32>
    %291 = vector.extract_strided_slice %281 {offsets = [1, 0], sizes = [1, 128], strides = [1, 1]} : vector<3x128xbf16> to vector<1x128xbf16>
    %292 = arith.extf %291 : vector<1x128xbf16> to vector<1x128xf32>
    %293 = vector.broadcast %290 : vector<12x1xf32> to vector<12x128xf32>
    %294 = vector.broadcast %292 : vector<1x128xf32> to vector<12x128xf32>
    %295 = arith.mulf %293, %294 : vector<12x128xf32>
    %296 = arith.addf %288, %295 : vector<12x128xf32>
    %297 = vector.extract_strided_slice %279 {offsets = [0, 2], sizes = [12, 1], strides = [1, 1]} : vector<12x3xbf16> to vector<12x1xbf16>
    %298 = arith.extf %297 : vector<12x1xbf16> to vector<12x1xf32>
    %299 = vector.extract_strided_slice %281 {offsets = [2, 0], sizes = [1, 128], strides = [1, 1]} : vector<3x128xbf16> to vector<1x128xbf16>
    %300 = arith.extf %299 : vector<1x128xbf16> to vector<1x128xf32>
    %301 = vector.broadcast %298 : vector<12x1xf32> to vector<12x128xf32>
    %302 = vector.broadcast %300 : vector<1x128xf32> to vector<12x128xf32>
    %303 = arith.mulf %301, %302 : vector<12x128xf32>
    %304 = arith.addf %296, %303 : vector<12x128xf32>
    %c0_103 = arith.constant 0 : index
    %c0_104 = arith.constant 0 : index
    %305 = vector.load %arg9[%c0_103, %c0_104] : memref<12x128xf32, #tpu.memory_space<vmem>>, vector<12x128xf32>
    tpu.vector_store %arg9[%c0_103, %c0_104], %304 {strides = array<i32>} : memref<12x128xf32, #tpu.memory_space<vmem>>, vector<12x128xf32>,
    %c0_105 = arith.constant 0 : index
    %c1_106 = arith.constant 1 : index
    %c1_107 = arith.constant 1 : index
    %c0_108 = arith.constant 0 : index
    %306 = vector.load %arg3[%c0_105, %c1_106, %c1_107, %c0_108] : memref<1x5x14x3xbf16, #tpu.memory_space<vmem>>, vector<1x1x12x3xbf16>
    %307 = vector.shape_cast %306 : vector<1x1x12x3xbf16> to vector<12x3xbf16>
    %c1_109 = arith.constant 1 : index
    %c0_110 = arith.constant 0 : index
    %c0_111 = arith.constant 0 : index
    %308 = vector.load %arg6[%c1_109, %c0_110, %c0_111] : memref<9x3x128xbf16, #tpu.memory_space<vmem>>, vector<1x3x128xbf16>
    %309 = vector.shape_cast %308 : vector<1x3x128xbf16> to vector<3x128xbf16>
    %310 = vector.extract_strided_slice %307 {offsets = [0, 0], sizes = [12, 1], strides = [1, 1]} : vector<12x3xbf16> to vector<12x1xbf16>
    %311 = arith.extf %310 : vector<12x1xbf16> to vector<12x1xf32>
    %312 = vector.extract_strided_slice %309 {offsets = [0, 0], sizes = [1, 128], strides = [1, 1]} : vector<3x128xbf16> to vector<1x128xbf16>
    %313 = arith.extf %312 : vector<1x128xbf16> to vector<1x128xf32>
    %314 = vector.broadcast %311 : vector<12x1xf32> to vector<12x128xf32>
    %315 = vector.broadcast %313 : vector<1x128xf32> to vector<12x128xf32>
    %316 = arith.mulf %314, %315 : vector<12x128xf32>
    %317 = vector.extract_strided_slice %307 {offsets = [0, 1], sizes = [12, 1], strides = [1, 1]} : vector<12x3xbf16> to vector<12x1xbf16>
    %318 = arith.extf %317 : vector<12x1xbf16> to vector<12x1xf32>
    %319 = vector.extract_strided_slice %309 {offsets = [1, 0], sizes = [1, 128], strides = [1, 1]} : vector<3x128xbf16> to vector<1x128xbf16>
    %320 = arith.extf %319 : vector<1x128xbf16> to vector<1x128xf32>
    %321 = vector.broadcast %318 : vector<12x1xf32> to vector<12x128xf32>
    %322 = vector.broadcast %320 : vector<1x128xf32> to vector<12x128xf32>
    %323 = arith.mulf %321, %322 : vector<12x128xf32>
    %324 = arith.addf %316, %323 : vector<12x128xf32>
    %325 = vector.extract_strided_slice %307 {offsets = [0, 2], sizes = [12, 1], strides = [1, 1]} : vector<12x3xbf16> to vector<12x1xbf16>
    %326 = arith.extf %325 : vector<12x1xbf16> to vector<12x1xf32>
    %327 = vector.extract_strided_slice %309 {offsets = [2, 0], sizes = [1, 128], strides = [1, 1]} : vector<3x128xbf16> to vector<1x128xbf16>
    %328 = arith.extf %327 : vector<1x128xbf16> to vector<1x128xf32>
    %329 = vector.broadcast %326 : vector<12x1xf32> to vector<12x128xf32>
    %330 = vector.broadcast %328 : vector<1x128xf32> to vector<12x128xf32>
    %331 = arith.mulf %329, %330 : vector<12x128xf32>
    %332 = arith.addf %324, %331 : vector<12x128xf32>
    %c0_112 = arith.constant 0 : index
    %c0_113 = arith.constant 0 : index
    %333 = vector.load %arg9[%c0_112, %c0_113] : memref<12x128xf32, #tpu.memory_space<vmem>>, vector<12x128xf32>
    %334 = arith.addf %333, %332 : vector<12x128xf32>
    %c0_114 = arith.constant 0 : index
    %c0_115 = arith.constant 0 : index
    %335 = vector.load %arg9[%c0_114, %c0_115] : memref<12x128xf32, #tpu.memory_space<vmem>>, vector<12x128xf32>
    tpu.vector_store %arg9[%c0_114, %c0_115], %334 {strides = array<i32>} : memref<12x128xf32, #tpu.memory_space<vmem>>, vector<12x128xf32>,
    %c0_116 = arith.constant 0 : index
    %c1_117 = arith.constant 1 : index
    %c2_118 = arith.constant 2 : index
    %c0_119 = arith.constant 0 : index
    %336 = vector.load %arg3[%c0_116, %c1_117, %c2_118, %c0_119] : memref<1x5x14x3xbf16, #tpu.memory_space<vmem>>, vector<1x1x12x3xbf16>
    %337 = vector.shape_cast %336 : vector<1x1x12x3xbf16> to vector<12x3xbf16>
    %c2_120 = arith.constant 2 : index
    %c0_121 = arith.constant 0 : index
    %c0_122 = arith.constant 0 : index
    %338 = vector.load %arg6[%c2_120, %c0_121, %c0_122] : memref<9x3x128xbf16, #tpu.memory_space<vmem>>, vector<1x3x128xbf16>
    %339 = vector.shape_cast %338 : vector<1x3x128xbf16> to vector<3x128xbf16>
    %340 = vector.extract_strided_slice %337 {offsets = [0, 0], sizes = [12, 1], strides = [1, 1]} : vector<12x3xbf16> to vector<12x1xbf16>
    %341 = arith.extf %340 : vector<12x1xbf16> to vector<12x1xf32>
    %342 = vector.extract_strided_slice %339 {offsets = [0, 0], sizes = [1, 128], strides = [1, 1]} : vector<3x128xbf16> to vector<1x128xbf16>
    %343 = arith.extf %342 : vector<1x128xbf16> to vector<1x128xf32>
    %344 = vector.broadcast %341 : vector<12x1xf32> to vector<12x128xf32>
    %345 = vector.broadcast %343 : vector<1x128xf32> to vector<12x128xf32>
    %346 = arith.mulf %344, %345 : vector<12x128xf32>
    %347 = vector.extract_strided_slice %337 {offsets = [0, 1], sizes = [12, 1], strides = [1, 1]} : vector<12x3xbf16> to vector<12x1xbf16>
    %348 = arith.extf %347 : vector<12x1xbf16> to vector<12x1xf32>
    %349 = vector.extract_strided_slice %339 {offsets = [1, 0], sizes = [1, 128], strides = [1, 1]} : vector<3x128xbf16> to vector<1x128xbf16>
    %350 = arith.extf %349 : vector<1x128xbf16> to vector<1x128xf32>
    %351 = vector.broadcast %348 : vector<12x1xf32> to vector<12x128xf32>
    %352 = vector.broadcast %350 : vector<1x128xf32> to vector<12x128xf32>
    %353 = arith.mulf %351, %352 : vector<12x128xf32>
    %354 = arith.addf %346, %353 : vector<12x128xf32>
    %355 = vector.extract_strided_slice %337 {offsets = [0, 2], sizes = [12, 1], strides = [1, 1]} : vector<12x3xbf16> to vector<12x1xbf16>
    %356 = arith.extf %355 : vector<12x1xbf16> to vector<12x1xf32>
    %357 = vector.extract_strided_slice %339 {offsets = [2, 0], sizes = [1, 128], strides = [1, 1]} : vector<3x128xbf16> to vector<1x128xbf16>
    %358 = arith.extf %357 : vector<1x128xbf16> to vector<1x128xf32>
    %359 = vector.broadcast %356 : vector<12x1xf32> to vector<12x128xf32>
    %360 = vector.broadcast %358 : vector<1x128xf32> to vector<12x128xf32>
    %361 = arith.mulf %359, %360 : vector<12x128xf32>
    %362 = arith.addf %354, %361 : vector<12x128xf32>
    %c0_123 = arith.constant 0 : index
    %c0_124 = arith.constant 0 : index
    %363 = vector.load %arg9[%c0_123, %c0_124] : memref<12x128xf32, #tpu.memory_space<vmem>>, vector<12x128xf32>
    %364 = arith.addf %363, %362 : vector<12x128xf32>
    %c0_125 = arith.constant 0 : index
    %c0_126 = arith.constant 0 : index
    %365 = vector.load %arg9[%c0_125, %c0_126] : memref<12x128xf32, #tpu.memory_space<vmem>>, vector<12x128xf32>
    tpu.vector_store %arg9[%c0_125, %c0_126], %364 {strides = array<i32>} : memref<12x128xf32, #tpu.memory_space<vmem>>, vector<12x128xf32>,
    %c0_127 = arith.constant 0 : index
    %c2_128 = arith.constant 2 : index
    %c0_129 = arith.constant 0 : index
    %c0_130 = arith.constant 0 : index
    %366 = vector.load %arg3[%c0_127, %c2_128, %c0_129, %c0_130] : memref<1x5x14x3xbf16, #tpu.memory_space<vmem>>, vector<1x1x12x3xbf16>
    %367 = vector.shape_cast %366 : vector<1x1x12x3xbf16> to vector<12x3xbf16>
    %c3_131 = arith.constant 3 : index
    %c0_132 = arith.constant 0 : index
    %c0_133 = arith.constant 0 : index
    %368 = vector.load %arg6[%c3_131, %c0_132, %c0_133] : memref<9x3x128xbf16, #tpu.memory_space<vmem>>, vector<1x3x128xbf16>
    %369 = vector.shape_cast %368 : vector<1x3x128xbf16> to vector<3x128xbf16>
    %370 = vector.extract_strided_slice %367 {offsets = [0, 0], sizes = [12, 1], strides = [1, 1]} : vector<12x3xbf16> to vector<12x1xbf16>
    %371 = arith.extf %370 : vector<12x1xbf16> to vector<12x1xf32>
    %372 = vector.extract_strided_slice %369 {offsets = [0, 0], sizes = [1, 128], strides = [1, 1]} : vector<3x128xbf16> to vector<1x128xbf16>
    %373 = arith.extf %372 : vector<1x128xbf16> to vector<1x128xf32>
    %374 = vector.broadcast %371 : vector<12x1xf32> to vector<12x128xf32>
    %375 = vector.broadcast %373 : vector<1x128xf32> to vector<12x128xf32>
    %376 = arith.mulf %374, %375 : vector<12x128xf32>
    %377 = vector.extract_strided_slice %367 {offsets = [0, 1], sizes = [12, 1], strides = [1, 1]} : vector<12x3xbf16> to vector<12x1xbf16>
    %378 = arith.extf %377 : vector<12x1xbf16> to vector<12x1xf32>
    %379 = vector.extract_strided_slice %369 {offsets = [1, 0], sizes = [1, 128], strides = [1, 1]} : vector<3x128xbf16> to vector<1x128xbf16>
    %380 = arith.extf %379 : vector<1x128xbf16> to vector<1x128xf32>
    %381 = vector.broadcast %378 : vector<12x1xf32> to vector<12x128xf32>
    %382 = vector.broadcast %380 : vector<1x128xf32> to vector<12x128xf32>
    %383 = arith.mulf %381, %382 : vector<12x128xf32>
    %384 = arith.addf %376, %383 : vector<12x128xf32>
    %385 = vector.extract_strided_slice %367 {offsets = [0, 2], sizes = [12, 1], strides = [1, 1]} : vector<12x3xbf16> to vector<12x1xbf16>
    %386 = arith.extf %385 : vector<12x1xbf16> to vector<12x1xf32>
    %387 = vector.extract_strided_slice %369 {offsets = [2, 0], sizes = [1, 128], strides = [1, 1]} : vector<3x128xbf16> to vector<1x128xbf16>
    %388 = arith.extf %387 : vector<1x128xbf16> to vector<1x128xf32>
    %389 = vector.broadcast %386 : vector<12x1xf32> to vector<12x128xf32>
    %390 = vector.broadcast %388 : vector<1x128xf32> to vector<12x128xf32>
    %391 = arith.mulf %389, %390 : vector<12x128xf32>
    %392 = arith.addf %384, %391 : vector<12x128xf32>
    %c0_134 = arith.constant 0 : index
    %c0_135 = arith.constant 0 : index
    %393 = vector.load %arg9[%c0_134, %c0_135] : memref<12x128xf32, #tpu.memory_space<vmem>>, vector<12x128xf32>
    %394 = arith.addf %393, %392 : vector<12x128xf32>
    %c0_136 = arith.constant 0 : index
    %c0_137 = arith.constant 0 : index
    %395 = vector.load %arg9[%c0_136, %c0_137] : memref<12x128xf32, #tpu.memory_space<vmem>>, vector<12x128xf32>
    tpu.vector_store %arg9[%c0_136, %c0_137], %394 {strides = array<i32>} : memref<12x128xf32, #tpu.memory_space<vmem>>, vector<12x128xf32>,
    %c0_138 = arith.constant 0 : index
    %c2_139 = arith.constant 2 : index
    %c1_140 = arith.constant 1 : index
    %c0_141 = arith.constant 0 : index
    %396 = vector.load %arg3[%c0_138, %c2_139, %c1_140, %c0_141] : memref<1x5x14x3xbf16, #tpu.memory_space<vmem>>, vector<1x1x12x3xbf16>
    %397 = vector.shape_cast %396 : vector<1x1x12x3xbf16> to vector<12x3xbf16>
    %c4_142 = arith.constant 4 : index
    %c0_143 = arith.constant 0 : index
    %c0_144 = arith.constant 0 : index
    %398 = vector.load %arg6[%c4_142, %c0_143, %c0_144] : memref<9x3x128xbf16, #tpu.memory_space<vmem>>, vector<1x3x128xbf16>
    %399 = vector.shape_cast %398 : vector<1x3x128xbf16> to vector<3x128xbf16>
    %400 = vector.extract_strided_slice %397 {offsets = [0, 0], sizes = [12, 1], strides = [1, 1]} : vector<12x3xbf16> to vector<12x1xbf16>
    %401 = arith.extf %400 : vector<12x1xbf16> to vector<12x1xf32>
    %402 = vector.extract_strided_slice %399 {offsets = [0, 0], sizes = [1, 128], strides = [1, 1]} : vector<3x128xbf16> to vector<1x128xbf16>
    %403 = arith.extf %402 : vector<1x128xbf16> to vector<1x128xf32>
    %404 = vector.broadcast %401 : vector<12x1xf32> to vector<12x128xf32>
    %405 = vector.broadcast %403 : vector<1x128xf32> to vector<12x128xf32>
    %406 = arith.mulf %404, %405 : vector<12x128xf32>
    %407 = vector.extract_strided_slice %397 {offsets = [0, 1], sizes = [12, 1], strides = [1, 1]} : vector<12x3xbf16> to vector<12x1xbf16>
    %408 = arith.extf %407 : vector<12x1xbf16> to vector<12x1xf32>
    %409 = vector.extract_strided_slice %399 {offsets = [1, 0], sizes = [1, 128], strides = [1, 1]} : vector<3x128xbf16> to vector<1x128xbf16>
    %410 = arith.extf %409 : vector<1x128xbf16> to vector<1x128xf32>
    %411 = vector.broadcast %408 : vector<12x1xf32> to vector<12x128xf32>
    %412 = vector.broadcast %410 : vector<1x128xf32> to vector<12x128xf32>
    %413 = arith.mulf %411, %412 : vector<12x128xf32>
    %414 = arith.addf %406, %413 : vector<12x128xf32>
    %415 = vector.extract_strided_slice %397 {offsets = [0, 2], sizes = [12, 1], strides = [1, 1]} : vector<12x3xbf16> to vector<12x1xbf16>
    %416 = arith.extf %415 : vector<12x1xbf16> to vector<12x1xf32>
    %417 = vector.extract_strided_slice %399 {offsets = [2, 0], sizes = [1, 128], strides = [1, 1]} : vector<3x128xbf16> to vector<1x128xbf16>
    %418 = arith.extf %417 : vector<1x128xbf16> to vector<1x128xf32>
    %419 = vector.broadcast %416 : vector<12x1xf32> to vector<12x128xf32>
    %420 = vector.broadcast %418 : vector<1x128xf32> to vector<12x128xf32>
    %421 = arith.mulf %419, %420 : vector<12x128xf32>
    %422 = arith.addf %414, %421 : vector<12x128xf32>
    %c0_145 = arith.constant 0 : index
    %c0_146 = arith.constant 0 : index
    %423 = vector.load %arg9[%c0_145, %c0_146] : memref<12x128xf32, #tpu.memory_space<vmem>>, vector<12x128xf32>
    %424 = arith.addf %423, %422 : vector<12x128xf32>
    %c0_147 = arith.constant 0 : index
    %c0_148 = arith.constant 0 : index
    %425 = vector.load %arg9[%c0_147, %c0_148] : memref<12x128xf32, #tpu.memory_space<vmem>>, vector<12x128xf32>
    tpu.vector_store %arg9[%c0_147, %c0_148], %424 {strides = array<i32>} : memref<12x128xf32, #tpu.memory_space<vmem>>, vector<12x128xf32>,
    %c0_149 = arith.constant 0 : index
    %c2_150 = arith.constant 2 : index
    %c2_151 = arith.constant 2 : index
    %c0_152 = arith.constant 0 : index
    %426 = vector.load %arg3[%c0_149, %c2_150, %c2_151, %c0_152] : memref<1x5x14x3xbf16, #tpu.memory_space<vmem>>, vector<1x1x12x3xbf16>
    %427 = vector.shape_cast %426 : vector<1x1x12x3xbf16> to vector<12x3xbf16>
    %c5_153 = arith.constant 5 : index
    %c0_154 = arith.constant 0 : index
    %c0_155 = arith.constant 0 : index
    %428 = vector.load %arg6[%c5_153, %c0_154, %c0_155] : memref<9x3x128xbf16, #tpu.memory_space<vmem>>, vector<1x3x128xbf16>
    %429 = vector.shape_cast %428 : vector<1x3x128xbf16> to vector<3x128xbf16>
    %430 = vector.extract_strided_slice %427 {offsets = [0, 0], sizes = [12, 1], strides = [1, 1]} : vector<12x3xbf16> to vector<12x1xbf16>
    %431 = arith.extf %430 : vector<12x1xbf16> to vector<12x1xf32>
    %432 = vector.extract_strided_slice %429 {offsets = [0, 0], sizes = [1, 128], strides = [1, 1]} : vector<3x128xbf16> to vector<1x128xbf16>
    %433 = arith.extf %432 : vector<1x128xbf16> to vector<1x128xf32>
    %434 = vector.broadcast %431 : vector<12x1xf32> to vector<12x128xf32>
    %435 = vector.broadcast %433 : vector<1x128xf32> to vector<12x128xf32>
    %436 = arith.mulf %434, %435 : vector<12x128xf32>
    %437 = vector.extract_strided_slice %427 {offsets = [0, 1], sizes = [12, 1], strides = [1, 1]} : vector<12x3xbf16> to vector<12x1xbf16>
    %438 = arith.extf %437 : vector<12x1xbf16> to vector<12x1xf32>
    %439 = vector.extract_strided_slice %429 {offsets = [1, 0], sizes = [1, 128], strides = [1, 1]} : vector<3x128xbf16> to vector<1x128xbf16>
    %440 = arith.extf %439 : vector<1x128xbf16> to vector<1x128xf32>
    %441 = vector.broadcast %438 : vector<12x1xf32> to vector<12x128xf32>
    %442 = vector.broadcast %440 : vector<1x128xf32> to vector<12x128xf32>
    %443 = arith.mulf %441, %442 : vector<12x128xf32>
    %444 = arith.addf %436, %443 : vector<12x128xf32>
    %445 = vector.extract_strided_slice %427 {offsets = [0, 2], sizes = [12, 1], strides = [1, 1]} : vector<12x3xbf16> to vector<12x1xbf16>
    %446 = arith.extf %445 : vector<12x1xbf16> to vector<12x1xf32>
    %447 = vector.extract_strided_slice %429 {offsets = [2, 0], sizes = [1, 128], strides = [1, 1]} : vector<3x128xbf16> to vector<1x128xbf16>
    %448 = arith.extf %447 : vector<1x128xbf16> to vector<1x128xf32>
    %449 = vector.broadcast %446 : vector<12x1xf32> to vector<12x128xf32>
    %450 = vector.broadcast %448 : vector<1x128xf32> to vector<12x128xf32>
    %451 = arith.mulf %449, %450 : vector<12x128xf32>
    %452 = arith.addf %444, %451 : vector<12x128xf32>
    %c0_156 = arith.constant 0 : index
    %c0_157 = arith.constant 0 : index
    %453 = vector.load %arg9[%c0_156, %c0_157] : memref<12x128xf32, #tpu.memory_space<vmem>>, vector<12x128xf32>
    %454 = arith.addf %453, %452 : vector<12x128xf32>
    %c0_158 = arith.constant 0 : index
    %c0_159 = arith.constant 0 : index
    %455 = vector.load %arg9[%c0_158, %c0_159] : memref<12x128xf32, #tpu.memory_space<vmem>>, vector<12x128xf32>
    tpu.vector_store %arg9[%c0_158, %c0_159], %454 {strides = array<i32>} : memref<12x128xf32, #tpu.memory_space<vmem>>, vector<12x128xf32>,
    %c0_160 = arith.constant 0 : index
    %c3_161 = arith.constant 3 : index
    %c0_162 = arith.constant 0 : index
    %c0_163 = arith.constant 0 : index
    %456 = vector.load %arg3[%c0_160, %c3_161, %c0_162, %c0_163] : memref<1x5x14x3xbf16, #tpu.memory_space<vmem>>, vector<1x1x12x3xbf16>
    %457 = vector.shape_cast %456 : vector<1x1x12x3xbf16> to vector<12x3xbf16>
    %c6_164 = arith.constant 6 : index
    %c0_165 = arith.constant 0 : index
    %c0_166 = arith.constant 0 : index
    %458 = vector.load %arg6[%c6_164, %c0_165, %c0_166] : memref<9x3x128xbf16, #tpu.memory_space<vmem>>, vector<1x3x128xbf16>
    %459 = vector.shape_cast %458 : vector<1x3x128xbf16> to vector<3x128xbf16>
    %460 = vector.extract_strided_slice %457 {offsets = [0, 0], sizes = [12, 1], strides = [1, 1]} : vector<12x3xbf16> to vector<12x1xbf16>
    %461 = arith.extf %460 : vector<12x1xbf16> to vector<12x1xf32>
    %462 = vector.extract_strided_slice %459 {offsets = [0, 0], sizes = [1, 128], strides = [1, 1]} : vector<3x128xbf16> to vector<1x128xbf16>
    %463 = arith.extf %462 : vector<1x128xbf16> to vector<1x128xf32>
    %464 = vector.broadcast %461 : vector<12x1xf32> to vector<12x128xf32>
    %465 = vector.broadcast %463 : vector<1x128xf32> to vector<12x128xf32>
    %466 = arith.mulf %464, %465 : vector<12x128xf32>
    %467 = vector.extract_strided_slice %457 {offsets = [0, 1], sizes = [12, 1], strides = [1, 1]} : vector<12x3xbf16> to vector<12x1xbf16>
    %468 = arith.extf %467 : vector<12x1xbf16> to vector<12x1xf32>
    %469 = vector.extract_strided_slice %459 {offsets = [1, 0], sizes = [1, 128], strides = [1, 1]} : vector<3x128xbf16> to vector<1x128xbf16>
    %470 = arith.extf %469 : vector<1x128xbf16> to vector<1x128xf32>
    %471 = vector.broadcast %468 : vector<12x1xf32> to vector<12x128xf32>
    %472 = vector.broadcast %470 : vector<1x128xf32> to vector<12x128xf32>
    %473 = arith.mulf %471, %472 : vector<12x128xf32>
    %474 = arith.addf %466, %473 : vector<12x128xf32>
    %475 = vector.extract_strided_slice %457 {offsets = [0, 2], sizes = [12, 1], strides = [1, 1]} : vector<12x3xbf16> to vector<12x1xbf16>
    %476 = arith.extf %475 : vector<12x1xbf16> to vector<12x1xf32>
    %477 = vector.extract_strided_slice %459 {offsets = [2, 0], sizes = [1, 128], strides = [1, 1]} : vector<3x128xbf16> to vector<1x128xbf16>
    %478 = arith.extf %477 : vector<1x128xbf16> to vector<1x128xf32>
    %479 = vector.broadcast %476 : vector<12x1xf32> to vector<12x128xf32>
    %480 = vector.broadcast %478 : vector<1x128xf32> to vector<12x128xf32>
    %481 = arith.mulf %479, %480 : vector<12x128xf32>
    %482 = arith.addf %474, %481 : vector<12x128xf32>
    %c0_167 = arith.constant 0 : index
    %c0_168 = arith.constant 0 : index
    %483 = vector.load %arg9[%c0_167, %c0_168] : memref<12x128xf32, #tpu.memory_space<vmem>>, vector<12x128xf32>
    %484 = arith.addf %483, %482 : vector<12x128xf32>
    %c0_169 = arith.constant 0 : index
    %c0_170 = arith.constant 0 : index
    %485 = vector.load %arg9[%c0_169, %c0_170] : memref<12x128xf32, #tpu.memory_space<vmem>>, vector<12x128xf32>
    tpu.vector_store %arg9[%c0_169, %c0_170], %484 {strides = array<i32>} : memref<12x128xf32, #tpu.memory_space<vmem>>, vector<12x128xf32>,
    %c0_171 = arith.constant 0 : index
    %c3_172 = arith.constant 3 : index
    %c1_173 = arith.constant 1 : index
    %c0_174 = arith.constant 0 : index
    %486 = vector.load %arg3[%c0_171, %c3_172, %c1_173, %c0_174] : memref<1x5x14x3xbf16, #tpu.memory_space<vmem>>, vector<1x1x12x3xbf16>
    %487 = vector.shape_cast %486 : vector<1x1x12x3xbf16> to vector<12x3xbf16>
    %c7_175 = arith.constant 7 : index
    %c0_176 = arith.constant 0 : index
    %c0_177 = arith.constant 0 : index
    %488 = vector.load %arg6[%c7_175, %c0_176, %c0_177] : memref<9x3x128xbf16, #tpu.memory_space<vmem>>, vector<1x3x128xbf16>
    %489 = vector.shape_cast %488 : vector<1x3x128xbf16> to vector<3x128xbf16>
    %490 = vector.extract_strided_slice %487 {offsets = [0, 0], sizes = [12, 1], strides = [1, 1]} : vector<12x3xbf16> to vector<12x1xbf16>
    %491 = arith.extf %490 : vector<12x1xbf16> to vector<12x1xf32>
    %492 = vector.extract_strided_slice %489 {offsets = [0, 0], sizes = [1, 128], strides = [1, 1]} : vector<3x128xbf16> to vector<1x128xbf16>
    %493 = arith.extf %492 : vector<1x128xbf16> to vector<1x128xf32>
    %494 = vector.broadcast %491 : vector<12x1xf32> to vector<12x128xf32>
    %495 = vector.broadcast %493 : vector<1x128xf32> to vector<12x128xf32>
    %496 = arith.mulf %494, %495 : vector<12x128xf32>
    %497 = vector.extract_strided_slice %487 {offsets = [0, 1], sizes = [12, 1], strides = [1, 1]} : vector<12x3xbf16> to vector<12x1xbf16>
    %498 = arith.extf %497 : vector<12x1xbf16> to vector<12x1xf32>
    %499 = vector.extract_strided_slice %489 {offsets = [1, 0], sizes = [1, 128], strides = [1, 1]} : vector<3x128xbf16> to vector<1x128xbf16>
    %500 = arith.extf %499 : vector<1x128xbf16> to vector<1x128xf32>
    %501 = vector.broadcast %498 : vector<12x1xf32> to vector<12x128xf32>
    %502 = vector.broadcast %500 : vector<1x128xf32> to vector<12x128xf32>
    %503 = arith.mulf %501, %502 : vector<12x128xf32>
    %504 = arith.addf %496, %503 : vector<12x128xf32>
    %505 = vector.extract_strided_slice %487 {offsets = [0, 2], sizes = [12, 1], strides = [1, 1]} : vector<12x3xbf16> to vector<12x1xbf16>
    %506 = arith.extf %505 : vector<12x1xbf16> to vector<12x1xf32>
    %507 = vector.extract_strided_slice %489 {offsets = [2, 0], sizes = [1, 128], strides = [1, 1]} : vector<3x128xbf16> to vector<1x128xbf16>
    %508 = arith.extf %507 : vector<1x128xbf16> to vector<1x128xf32>
    %509 = vector.broadcast %506 : vector<12x1xf32> to vector<12x128xf32>
    %510 = vector.broadcast %508 : vector<1x128xf32> to vector<12x128xf32>
    %511 = arith.mulf %509, %510 : vector<12x128xf32>
    %512 = arith.addf %504, %511 : vector<12x128xf32>
    %c0_178 = arith.constant 0 : index
    %c0_179 = arith.constant 0 : index
    %513 = vector.load %arg9[%c0_178, %c0_179] : memref<12x128xf32, #tpu.memory_space<vmem>>, vector<12x128xf32>
    %514 = arith.addf %513, %512 : vector<12x128xf32>
    %c0_180 = arith.constant 0 : index
    %c0_181 = arith.constant 0 : index
    %515 = vector.load %arg9[%c0_180, %c0_181] : memref<12x128xf32, #tpu.memory_space<vmem>>, vector<12x128xf32>
    tpu.vector_store %arg9[%c0_180, %c0_181], %514 {strides = array<i32>} : memref<12x128xf32, #tpu.memory_space<vmem>>, vector<12x128xf32>,
    %c0_182 = arith.constant 0 : index
    %c3_183 = arith.constant 3 : index
    %c2_184 = arith.constant 2 : index
    %c0_185 = arith.constant 0 : index
    %516 = vector.load %arg3[%c0_182, %c3_183, %c2_184, %c0_185] : memref<1x5x14x3xbf16, #tpu.memory_space<vmem>>, vector<1x1x12x3xbf16>
    %517 = vector.shape_cast %516 : vector<1x1x12x3xbf16> to vector<12x3xbf16>
    %c8_186 = arith.constant 8 : index
    %c0_187 = arith.constant 0 : index
    %c0_188 = arith.constant 0 : index
    %518 = vector.load %arg6[%c8_186, %c0_187, %c0_188] : memref<9x3x128xbf16, #tpu.memory_space<vmem>>, vector<1x3x128xbf16>
    %519 = vector.shape_cast %518 : vector<1x3x128xbf16> to vector<3x128xbf16>
    %520 = vector.extract_strided_slice %517 {offsets = [0, 0], sizes = [12, 1], strides = [1, 1]} : vector<12x3xbf16> to vector<12x1xbf16>
    %521 = arith.extf %520 : vector<12x1xbf16> to vector<12x1xf32>
    %522 = vector.extract_strided_slice %519 {offsets = [0, 0], sizes = [1, 128], strides = [1, 1]} : vector<3x128xbf16> to vector<1x128xbf16>
    %523 = arith.extf %522 : vector<1x128xbf16> to vector<1x128xf32>
    %524 = vector.broadcast %521 : vector<12x1xf32> to vector<12x128xf32>
    %525 = vector.broadcast %523 : vector<1x128xf32> to vector<12x128xf32>
    %526 = arith.mulf %524, %525 : vector<12x128xf32>
    %527 = vector.extract_strided_slice %517 {offsets = [0, 1], sizes = [12, 1], strides = [1, 1]} : vector<12x3xbf16> to vector<12x1xbf16>
    %528 = arith.extf %527 : vector<12x1xbf16> to vector<12x1xf32>
    %529 = vector.extract_strided_slice %519 {offsets = [1, 0], sizes = [1, 128], strides = [1, 1]} : vector<3x128xbf16> to vector<1x128xbf16>
    %530 = arith.extf %529 : vector<1x128xbf16> to vector<1x128xf32>
    %531 = vector.broadcast %528 : vector<12x1xf32> to vector<12x128xf32>
    %532 = vector.broadcast %530 : vector<1x128xf32> to vector<12x128xf32>
    %533 = arith.mulf %531, %532 : vector<12x128xf32>
    %534 = arith.addf %526, %533 : vector<12x128xf32>
    %535 = vector.extract_strided_slice %517 {offsets = [0, 2], sizes = [12, 1], strides = [1, 1]} : vector<12x3xbf16> to vector<12x1xbf16>
    %536 = arith.extf %535 : vector<12x1xbf16> to vector<12x1xf32>
    %537 = vector.extract_strided_slice %519 {offsets = [2, 0], sizes = [1, 128], strides = [1, 1]} : vector<3x128xbf16> to vector<1x128xbf16>
    %538 = arith.extf %537 : vector<1x128xbf16> to vector<1x128xf32>
    %539 = vector.broadcast %536 : vector<12x1xf32> to vector<12x128xf32>
    %540 = vector.broadcast %538 : vector<1x128xf32> to vector<12x128xf32>
    %541 = arith.mulf %539, %540 : vector<12x128xf32>
    %542 = arith.addf %534, %541 : vector<12x128xf32>
    %c0_189 = arith.constant 0 : index
    %c0_190 = arith.constant 0 : index
    %543 = vector.load %arg9[%c0_189, %c0_190] : memref<12x128xf32, #tpu.memory_space<vmem>>, vector<12x128xf32>
    %544 = arith.addf %543, %542 : vector<12x128xf32>
    %c0_191 = arith.constant 0 : index
    %c0_192 = arith.constant 0 : index
    %545 = vector.load %arg9[%c0_191, %c0_192] : memref<12x128xf32, #tpu.memory_space<vmem>>, vector<12x128xf32>
    tpu.vector_store %arg9[%c0_191, %c0_192], %544 {strides = array<i32>} : memref<12x128xf32, #tpu.memory_space<vmem>>, vector<12x128xf32>,
    %c0_193 = arith.constant 0 : index
    %c0_194 = arith.constant 0 : index
    %546 = vector.load %arg9[%c0_193, %c0_194] : memref<12x128xf32, #tpu.memory_space<vmem>>, vector<12x128xf32>
    %547 = vector.broadcast %0 : vector<1x128xf32> to vector<12x128xf32>
    %548 = arith.addf %546, %547 : vector<12x128xf32>
    %cst_195 = arith.constant 0.000000e+00 : f32
    %549 = vector.broadcast %cst_195 : f32 to vector<12x128xf32>
    %550 = arith.maximumf %548, %549 : vector<12x128xf32>
    %551 = arith.truncf %550 : vector<12x128xf32> to vector<12x128xbf16>
    %c0_196 = arith.constant 0 : index
    %c1_197 = arith.constant 1 : index
    %c0_198 = arith.constant 0 : index
    %c0_199 = arith.constant 0 : index
    %552 = vector.load %arg8[%c0_196, %c1_197, %c0_198, %c0_199] : memref<1x5x12x128xbf16, #tpu.memory_space<vmem>>, vector<1x1x12x128xbf16>
    %553 = vector.shape_cast %552 : vector<1x1x12x128xbf16> to vector<12x128xbf16>
    %554 = vector.shape_cast %551 : vector<12x128xbf16> to vector<1x1x12x128xbf16>
    tpu.vector_store %arg8[%c0_196, %c1_197, %c0_198, %c0_199], %554 {strides = array<i32>} : memref<1x5x12x128xbf16, #tpu.memory_space<vmem>>, vector<1x1x12x128xbf16>,
    %c0_200 = arith.constant 0 : index
    %c2_201 = arith.constant 2 : index
    %c0_202 = arith.constant 0 : index
    %c0_203 = arith.constant 0 : index
    %555 = vector.load %arg3[%c0_200, %c2_201, %c0_202, %c0_203] : memref<1x5x14x3xbf16, #tpu.memory_space<vmem>>, vector<1x1x12x3xbf16>
    %556 = vector.shape_cast %555 : vector<1x1x12x3xbf16> to vector<12x3xbf16>
    %c0_204 = arith.constant 0 : index
    %c0_205 = arith.constant 0 : index
    %c0_206 = arith.constant 0 : index
    %557 = vector.load %arg6[%c0_204, %c0_205, %c0_206] : memref<9x3x128xbf16, #tpu.memory_space<vmem>>, vector<1x3x128xbf16>
    %558 = vector.shape_cast %557 : vector<1x3x128xbf16> to vector<3x128xbf16>
    %559 = vector.extract_strided_slice %556 {offsets = [0, 0], sizes = [12, 1], strides = [1, 1]} : vector<12x3xbf16> to vector<12x1xbf16>
    %560 = arith.extf %559 : vector<12x1xbf16> to vector<12x1xf32>
    %561 = vector.extract_strided_slice %558 {offsets = [0, 0], sizes = [1, 128], strides = [1, 1]} : vector<3x128xbf16> to vector<1x128xbf16>
    %562 = arith.extf %561 : vector<1x128xbf16> to vector<1x128xf32>
    %563 = vector.broadcast %560 : vector<12x1xf32> to vector<12x128xf32>
    %564 = vector.broadcast %562 : vector<1x128xf32> to vector<12x128xf32>
    %565 = arith.mulf %563, %564 : vector<12x128xf32>
    %566 = vector.extract_strided_slice %556 {offsets = [0, 1], sizes = [12, 1], strides = [1, 1]} : vector<12x3xbf16> to vector<12x1xbf16>
    %567 = arith.extf %566 : vector<12x1xbf16> to vector<12x1xf32>
    %568 = vector.extract_strided_slice %558 {offsets = [1, 0], sizes = [1, 128], strides = [1, 1]} : vector<3x128xbf16> to vector<1x128xbf16>
    %569 = arith.extf %568 : vector<1x128xbf16> to vector<1x128xf32>
    %570 = vector.broadcast %567 : vector<12x1xf32> to vector<12x128xf32>
    %571 = vector.broadcast %569 : vector<1x128xf32> to vector<12x128xf32>
    %572 = arith.mulf %570, %571 : vector<12x128xf32>
    %573 = arith.addf %565, %572 : vector<12x128xf32>
    %574 = vector.extract_strided_slice %556 {offsets = [0, 2], sizes = [12, 1], strides = [1, 1]} : vector<12x3xbf16> to vector<12x1xbf16>
    %575 = arith.extf %574 : vector<12x1xbf16> to vector<12x1xf32>
    %576 = vector.extract_strided_slice %558 {offsets = [2, 0], sizes = [1, 128], strides = [1, 1]} : vector<3x128xbf16> to vector<1x128xbf16>
    %577 = arith.extf %576 : vector<1x128xbf16> to vector<1x128xf32>
    %578 = vector.broadcast %575 : vector<12x1xf32> to vector<12x128xf32>
    %579 = vector.broadcast %577 : vector<1x128xf32> to vector<12x128xf32>
    %580 = arith.mulf %578, %579 : vector<12x128xf32>
    %581 = arith.addf %573, %580 : vector<12x128xf32>
    %c0_207 = arith.constant 0 : index
    %c0_208 = arith.constant 0 : index
    %582 = vector.load %arg9[%c0_207, %c0_208] : memref<12x128xf32, #tpu.memory_space<vmem>>, vector<12x128xf32>
    tpu.vector_store %arg9[%c0_207, %c0_208], %581 {strides = array<i32>} : memref<12x128xf32, #tpu.memory_space<vmem>>, vector<12x128xf32>,
    %c0_209 = arith.constant 0 : index
    %c2_210 = arith.constant 2 : index
    %c1_211 = arith.constant 1 : index
    %c0_212 = arith.constant 0 : index
    %583 = vector.load %arg3[%c0_209, %c2_210, %c1_211, %c0_212] : memref<1x5x14x3xbf16, #tpu.memory_space<vmem>>, vector<1x1x12x3xbf16>
    %584 = vector.shape_cast %583 : vector<1x1x12x3xbf16> to vector<12x3xbf16>
    %c1_213 = arith.constant 1 : index
    %c0_214 = arith.constant 0 : index
    %c0_215 = arith.constant 0 : index
    %585 = vector.load %arg6[%c1_213, %c0_214, %c0_215] : memref<9x3x128xbf16, #tpu.memory_space<vmem>>, vector<1x3x128xbf16>
    %586 = vector.shape_cast %585 : vector<1x3x128xbf16> to vector<3x128xbf16>
    %587 = vector.extract_strided_slice %584 {offsets = [0, 0], sizes = [12, 1], strides = [1, 1]} : vector<12x3xbf16> to vector<12x1xbf16>
    %588 = arith.extf %587 : vector<12x1xbf16> to vector<12x1xf32>
    %589 = vector.extract_strided_slice %586 {offsets = [0, 0], sizes = [1, 128], strides = [1, 1]} : vector<3x128xbf16> to vector<1x128xbf16>
    %590 = arith.extf %589 : vector<1x128xbf16> to vector<1x128xf32>
    %591 = vector.broadcast %588 : vector<12x1xf32> to vector<12x128xf32>
    %592 = vector.broadcast %590 : vector<1x128xf32> to vector<12x128xf32>
    %593 = arith.mulf %591, %592 : vector<12x128xf32>
    %594 = vector.extract_strided_slice %584 {offsets = [0, 1], sizes = [12, 1], strides = [1, 1]} : vector<12x3xbf16> to vector<12x1xbf16>
    %595 = arith.extf %594 : vector<12x1xbf16> to vector<12x1xf32>
    %596 = vector.extract_strided_slice %586 {offsets = [1, 0], sizes = [1, 128], strides = [1, 1]} : vector<3x128xbf16> to vector<1x128xbf16>
    %597 = arith.extf %596 : vector<1x128xbf16> to vector<1x128xf32>
    %598 = vector.broadcast %595 : vector<12x1xf32> to vector<12x128xf32>
    %599 = vector.broadcast %597 : vector<1x128xf32> to vector<12x128xf32>
    %600 = arith.mulf %598, %599 : vector<12x128xf32>
    %601 = arith.addf %593, %600 : vector<12x128xf32>
    %602 = vector.extract_strided_slice %584 {offsets = [0, 2], sizes = [12, 1], strides = [1, 1]} : vector<12x3xbf16> to vector<12x1xbf16>
    %603 = arith.extf %602 : vector<12x1xbf16> to vector<12x1xf32>
    %604 = vector.extract_strided_slice %586 {offsets = [2, 0], sizes = [1, 128], strides = [1, 1]} : vector<3x128xbf16> to vector<1x128xbf16>
    %605 = arith.extf %604 : vector<1x128xbf16> to vector<1x128xf32>
    %606 = vector.broadcast %603 : vector<12x1xf32> to vector<12x128xf32>
    %607 = vector.broadcast %605 : vector<1x128xf32> to vector<12x128xf32>
    %608 = arith.mulf %606, %607 : vector<12x128xf32>
    %609 = arith.addf %601, %608 : vector<12x128xf32>
    %c0_216 = arith.constant 0 : index
    %c0_217 = arith.constant 0 : index
    %610 = vector.load %arg9[%c0_216, %c0_217] : memref<12x128xf32, #tpu.memory_space<vmem>>, vector<12x128xf32>
    %611 = arith.addf %610, %609 : vector<12x128xf32>
    %c0_218 = arith.constant 0 : index
    %c0_219 = arith.constant 0 : index
    %612 = vector.load %arg9[%c0_218, %c0_219] : memref<12x128xf32, #tpu.memory_space<vmem>>, vector<12x128xf32>
    tpu.vector_store %arg9[%c0_218, %c0_219], %611 {strides = array<i32>} : memref<12x128xf32, #tpu.memory_space<vmem>>, vector<12x128xf32>,
    %c0_220 = arith.constant 0 : index
    %c2_221 = arith.constant 2 : index
    %c2_222 = arith.constant 2 : index
    %c0_223 = arith.constant 0 : index
    %613 = vector.load %arg3[%c0_220, %c2_221, %c2_222, %c0_223] : memref<1x5x14x3xbf16, #tpu.memory_space<vmem>>, vector<1x1x12x3xbf16>
    %614 = vector.shape_cast %613 : vector<1x1x12x3xbf16> to vector<12x3xbf16>
    %c2_224 = arith.constant 2 : index
    %c0_225 = arith.constant 0 : index
    %c0_226 = arith.constant 0 : index
    %615 = vector.load %arg6[%c2_224, %c0_225, %c0_226] : memref<9x3x128xbf16, #tpu.memory_space<vmem>>, vector<1x3x128xbf16>
    %616 = vector.shape_cast %615 : vector<1x3x128xbf16> to vector<3x128xbf16>
    %617 = vector.extract_strided_slice %614 {offsets = [0, 0], sizes = [12, 1], strides = [1, 1]} : vector<12x3xbf16> to vector<12x1xbf16>
    %618 = arith.extf %617 : vector<12x1xbf16> to vector<12x1xf32>
    %619 = vector.extract_strided_slice %616 {offsets = [0, 0], sizes = [1, 128], strides = [1, 1]} : vector<3x128xbf16> to vector<1x128xbf16>
    %620 = arith.extf %619 : vector<1x128xbf16> to vector<1x128xf32>
    %621 = vector.broadcast %618 : vector<12x1xf32> to vector<12x128xf32>
    %622 = vector.broadcast %620 : vector<1x128xf32> to vector<12x128xf32>
    %623 = arith.mulf %621, %622 : vector<12x128xf32>
    %624 = vector.extract_strided_slice %614 {offsets = [0, 1], sizes = [12, 1], strides = [1, 1]} : vector<12x3xbf16> to vector<12x1xbf16>
    %625 = arith.extf %624 : vector<12x1xbf16> to vector<12x1xf32>
    %626 = vector.extract_strided_slice %616 {offsets = [1, 0], sizes = [1, 128], strides = [1, 1]} : vector<3x128xbf16> to vector<1x128xbf16>
    %627 = arith.extf %626 : vector<1x128xbf16> to vector<1x128xf32>
    %628 = vector.broadcast %625 : vector<12x1xf32> to vector<12x128xf32>
    %629 = vector.broadcast %627 : vector<1x128xf32> to vector<12x128xf32>
    %630 = arith.mulf %628, %629 : vector<12x128xf32>
    %631 = arith.addf %623, %630 : vector<12x128xf32>
    %632 = vector.extract_strided_slice %614 {offsets = [0, 2], sizes = [12, 1], strides = [1, 1]} : vector<12x3xbf16> to vector<12x1xbf16>
    %633 = arith.extf %632 : vector<12x1xbf16> to vector<12x1xf32>
    %634 = vector.extract_strided_slice %616 {offsets = [2, 0], sizes = [1, 128], strides = [1, 1]} : vector<3x128xbf16> to vector<1x128xbf16>
    %635 = arith.extf %634 : vector<1x128xbf16> to vector<1x128xf32>
    %636 = vector.broadcast %633 : vector<12x1xf32> to vector<12x128xf32>
    %637 = vector.broadcast %635 : vector<1x128xf32> to vector<12x128xf32>
    %638 = arith.mulf %636, %637 : vector<12x128xf32>
    %639 = arith.addf %631, %638 : vector<12x128xf32>
    %c0_227 = arith.constant 0 : index
    %c0_228 = arith.constant 0 : index
    %640 = vector.load %arg9[%c0_227, %c0_228] : memref<12x128xf32, #tpu.memory_space<vmem>>, vector<12x128xf32>
    %641 = arith.addf %640, %639 : vector<12x128xf32>
    %c0_229 = arith.constant 0 : index
    %c0_230 = arith.constant 0 : index
    %642 = vector.load %arg9[%c0_229, %c0_230] : memref<12x128xf32, #tpu.memory_space<vmem>>, vector<12x128xf32>
    tpu.vector_store %arg9[%c0_229, %c0_230], %641 {strides = array<i32>} : memref<12x128xf32, #tpu.memory_space<vmem>>, vector<12x128xf32>,
    %c0_231 = arith.constant 0 : index
    %c3_232 = arith.constant 3 : index
    %c0_233 = arith.constant 0 : index
    %c0_234 = arith.constant 0 : index
    %643 = vector.load %arg3[%c0_231, %c3_232, %c0_233, %c0_234] : memref<1x5x14x3xbf16, #tpu.memory_space<vmem>>, vector<1x1x12x3xbf16>
    %644 = vector.shape_cast %643 : vector<1x1x12x3xbf16> to vector<12x3xbf16>
    %c3_235 = arith.constant 3 : index
    %c0_236 = arith.constant 0 : index
    %c0_237 = arith.constant 0 : index
    %645 = vector.load %arg6[%c3_235, %c0_236, %c0_237] : memref<9x3x128xbf16, #tpu.memory_space<vmem>>, vector<1x3x128xbf16>
    %646 = vector.shape_cast %645 : vector<1x3x128xbf16> to vector<3x128xbf16>
    %647 = vector.extract_strided_slice %644 {offsets = [0, 0], sizes = [12, 1], strides = [1, 1]} : vector<12x3xbf16> to vector<12x1xbf16>
    %648 = arith.extf %647 : vector<12x1xbf16> to vector<12x1xf32>
    %649 = vector.extract_strided_slice %646 {offsets = [0, 0], sizes = [1, 128], strides = [1, 1]} : vector<3x128xbf16> to vector<1x128xbf16>
    %650 = arith.extf %649 : vector<1x128xbf16> to vector<1x128xf32>
    %651 = vector.broadcast %648 : vector<12x1xf32> to vector<12x128xf32>
    %652 = vector.broadcast %650 : vector<1x128xf32> to vector<12x128xf32>
    %653 = arith.mulf %651, %652 : vector<12x128xf32>
    %654 = vector.extract_strided_slice %644 {offsets = [0, 1], sizes = [12, 1], strides = [1, 1]} : vector<12x3xbf16> to vector<12x1xbf16>
    %655 = arith.extf %654 : vector<12x1xbf16> to vector<12x1xf32>
    %656 = vector.extract_strided_slice %646 {offsets = [1, 0], sizes = [1, 128], strides = [1, 1]} : vector<3x128xbf16> to vector<1x128xbf16>
    %657 = arith.extf %656 : vector<1x128xbf16> to vector<1x128xf32>
    %658 = vector.broadcast %655 : vector<12x1xf32> to vector<12x128xf32>
    %659 = vector.broadcast %657 : vector<1x128xf32> to vector<12x128xf32>
    %660 = arith.mulf %658, %659 : vector<12x128xf32>
    %661 = arith.addf %653, %660 : vector<12x128xf32>
    %662 = vector.extract_strided_slice %644 {offsets = [0, 2], sizes = [12, 1], strides = [1, 1]} : vector<12x3xbf16> to vector<12x1xbf16>
    %663 = arith.extf %662 : vector<12x1xbf16> to vector<12x1xf32>
    %664 = vector.extract_strided_slice %646 {offsets = [2, 0], sizes = [1, 128], strides = [1, 1]} : vector<3x128xbf16> to vector<1x128xbf16>
    %665 = arith.extf %664 : vector<1x128xbf16> to vector<1x128xf32>
    %666 = vector.broadcast %663 : vector<12x1xf32> to vector<12x128xf32>
    %667 = vector.broadcast %665 : vector<1x128xf32> to vector<12x128xf32>
    %668 = arith.mulf %666, %667 : vector<12x128xf32>
    %669 = arith.addf %661, %668 : vector<12x128xf32>
    %c0_238 = arith.constant 0 : index
    %c0_239 = arith.constant 0 : index
    %670 = vector.load %arg9[%c0_238, %c0_239] : memref<12x128xf32, #tpu.memory_space<vmem>>, vector<12x128xf32>
    %671 = arith.addf %670, %669 : vector<12x128xf32>
    %c0_240 = arith.constant 0 : index
    %c0_241 = arith.constant 0 : index
    %672 = vector.load %arg9[%c0_240, %c0_241] : memref<12x128xf32, #tpu.memory_space<vmem>>, vector<12x128xf32>
    tpu.vector_store %arg9[%c0_240, %c0_241], %671 {strides = array<i32>} : memref<12x128xf32, #tpu.memory_space<vmem>>, vector<12x128xf32>,
    %c0_242 = arith.constant 0 : index
    %c3_243 = arith.constant 3 : index
    %c1_244 = arith.constant 1 : index
    %c0_245 = arith.constant 0 : index
    %673 = vector.load %arg3[%c0_242, %c3_243, %c1_244, %c0_245] : memref<1x5x14x3xbf16, #tpu.memory_space<vmem>>, vector<1x1x12x3xbf16>
    %674 = vector.shape_cast %673 : vector<1x1x12x3xbf16> to vector<12x3xbf16>
    %c4_246 = arith.constant 4 : index
    %c0_247 = arith.constant 0 : index
    %c0_248 = arith.constant 0 : index
    %675 = vector.load %arg6[%c4_246, %c0_247, %c0_248] : memref<9x3x128xbf16, #tpu.memory_space<vmem>>, vector<1x3x128xbf16>
    %676 = vector.shape_cast %675 : vector<1x3x128xbf16> to vector<3x128xbf16>
    %677 = vector.extract_strided_slice %674 {offsets = [0, 0], sizes = [12, 1], strides = [1, 1]} : vector<12x3xbf16> to vector<12x1xbf16>
    %678 = arith.extf %677 : vector<12x1xbf16> to vector<12x1xf32>
    %679 = vector.extract_strided_slice %676 {offsets = [0, 0], sizes = [1, 128], strides = [1, 1]} : vector<3x128xbf16> to vector<1x128xbf16>
    %680 = arith.extf %679 : vector<1x128xbf16> to vector<1x128xf32>
    %681 = vector.broadcast %678 : vector<12x1xf32> to vector<12x128xf32>
    %682 = vector.broadcast %680 : vector<1x128xf32> to vector<12x128xf32>
    %683 = arith.mulf %681, %682 : vector<12x128xf32>
    %684 = vector.extract_strided_slice %674 {offsets = [0, 1], sizes = [12, 1], strides = [1, 1]} : vector<12x3xbf16> to vector<12x1xbf16>
    %685 = arith.extf %684 : vector<12x1xbf16> to vector<12x1xf32>
    %686 = vector.extract_strided_slice %676 {offsets = [1, 0], sizes = [1, 128], strides = [1, 1]} : vector<3x128xbf16> to vector<1x128xbf16>
    %687 = arith.extf %686 : vector<1x128xbf16> to vector<1x128xf32>
    %688 = vector.broadcast %685 : vector<12x1xf32> to vector<12x128xf32>
    %689 = vector.broadcast %687 : vector<1x128xf32> to vector<12x128xf32>
    %690 = arith.mulf %688, %689 : vector<12x128xf32>
    %691 = arith.addf %683, %690 : vector<12x128xf32>
    %692 = vector.extract_strided_slice %674 {offsets = [0, 2], sizes = [12, 1], strides = [1, 1]} : vector<12x3xbf16> to vector<12x1xbf16>
    %693 = arith.extf %692 : vector<12x1xbf16> to vector<12x1xf32>
    %694 = vector.extract_strided_slice %676 {offsets = [2, 0], sizes = [1, 128], strides = [1, 1]} : vector<3x128xbf16> to vector<1x128xbf16>
    %695 = arith.extf %694 : vector<1x128xbf16> to vector<1x128xf32>
    %696 = vector.broadcast %693 : vector<12x1xf32> to vector<12x128xf32>
    %697 = vector.broadcast %695 : vector<1x128xf32> to vector<12x128xf32>
    %698 = arith.mulf %696, %697 : vector<12x128xf32>
    %699 = arith.addf %691, %698 : vector<12x128xf32>
    %c0_249 = arith.constant 0 : index
    %c0_250 = arith.constant 0 : index
    %700 = vector.load %arg9[%c0_249, %c0_250] : memref<12x128xf32, #tpu.memory_space<vmem>>, vector<12x128xf32>
    %701 = arith.addf %700, %699 : vector<12x128xf32>
    %c0_251 = arith.constant 0 : index
    %c0_252 = arith.constant 0 : index
    %702 = vector.load %arg9[%c0_251, %c0_252] : memref<12x128xf32, #tpu.memory_space<vmem>>, vector<12x128xf32>
    tpu.vector_store %arg9[%c0_251, %c0_252], %701 {strides = array<i32>} : memref<12x128xf32, #tpu.memory_space<vmem>>, vector<12x128xf32>,
    %c0_253 = arith.constant 0 : index
    %c3_254 = arith.constant 3 : index
    %c2_255 = arith.constant 2 : index
    %c0_256 = arith.constant 0 : index
    %703 = vector.load %arg3[%c0_253, %c3_254, %c2_255, %c0_256] : memref<1x5x14x3xbf16, #tpu.memory_space<vmem>>, vector<1x1x12x3xbf16>
    %704 = vector.shape_cast %703 : vector<1x1x12x3xbf16> to vector<12x3xbf16>
    %c5_257 = arith.constant 5 : index
    %c0_258 = arith.constant 0 : index
    %c0_259 = arith.constant 0 : index
    %705 = vector.load %arg6[%c5_257, %c0_258, %c0_259] : memref<9x3x128xbf16, #tpu.memory_space<vmem>>, vector<1x3x128xbf16>
    %706 = vector.shape_cast %705 : vector<1x3x128xbf16> to vector<3x128xbf16>
    %707 = vector.extract_strided_slice %704 {offsets = [0, 0], sizes = [12, 1], strides = [1, 1]} : vector<12x3xbf16> to vector<12x1xbf16>
    %708 = arith.extf %707 : vector<12x1xbf16> to vector<12x1xf32>
    %709 = vector.extract_strided_slice %706 {offsets = [0, 0], sizes = [1, 128], strides = [1, 1]} : vector<3x128xbf16> to vector<1x128xbf16>
    %710 = arith.extf %709 : vector<1x128xbf16> to vector<1x128xf32>
    %711 = vector.broadcast %708 : vector<12x1xf32> to vector<12x128xf32>
    %712 = vector.broadcast %710 : vector<1x128xf32> to vector<12x128xf32>
    %713 = arith.mulf %711, %712 : vector<12x128xf32>
    %714 = vector.extract_strided_slice %704 {offsets = [0, 1], sizes = [12, 1], strides = [1, 1]} : vector<12x3xbf16> to vector<12x1xbf16>
    %715 = arith.extf %714 : vector<12x1xbf16> to vector<12x1xf32>
    %716 = vector.extract_strided_slice %706 {offsets = [1, 0], sizes = [1, 128], strides = [1, 1]} : vector<3x128xbf16> to vector<1x128xbf16>
    %717 = arith.extf %716 : vector<1x128xbf16> to vector<1x128xf32>
    %718 = vector.broadcast %715 : vector<12x1xf32> to vector<12x128xf32>
    %719 = vector.broadcast %717 : vector<1x128xf32> to vector<12x128xf32>
    %720 = arith.mulf %718, %719 : vector<12x128xf32>
    %721 = arith.addf %713, %720 : vector<12x128xf32>
    %722 = vector.extract_strided_slice %704 {offsets = [0, 2], sizes = [12, 1], strides = [1, 1]} : vector<12x3xbf16> to vector<12x1xbf16>
    %723 = arith.extf %722 : vector<12x1xbf16> to vector<12x1xf32>
    %724 = vector.extract_strided_slice %706 {offsets = [2, 0], sizes = [1, 128], strides = [1, 1]} : vector<3x128xbf16> to vector<1x128xbf16>
    %725 = arith.extf %724 : vector<1x128xbf16> to vector<1x128xf32>
    %726 = vector.broadcast %723 : vector<12x1xf32> to vector<12x128xf32>
    %727 = vector.broadcast %725 : vector<1x128xf32> to vector<12x128xf32>
    %728 = arith.mulf %726, %727 : vector<12x128xf32>
    %729 = arith.addf %721, %728 : vector<12x128xf32>
    %c0_260 = arith.constant 0 : index
    %c0_261 = arith.constant 0 : index
    %730 = vector.load %arg9[%c0_260, %c0_261] : memref<12x128xf32, #tpu.memory_space<vmem>>, vector<12x128xf32>
    %731 = arith.addf %730, %729 : vector<12x128xf32>
    %c0_262 = arith.constant 0 : index
    %c0_263 = arith.constant 0 : index
    %732 = vector.load %arg9[%c0_262, %c0_263] : memref<12x128xf32, #tpu.memory_space<vmem>>, vector<12x128xf32>
    tpu.vector_store %arg9[%c0_262, %c0_263], %731 {strides = array<i32>} : memref<12x128xf32, #tpu.memory_space<vmem>>, vector<12x128xf32>,
    %c0_264 = arith.constant 0 : index
    %c4_265 = arith.constant 4 : index
    %c0_266 = arith.constant 0 : index
    %c0_267 = arith.constant 0 : index
    %733 = vector.load %arg3[%c0_264, %c4_265, %c0_266, %c0_267] : memref<1x5x14x3xbf16, #tpu.memory_space<vmem>>, vector<1x1x12x3xbf16>
    %734 = vector.shape_cast %733 : vector<1x1x12x3xbf16> to vector<12x3xbf16>
    %c6_268 = arith.constant 6 : index
    %c0_269 = arith.constant 0 : index
    %c0_270 = arith.constant 0 : index
    %735 = vector.load %arg6[%c6_268, %c0_269, %c0_270] : memref<9x3x128xbf16, #tpu.memory_space<vmem>>, vector<1x3x128xbf16>
    %736 = vector.shape_cast %735 : vector<1x3x128xbf16> to vector<3x128xbf16>
    %737 = vector.extract_strided_slice %734 {offsets = [0, 0], sizes = [12, 1], strides = [1, 1]} : vector<12x3xbf16> to vector<12x1xbf16>
    %738 = arith.extf %737 : vector<12x1xbf16> to vector<12x1xf32>
    %739 = vector.extract_strided_slice %736 {offsets = [0, 0], sizes = [1, 128], strides = [1, 1]} : vector<3x128xbf16> to vector<1x128xbf16>
    %740 = arith.extf %739 : vector<1x128xbf16> to vector<1x128xf32>
    %741 = vector.broadcast %738 : vector<12x1xf32> to vector<12x128xf32>
    %742 = vector.broadcast %740 : vector<1x128xf32> to vector<12x128xf32>
    %743 = arith.mulf %741, %742 : vector<12x128xf32>
    %744 = vector.extract_strided_slice %734 {offsets = [0, 1], sizes = [12, 1], strides = [1, 1]} : vector<12x3xbf16> to vector<12x1xbf16>
    %745 = arith.extf %744 : vector<12x1xbf16> to vector<12x1xf32>
    %746 = vector.extract_strided_slice %736 {offsets = [1, 0], sizes = [1, 128], strides = [1, 1]} : vector<3x128xbf16> to vector<1x128xbf16>
    %747 = arith.extf %746 : vector<1x128xbf16> to vector<1x128xf32>
    %748 = vector.broadcast %745 : vector<12x1xf32> to vector<12x128xf32>
    %749 = vector.broadcast %747 : vector<1x128xf32> to vector<12x128xf32>
    %750 = arith.mulf %748, %749 : vector<12x128xf32>
    %751 = arith.addf %743, %750 : vector<12x128xf32>
    %752 = vector.extract_strided_slice %734 {offsets = [0, 2], sizes = [12, 1], strides = [1, 1]} : vector<12x3xbf16> to vector<12x1xbf16>
    %753 = arith.extf %752 : vector<12x1xbf16> to vector<12x1xf32>
    %754 = vector.extract_strided_slice %736 {offsets = [2, 0], sizes = [1, 128], strides = [1, 1]} : vector<3x128xbf16> to vector<1x128xbf16>
    %755 = arith.extf %754 : vector<1x128xbf16> to vector<1x128xf32>
    %756 = vector.broadcast %753 : vector<12x1xf32> to vector<12x128xf32>
    %757 = vector.broadcast %755 : vector<1x128xf32> to vector<12x128xf32>
    %758 = arith.mulf %756, %757 : vector<12x128xf32>
    %759 = arith.addf %751, %758 : vector<12x128xf32>
    %c0_271 = arith.constant 0 : index
    %c0_272 = arith.constant 0 : index
    %760 = vector.load %arg9[%c0_271, %c0_272] : memref<12x128xf32, #tpu.memory_space<vmem>>, vector<12x128xf32>
    %761 = arith.addf %760, %759 : vector<12x128xf32>
    %c0_273 = arith.constant 0 : index
    %c0_274 = arith.constant 0 : index
    %762 = vector.load %arg9[%c0_273, %c0_274] : memref<12x128xf32, #tpu.memory_space<vmem>>, vector<12x128xf32>
    tpu.vector_store %arg9[%c0_273, %c0_274], %761 {strides = array<i32>} : memref<12x128xf32, #tpu.memory_space<vmem>>, vector<12x128xf32>,
    %c0_275 = arith.constant 0 : index
    %c4_276 = arith.constant 4 : index
    %c1_277 = arith.constant 1 : index
    %c0_278 = arith.constant 0 : index
    %763 = vector.load %arg3[%c0_275, %c4_276, %c1_277, %c0_278] : memref<1x5x14x3xbf16, #tpu.memory_space<vmem>>, vector<1x1x12x3xbf16>
    %764 = vector.shape_cast %763 : vector<1x1x12x3xbf16> to vector<12x3xbf16>
    %c7_279 = arith.constant 7 : index
    %c0_280 = arith.constant 0 : index
    %c0_281 = arith.constant 0 : index
    %765 = vector.load %arg6[%c7_279, %c0_280, %c0_281] : memref<9x3x128xbf16, #tpu.memory_space<vmem>>, vector<1x3x128xbf16>
    %766 = vector.shape_cast %765 : vector<1x3x128xbf16> to vector<3x128xbf16>
    %767 = vector.extract_strided_slice %764 {offsets = [0, 0], sizes = [12, 1], strides = [1, 1]} : vector<12x3xbf16> to vector<12x1xbf16>
    %768 = arith.extf %767 : vector<12x1xbf16> to vector<12x1xf32>
    %769 = vector.extract_strided_slice %766 {offsets = [0, 0], sizes = [1, 128], strides = [1, 1]} : vector<3x128xbf16> to vector<1x128xbf16>
    %770 = arith.extf %769 : vector<1x128xbf16> to vector<1x128xf32>
    %771 = vector.broadcast %768 : vector<12x1xf32> to vector<12x128xf32>
    %772 = vector.broadcast %770 : vector<1x128xf32> to vector<12x128xf32>
    %773 = arith.mulf %771, %772 : vector<12x128xf32>
    %774 = vector.extract_strided_slice %764 {offsets = [0, 1], sizes = [12, 1], strides = [1, 1]} : vector<12x3xbf16> to vector<12x1xbf16>
    %775 = arith.extf %774 : vector<12x1xbf16> to vector<12x1xf32>
    %776 = vector.extract_strided_slice %766 {offsets = [1, 0], sizes = [1, 128], strides = [1, 1]} : vector<3x128xbf16> to vector<1x128xbf16>
    %777 = arith.extf %776 : vector<1x128xbf16> to vector<1x128xf32>
    %778 = vector.broadcast %775 : vector<12x1xf32> to vector<12x128xf32>
    %779 = vector.broadcast %777 : vector<1x128xf32> to vector<12x128xf32>
    %780 = arith.mulf %778, %779 : vector<12x128xf32>
    %781 = arith.addf %773, %780 : vector<12x128xf32>
    %782 = vector.extract_strided_slice %764 {offsets = [0, 2], sizes = [12, 1], strides = [1, 1]} : vector<12x3xbf16> to vector<12x1xbf16>
    %783 = arith.extf %782 : vector<12x1xbf16> to vector<12x1xf32>
    %784 = vector.extract_strided_slice %766 {offsets = [2, 0], sizes = [1, 128], strides = [1, 1]} : vector<3x128xbf16> to vector<1x128xbf16>
    %785 = arith.extf %784 : vector<1x128xbf16> to vector<1x128xf32>
    %786 = vector.broadcast %783 : vector<12x1xf32> to vector<12x128xf32>
    %787 = vector.broadcast %785 : vector<1x128xf32> to vector<12x128xf32>
    %788 = arith.mulf %786, %787 : vector<12x128xf32>
    %789 = arith.addf %781, %788 : vector<12x128xf32>
    %c0_282 = arith.constant 0 : index
    %c0_283 = arith.constant 0 : index
    %790 = vector.load %arg9[%c0_282, %c0_283] : memref<12x128xf32, #tpu.memory_space<vmem>>, vector<12x128xf32>
    %791 = arith.addf %790, %789 : vector<12x128xf32>
    %c0_284 = arith.constant 0 : index
    %c0_285 = arith.constant 0 : index
    %792 = vector.load %arg9[%c0_284, %c0_285] : memref<12x128xf32, #tpu.memory_space<vmem>>, vector<12x128xf32>
    tpu.vector_store %arg9[%c0_284, %c0_285], %791 {strides = array<i32>} : memref<12x128xf32, #tpu.memory_space<vmem>>, vector<12x128xf32>,
    %c0_286 = arith.constant 0 : index
    %c4_287 = arith.constant 4 : index
    %c2_288 = arith.constant 2 : index
    %c0_289 = arith.constant 0 : index
    %793 = vector.load %arg3[%c0_286, %c4_287, %c2_288, %c0_289] : memref<1x5x14x3xbf16, #tpu.memory_space<vmem>>, vector<1x1x12x3xbf16>
    %794 = vector.shape_cast %793 : vector<1x1x12x3xbf16> to vector<12x3xbf16>
    %c8_290 = arith.constant 8 : index
    %c0_291 = arith.constant 0 : index
    %c0_292 = arith.constant 0 : index
    %795 = vector.load %arg6[%c8_290, %c0_291, %c0_292] : memref<9x3x128xbf16, #tpu.memory_space<vmem>>, vector<1x3x128xbf16>
    %796 = vector.shape_cast %795 : vector<1x3x128xbf16> to vector<3x128xbf16>
    %797 = vector.extract_strided_slice %794 {offsets = [0, 0], sizes = [12, 1], strides = [1, 1]} : vector<12x3xbf16> to vector<12x1xbf16>
    %798 = arith.extf %797 : vector<12x1xbf16> to vector<12x1xf32>
    %799 = vector.extract_strided_slice %796 {offsets = [0, 0], sizes = [1, 128], strides = [1, 1]} : vector<3x128xbf16> to vector<1x128xbf16>
    %800 = arith.extf %799 : vector<1x128xbf16> to vector<1x128xf32>
    %801 = vector.broadcast %798 : vector<12x1xf32> to vector<12x128xf32>
    %802 = vector.broadcast %800 : vector<1x128xf32> to vector<12x128xf32>
    %803 = arith.mulf %801, %802 : vector<12x128xf32>
    %804 = vector.extract_strided_slice %794 {offsets = [0, 1], sizes = [12, 1], strides = [1, 1]} : vector<12x3xbf16> to vector<12x1xbf16>
    %805 = arith.extf %804 : vector<12x1xbf16> to vector<12x1xf32>
    %806 = vector.extract_strided_slice %796 {offsets = [1, 0], sizes = [1, 128], strides = [1, 1]} : vector<3x128xbf16> to vector<1x128xbf16>
    %807 = arith.extf %806 : vector<1x128xbf16> to vector<1x128xf32>
    %808 = vector.broadcast %805 : vector<12x1xf32> to vector<12x128xf32>
    %809 = vector.broadcast %807 : vector<1x128xf32> to vector<12x128xf32>
    %810 = arith.mulf %808, %809 : vector<12x128xf32>
    %811 = arith.addf %803, %810 : vector<12x128xf32>
    %812 = vector.extract_strided_slice %794 {offsets = [0, 2], sizes = [12, 1], strides = [1, 1]} : vector<12x3xbf16> to vector<12x1xbf16>
    %813 = arith.extf %812 : vector<12x1xbf16> to vector<12x1xf32>
    %814 = vector.extract_strided_slice %796 {offsets = [2, 0], sizes = [1, 128], strides = [1, 1]} : vector<3x128xbf16> to vector<1x128xbf16>
    %815 = arith.extf %814 : vector<1x128xbf16> to vector<1x128xf32>
    %816 = vector.broadcast %813 : vector<12x1xf32> to vector<12x128xf32>
    %817 = vector.broadcast %815 : vector<1x128xf32> to vector<12x128xf32>
    %818 = arith.mulf %816, %817 : vector<12x128xf32>
    %819 = arith.addf %811, %818 : vector<12x128xf32>
    %c0_293 = arith.constant 0 : index
    %c0_294 = arith.constant 0 : index
    %820 = vector.load %arg9[%c0_293, %c0_294] : memref<12x128xf32, #tpu.memory_space<vmem>>, vector<12x128xf32>
    %821 = arith.addf %820, %819 : vector<12x128xf32>
    %c0_295 = arith.constant 0 : index
    %c0_296 = arith.constant 0 : index
    %822 = vector.load %arg9[%c0_295, %c0_296] : memref<12x128xf32, #tpu.memory_space<vmem>>, vector<12x128xf32>
    tpu.vector_store %arg9[%c0_295, %c0_296], %821 {strides = array<i32>} : memref<12x128xf32, #tpu.memory_space<vmem>>, vector<12x128xf32>,
    %c0_297 = arith.constant 0 : index
    %c0_298 = arith.constant 0 : index
    %823 = vector.load %arg9[%c0_297, %c0_298] : memref<12x128xf32, #tpu.memory_space<vmem>>, vector<12x128xf32>
    %824 = vector.broadcast %0 : vector<1x128xf32> to vector<12x128xf32>
    %825 = arith.addf %823, %824 : vector<12x128xf32>
    %cst_299 = arith.constant 0.000000e+00 : f32
    %826 = vector.broadcast %cst_299 : f32 to vector<12x128xf32>
    %827 = arith.maximumf %825, %826 : vector<12x128xf32>
    %828 = arith.truncf %827 : vector<12x128xf32> to vector<12x128xbf16>
    %c0_300 = arith.constant 0 : index
    %c2_301 = arith.constant 2 : index
    %c0_302 = arith.constant 0 : index
    %c0_303 = arith.constant 0 : index
    %829 = vector.load %arg8[%c0_300, %c2_301, %c0_302, %c0_303] : memref<1x5x12x128xbf16, #tpu.memory_space<vmem>>, vector<1x1x12x128xbf16>
    %830 = vector.shape_cast %829 : vector<1x1x12x128xbf16> to vector<12x128xbf16>
    %831 = vector.shape_cast %828 : vector<12x128xbf16> to vector<1x1x12x128xbf16>
    tpu.vector_store %arg8[%c0_300, %c2_301, %c0_302, %c0_303], %831 {strides = array<i32>} : memref<1x5x12x128xbf16, #tpu.memory_space<vmem>>, vector<1x1x12x128xbf16>,
    %c0_304 = arith.constant 0 : index
    %c3_305 = arith.constant 3 : index
    %c0_306 = arith.constant 0 : index
    %c0_307 = arith.constant 0 : index
    %832 = vector.load %arg3[%c0_304, %c3_305, %c0_306, %c0_307] : memref<1x5x14x3xbf16, #tpu.memory_space<vmem>>, vector<1x1x12x3xbf16>
    %833 = vector.shape_cast %832 : vector<1x1x12x3xbf16> to vector<12x3xbf16>
    %c0_308 = arith.constant 0 : index
    %c0_309 = arith.constant 0 : index
    %c0_310 = arith.constant 0 : index
    %834 = vector.load %arg6[%c0_308, %c0_309, %c0_310] : memref<9x3x128xbf16, #tpu.memory_space<vmem>>, vector<1x3x128xbf16>
    %835 = vector.shape_cast %834 : vector<1x3x128xbf16> to vector<3x128xbf16>
    %836 = vector.extract_strided_slice %833 {offsets = [0, 0], sizes = [12, 1], strides = [1, 1]} : vector<12x3xbf16> to vector<12x1xbf16>
    %837 = arith.extf %836 : vector<12x1xbf16> to vector<12x1xf32>
    %838 = vector.extract_strided_slice %835 {offsets = [0, 0], sizes = [1, 128], strides = [1, 1]} : vector<3x128xbf16> to vector<1x128xbf16>
    %839 = arith.extf %838 : vector<1x128xbf16> to vector<1x128xf32>
    %840 = vector.broadcast %837 : vector<12x1xf32> to vector<12x128xf32>
    %841 = vector.broadcast %839 : vector<1x128xf32> to vector<12x128xf32>
    %842 = arith.mulf %840, %841 : vector<12x128xf32>
    %843 = vector.extract_strided_slice %833 {offsets = [0, 1], sizes = [12, 1], strides = [1, 1]} : vector<12x3xbf16> to vector<12x1xbf16>
    %844 = arith.extf %843 : vector<12x1xbf16> to vector<12x1xf32>
    %845 = vector.extract_strided_slice %835 {offsets = [1, 0], sizes = [1, 128], strides = [1, 1]} : vector<3x128xbf16> to vector<1x128xbf16>
    %846 = arith.extf %845 : vector<1x128xbf16> to vector<1x128xf32>
    %847 = vector.broadcast %844 : vector<12x1xf32> to vector<12x128xf32>
    %848 = vector.broadcast %846 : vector<1x128xf32> to vector<12x128xf32>
    %849 = arith.mulf %847, %848 : vector<12x128xf32>
    %850 = arith.addf %842, %849 : vector<12x128xf32>
    %851 = vector.extract_strided_slice %833 {offsets = [0, 2], sizes = [12, 1], strides = [1, 1]} : vector<12x3xbf16> to vector<12x1xbf16>
    %852 = arith.extf %851 : vector<12x1xbf16> to vector<12x1xf32>
    %853 = vector.extract_strided_slice %835 {offsets = [2, 0], sizes = [1, 128], strides = [1, 1]} : vector<3x128xbf16> to vector<1x128xbf16>
    %854 = arith.extf %853 : vector<1x128xbf16> to vector<1x128xf32>
    %855 = vector.broadcast %852 : vector<12x1xf32> to vector<12x128xf32>
    %856 = vector.broadcast %854 : vector<1x128xf32> to vector<12x128xf32>
    %857 = arith.mulf %855, %856 : vector<12x128xf32>
    %858 = arith.addf %850, %857 : vector<12x128xf32>
    %c0_311 = arith.constant 0 : index
    %c0_312 = arith.constant 0 : index
    %859 = vector.load %arg9[%c0_311, %c0_312] : memref<12x128xf32, #tpu.memory_space<vmem>>, vector<12x128xf32>
    tpu.vector_store %arg9[%c0_311, %c0_312], %858 {strides = array<i32>} : memref<12x128xf32, #tpu.memory_space<vmem>>, vector<12x128xf32>,
    %c0_313 = arith.constant 0 : index
    %c3_314 = arith.constant 3 : index
    %c1_315 = arith.constant 1 : index
    %c0_316 = arith.constant 0 : index
    %860 = vector.load %arg3[%c0_313, %c3_314, %c1_315, %c0_316] : memref<1x5x14x3xbf16, #tpu.memory_space<vmem>>, vector<1x1x12x3xbf16>
    %861 = vector.shape_cast %860 : vector<1x1x12x3xbf16> to vector<12x3xbf16>
    %c1_317 = arith.constant 1 : index
    %c0_318 = arith.constant 0 : index
    %c0_319 = arith.constant 0 : index
    %862 = vector.load %arg6[%c1_317, %c0_318, %c0_319] : memref<9x3x128xbf16, #tpu.memory_space<vmem>>, vector<1x3x128xbf16>
    %863 = vector.shape_cast %862 : vector<1x3x128xbf16> to vector<3x128xbf16>
    %864 = vector.extract_strided_slice %861 {offsets = [0, 0], sizes = [12, 1], strides = [1, 1]} : vector<12x3xbf16> to vector<12x1xbf16>
    %865 = arith.extf %864 : vector<12x1xbf16> to vector<12x1xf32>
    %866 = vector.extract_strided_slice %863 {offsets = [0, 0], sizes = [1, 128], strides = [1, 1]} : vector<3x128xbf16> to vector<1x128xbf16>
    %867 = arith.extf %866 : vector<1x128xbf16> to vector<1x128xf32>
    %868 = vector.broadcast %865 : vector<12x1xf32> to vector<12x128xf32>
    %869 = vector.broadcast %867 : vector<1x128xf32> to vector<12x128xf32>
    %870 = arith.mulf %868, %869 : vector<12x128xf32>
    %871 = vector.extract_strided_slice %861 {offsets = [0, 1], sizes = [12, 1], strides = [1, 1]} : vector<12x3xbf16> to vector<12x1xbf16>
    %872 = arith.extf %871 : vector<12x1xbf16> to vector<12x1xf32>
    %873 = vector.extract_strided_slice %863 {offsets = [1, 0], sizes = [1, 128], strides = [1, 1]} : vector<3x128xbf16> to vector<1x128xbf16>
    %874 = arith.extf %873 : vector<1x128xbf16> to vector<1x128xf32>
    %875 = vector.broadcast %872 : vector<12x1xf32> to vector<12x128xf32>
    %876 = vector.broadcast %874 : vector<1x128xf32> to vector<12x128xf32>
    %877 = arith.mulf %875, %876 : vector<12x128xf32>
    %878 = arith.addf %870, %877 : vector<12x128xf32>
    %879 = vector.extract_strided_slice %861 {offsets = [0, 2], sizes = [12, 1], strides = [1, 1]} : vector<12x3xbf16> to vector<12x1xbf16>
    %880 = arith.extf %879 : vector<12x1xbf16> to vector<12x1xf32>
    %881 = vector.extract_strided_slice %863 {offsets = [2, 0], sizes = [1, 128], strides = [1, 1]} : vector<3x128xbf16> to vector<1x128xbf16>
    %882 = arith.extf %881 : vector<1x128xbf16> to vector<1x128xf32>
    %883 = vector.broadcast %880 : vector<12x1xf32> to vector<12x128xf32>
    %884 = vector.broadcast %882 : vector<1x128xf32> to vector<12x128xf32>
    %885 = arith.mulf %883, %884 : vector<12x128xf32>
    %886 = arith.addf %878, %885 : vector<12x128xf32>
    %c0_320 = arith.constant 0 : index
    %c0_321 = arith.constant 0 : index
    %887 = vector.load %arg9[%c0_320, %c0_321] : memref<12x128xf32, #tpu.memory_space<vmem>>, vector<12x128xf32>
    %888 = arith.addf %887, %886 : vector<12x128xf32>
    %c0_322 = arith.constant 0 : index
    %c0_323 = arith.constant 0 : index
    %889 = vector.load %arg9[%c0_322, %c0_323] : memref<12x128xf32, #tpu.memory_space<vmem>>, vector<12x128xf32>
    tpu.vector_store %arg9[%c0_322, %c0_323], %888 {strides = array<i32>} : memref<12x128xf32, #tpu.memory_space<vmem>>, vector<12x128xf32>,
    %c0_324 = arith.constant 0 : index
    %c3_325 = arith.constant 3 : index
    %c2_326 = arith.constant 2 : index
    %c0_327 = arith.constant 0 : index
    %890 = vector.load %arg3[%c0_324, %c3_325, %c2_326, %c0_327] : memref<1x5x14x3xbf16, #tpu.memory_space<vmem>>, vector<1x1x12x3xbf16>
    %891 = vector.shape_cast %890 : vector<1x1x12x3xbf16> to vector<12x3xbf16>
    %c2_328 = arith.constant 2 : index
    %c0_329 = arith.constant 0 : index
    %c0_330 = arith.constant 0 : index
    %892 = vector.load %arg6[%c2_328, %c0_329, %c0_330] : memref<9x3x128xbf16, #tpu.memory_space<vmem>>, vector<1x3x128xbf16>
    %893 = vector.shape_cast %892 : vector<1x3x128xbf16> to vector<3x128xbf16>
    %894 = vector.extract_strided_slice %891 {offsets = [0, 0], sizes = [12, 1], strides = [1, 1]} : vector<12x3xbf16> to vector<12x1xbf16>
    %895 = arith.extf %894 : vector<12x1xbf16> to vector<12x1xf32>
    %896 = vector.extract_strided_slice %893 {offsets = [0, 0], sizes = [1, 128], strides = [1, 1]} : vector<3x128xbf16> to vector<1x128xbf16>
    %897 = arith.extf %896 : vector<1x128xbf16> to vector<1x128xf32>
    %898 = vector.broadcast %895 : vector<12x1xf32> to vector<12x128xf32>
    %899 = vector.broadcast %897 : vector<1x128xf32> to vector<12x128xf32>
    %900 = arith.mulf %898, %899 : vector<12x128xf32>
    %901 = vector.extract_strided_slice %891 {offsets = [0, 1], sizes = [12, 1], strides = [1, 1]} : vector<12x3xbf16> to vector<12x1xbf16>
    %902 = arith.extf %901 : vector<12x1xbf16> to vector<12x1xf32>
    %903 = vector.extract_strided_slice %893 {offsets = [1, 0], sizes = [1, 128], strides = [1, 1]} : vector<3x128xbf16> to vector<1x128xbf16>
    %904 = arith.extf %903 : vector<1x128xbf16> to vector<1x128xf32>
    %905 = vector.broadcast %902 : vector<12x1xf32> to vector<12x128xf32>
    %906 = vector.broadcast %904 : vector<1x128xf32> to vector<12x128xf32>
    %907 = arith.mulf %905, %906 : vector<12x128xf32>
    %908 = arith.addf %900, %907 : vector<12x128xf32>
    %909 = vector.extract_strided_slice %891 {offsets = [0, 2], sizes = [12, 1], strides = [1, 1]} : vector<12x3xbf16> to vector<12x1xbf16>
    %910 = arith.extf %909 : vector<12x1xbf16> to vector<12x1xf32>
    %911 = vector.extract_strided_slice %893 {offsets = [2, 0], sizes = [1, 128], strides = [1, 1]} : vector<3x128xbf16> to vector<1x128xbf16>
    %912 = arith.extf %911 : vector<1x128xbf16> to vector<1x128xf32>
    %913 = vector.broadcast %910 : vector<12x1xf32> to vector<12x128xf32>
    %914 = vector.broadcast %912 : vector<1x128xf32> to vector<12x128xf32>
    %915 = arith.mulf %913, %914 : vector<12x128xf32>
    %916 = arith.addf %908, %915 : vector<12x128xf32>
    %c0_331 = arith.constant 0 : index
    %c0_332 = arith.constant 0 : index
    %917 = vector.load %arg9[%c0_331, %c0_332] : memref<12x128xf32, #tpu.memory_space<vmem>>, vector<12x128xf32>
    %918 = arith.addf %917, %916 : vector<12x128xf32>
    %c0_333 = arith.constant 0 : index
    %c0_334 = arith.constant 0 : index
    %919 = vector.load %arg9[%c0_333, %c0_334] : memref<12x128xf32, #tpu.memory_space<vmem>>, vector<12x128xf32>
    tpu.vector_store %arg9[%c0_333, %c0_334], %918 {strides = array<i32>} : memref<12x128xf32, #tpu.memory_space<vmem>>, vector<12x128xf32>,
    %c0_335 = arith.constant 0 : index
    %c4_336 = arith.constant 4 : index
    %c0_337 = arith.constant 0 : index
    %c0_338 = arith.constant 0 : index
    %920 = vector.load %arg3[%c0_335, %c4_336, %c0_337, %c0_338] : memref<1x5x14x3xbf16, #tpu.memory_space<vmem>>, vector<1x1x12x3xbf16>
    %921 = vector.shape_cast %920 : vector<1x1x12x3xbf16> to vector<12x3xbf16>
    %c3_339 = arith.constant 3 : index
    %c0_340 = arith.constant 0 : index
    %c0_341 = arith.constant 0 : index
    %922 = vector.load %arg6[%c3_339, %c0_340, %c0_341] : memref<9x3x128xbf16, #tpu.memory_space<vmem>>, vector<1x3x128xbf16>
    %923 = vector.shape_cast %922 : vector<1x3x128xbf16> to vector<3x128xbf16>
    %924 = vector.extract_strided_slice %921 {offsets = [0, 0], sizes = [12, 1], strides = [1, 1]} : vector<12x3xbf16> to vector<12x1xbf16>
    %925 = arith.extf %924 : vector<12x1xbf16> to vector<12x1xf32>
    %926 = vector.extract_strided_slice %923 {offsets = [0, 0], sizes = [1, 128], strides = [1, 1]} : vector<3x128xbf16> to vector<1x128xbf16>
    %927 = arith.extf %926 : vector<1x128xbf16> to vector<1x128xf32>
    %928 = vector.broadcast %925 : vector<12x1xf32> to vector<12x128xf32>
    %929 = vector.broadcast %927 : vector<1x128xf32> to vector<12x128xf32>
    %930 = arith.mulf %928, %929 : vector<12x128xf32>
    %931 = vector.extract_strided_slice %921 {offsets = [0, 1], sizes = [12, 1], strides = [1, 1]} : vector<12x3xbf16> to vector<12x1xbf16>
    %932 = arith.extf %931 : vector<12x1xbf16> to vector<12x1xf32>
    %933 = vector.extract_strided_slice %923 {offsets = [1, 0], sizes = [1, 128], strides = [1, 1]} : vector<3x128xbf16> to vector<1x128xbf16>
    %934 = arith.extf %933 : vector<1x128xbf16> to vector<1x128xf32>
    %935 = vector.broadcast %932 : vector<12x1xf32> to vector<12x128xf32>
    %936 = vector.broadcast %934 : vector<1x128xf32> to vector<12x128xf32>
    %937 = arith.mulf %935, %936 : vector<12x128xf32>
    %938 = arith.addf %930, %937 : vector<12x128xf32>
    %939 = vector.extract_strided_slice %921 {offsets = [0, 2], sizes = [12, 1], strides = [1, 1]} : vector<12x3xbf16> to vector<12x1xbf16>
    %940 = arith.extf %939 : vector<12x1xbf16> to vector<12x1xf32>
    %941 = vector.extract_strided_slice %923 {offsets = [2, 0], sizes = [1, 128], strides = [1, 1]} : vector<3x128xbf16> to vector<1x128xbf16>
    %942 = arith.extf %941 : vector<1x128xbf16> to vector<1x128xf32>
    %943 = vector.broadcast %940 : vector<12x1xf32> to vector<12x128xf32>
    %944 = vector.broadcast %942 : vector<1x128xf32> to vector<12x128xf32>
    %945 = arith.mulf %943, %944 : vector<12x128xf32>
    %946 = arith.addf %938, %945 : vector<12x128xf32>
    %c0_342 = arith.constant 0 : index
    %c0_343 = arith.constant 0 : index
    %947 = vector.load %arg9[%c0_342, %c0_343] : memref<12x128xf32, #tpu.memory_space<vmem>>, vector<12x128xf32>
    %948 = arith.addf %947, %946 : vector<12x128xf32>
    %c0_344 = arith.constant 0 : index
    %c0_345 = arith.constant 0 : index
    %949 = vector.load %arg9[%c0_344, %c0_345] : memref<12x128xf32, #tpu.memory_space<vmem>>, vector<12x128xf32>
    tpu.vector_store %arg9[%c0_344, %c0_345], %948 {strides = array<i32>} : memref<12x128xf32, #tpu.memory_space<vmem>>, vector<12x128xf32>,
    %c0_346 = arith.constant 0 : index
    %c4_347 = arith.constant 4 : index
    %c1_348 = arith.constant 1 : index
    %c0_349 = arith.constant 0 : index
    %950 = vector.load %arg3[%c0_346, %c4_347, %c1_348, %c0_349] : memref<1x5x14x3xbf16, #tpu.memory_space<vmem>>, vector<1x1x12x3xbf16>
    %951 = vector.shape_cast %950 : vector<1x1x12x3xbf16> to vector<12x3xbf16>
    %c4_350 = arith.constant 4 : index
    %c0_351 = arith.constant 0 : index
    %c0_352 = arith.constant 0 : index
    %952 = vector.load %arg6[%c4_350, %c0_351, %c0_352] : memref<9x3x128xbf16, #tpu.memory_space<vmem>>, vector<1x3x128xbf16>
    %953 = vector.shape_cast %952 : vector<1x3x128xbf16> to vector<3x128xbf16>
    %954 = vector.extract_strided_slice %951 {offsets = [0, 0], sizes = [12, 1], strides = [1, 1]} : vector<12x3xbf16> to vector<12x1xbf16>
    %955 = arith.extf %954 : vector<12x1xbf16> to vector<12x1xf32>
    %956 = vector.extract_strided_slice %953 {offsets = [0, 0], sizes = [1, 128], strides = [1, 1]} : vector<3x128xbf16> to vector<1x128xbf16>
    %957 = arith.extf %956 : vector<1x128xbf16> to vector<1x128xf32>
    %958 = vector.broadcast %955 : vector<12x1xf32> to vector<12x128xf32>
    %959 = vector.broadcast %957 : vector<1x128xf32> to vector<12x128xf32>
    %960 = arith.mulf %958, %959 : vector<12x128xf32>
    %961 = vector.extract_strided_slice %951 {offsets = [0, 1], sizes = [12, 1], strides = [1, 1]} : vector<12x3xbf16> to vector<12x1xbf16>
    %962 = arith.extf %961 : vector<12x1xbf16> to vector<12x1xf32>
    %963 = vector.extract_strided_slice %953 {offsets = [1, 0], sizes = [1, 128], strides = [1, 1]} : vector<3x128xbf16> to vector<1x128xbf16>
    %964 = arith.extf %963 : vector<1x128xbf16> to vector<1x128xf32>
    %965 = vector.broadcast %962 : vector<12x1xf32> to vector<12x128xf32>
    %966 = vector.broadcast %964 : vector<1x128xf32> to vector<12x128xf32>
    %967 = arith.mulf %965, %966 : vector<12x128xf32>
    %968 = arith.addf %960, %967 : vector<12x128xf32>
    %969 = vector.extract_strided_slice %951 {offsets = [0, 2], sizes = [12, 1], strides = [1, 1]} : vector<12x3xbf16> to vector<12x1xbf16>
    %970 = arith.extf %969 : vector<12x1xbf16> to vector<12x1xf32>
    %971 = vector.extract_strided_slice %953 {offsets = [2, 0], sizes = [1, 128], strides = [1, 1]} : vector<3x128xbf16> to vector<1x128xbf16>
    %972 = arith.extf %971 : vector<1x128xbf16> to vector<1x128xf32>
    %973 = vector.broadcast %970 : vector<12x1xf32> to vector<12x128xf32>
    %974 = vector.broadcast %972 : vector<1x128xf32> to vector<12x128xf32>
    %975 = arith.mulf %973, %974 : vector<12x128xf32>
    %976 = arith.addf %968, %975 : vector<12x128xf32>
    %c0_353 = arith.constant 0 : index
    %c0_354 = arith.constant 0 : index
    %977 = vector.load %arg9[%c0_353, %c0_354] : memref<12x128xf32, #tpu.memory_space<vmem>>, vector<12x128xf32>
    %978 = arith.addf %977, %976 : vector<12x128xf32>
    %c0_355 = arith.constant 0 : index
    %c0_356 = arith.constant 0 : index
    %979 = vector.load %arg9[%c0_355, %c0_356] : memref<12x128xf32, #tpu.memory_space<vmem>>, vector<12x128xf32>
    tpu.vector_store %arg9[%c0_355, %c0_356], %978 {strides = array<i32>} : memref<12x128xf32, #tpu.memory_space<vmem>>, vector<12x128xf32>,
    %c0_357 = arith.constant 0 : index
    %c4_358 = arith.constant 4 : index
    %c2_359 = arith.constant 2 : index
    %c0_360 = arith.constant 0 : index
    %980 = vector.load %arg3[%c0_357, %c4_358, %c2_359, %c0_360] : memref<1x5x14x3xbf16, #tpu.memory_space<vmem>>, vector<1x1x12x3xbf16>
    %981 = vector.shape_cast %980 : vector<1x1x12x3xbf16> to vector<12x3xbf16>
    %c5_361 = arith.constant 5 : index
    %c0_362 = arith.constant 0 : index
    %c0_363 = arith.constant 0 : index
    %982 = vector.load %arg6[%c5_361, %c0_362, %c0_363] : memref<9x3x128xbf16, #tpu.memory_space<vmem>>, vector<1x3x128xbf16>
    %983 = vector.shape_cast %982 : vector<1x3x128xbf16> to vector<3x128xbf16>
    %984 = vector.extract_strided_slice %981 {offsets = [0, 0], sizes = [12, 1], strides = [1, 1]} : vector<12x3xbf16> to vector<12x1xbf16>
    %985 = arith.extf %984 : vector<12x1xbf16> to vector<12x1xf32>
    %986 = vector.extract_strided_slice %983 {offsets = [0, 0], sizes = [1, 128], strides = [1, 1]} : vector<3x128xbf16> to vector<1x128xbf16>
    %987 = arith.extf %986 : vector<1x128xbf16> to vector<1x128xf32>
    %988 = vector.broadcast %985 : vector<12x1xf32> to vector<12x128xf32>
    %989 = vector.broadcast %987 : vector<1x128xf32> to vector<12x128xf32>
    %990 = arith.mulf %988, %989 : vector<12x128xf32>
    %991 = vector.extract_strided_slice %981 {offsets = [0, 1], sizes = [12, 1], strides = [1, 1]} : vector<12x3xbf16> to vector<12x1xbf16>
    %992 = arith.extf %991 : vector<12x1xbf16> to vector<12x1xf32>
    %993 = vector.extract_strided_slice %983 {offsets = [1, 0], sizes = [1, 128], strides = [1, 1]} : vector<3x128xbf16> to vector<1x128xbf16>
    %994 = arith.extf %993 : vector<1x128xbf16> to vector<1x128xf32>
    %995 = vector.broadcast %992 : vector<12x1xf32> to vector<12x128xf32>
    %996 = vector.broadcast %994 : vector<1x128xf32> to vector<12x128xf32>
    %997 = arith.mulf %995, %996 : vector<12x128xf32>
    %998 = arith.addf %990, %997 : vector<12x128xf32>
    %999 = vector.extract_strided_slice %981 {offsets = [0, 2], sizes = [12, 1], strides = [1, 1]} : vector<12x3xbf16> to vector<12x1xbf16>
    %1000 = arith.extf %999 : vector<12x1xbf16> to vector<12x1xf32>
    %1001 = vector.extract_strided_slice %983 {offsets = [2, 0], sizes = [1, 128], strides = [1, 1]} : vector<3x128xbf16> to vector<1x128xbf16>
    %1002 = arith.extf %1001 : vector<1x128xbf16> to vector<1x128xf32>
    %1003 = vector.broadcast %1000 : vector<12x1xf32> to vector<12x128xf32>
    %1004 = vector.broadcast %1002 : vector<1x128xf32> to vector<12x128xf32>
    %1005 = arith.mulf %1003, %1004 : vector<12x128xf32>
    %1006 = arith.addf %998, %1005 : vector<12x128xf32>
    %c0_364 = arith.constant 0 : index
    %c0_365 = arith.constant 0 : index
    %1007 = vector.load %arg9[%c0_364, %c0_365] : memref<12x128xf32, #tpu.memory_space<vmem>>, vector<12x128xf32>
    %1008 = arith.addf %1007, %1006 : vector<12x128xf32>
    %c0_366 = arith.constant 0 : index
    %c0_367 = arith.constant 0 : index
    %1009 = vector.load %arg9[%c0_366, %c0_367] : memref<12x128xf32, #tpu.memory_space<vmem>>, vector<12x128xf32>
    tpu.vector_store %arg9[%c0_366, %c0_367], %1008 {strides = array<i32>} : memref<12x128xf32, #tpu.memory_space<vmem>>, vector<12x128xf32>,
    %c0_368 = arith.constant 0 : index
    %c0_369 = arith.constant 0 : index
    %c0_370 = arith.constant 0 : index
    %c0_371 = arith.constant 0 : index
    %1010 = vector.load %arg4[%c0_368, %c0_369, %c0_370, %c0_371] : memref<1x1x14x3xbf16, #tpu.memory_space<vmem>>, vector<1x1x12x3xbf16>
    %1011 = vector.shape_cast %1010 : vector<1x1x12x3xbf16> to vector<12x3xbf16>
    %c6_372 = arith.constant 6 : index
    %c0_373 = arith.constant 0 : index
    %c0_374 = arith.constant 0 : index
    %1012 = vector.load %arg6[%c6_372, %c0_373, %c0_374] : memref<9x3x128xbf16, #tpu.memory_space<vmem>>, vector<1x3x128xbf16>
    %1013 = vector.shape_cast %1012 : vector<1x3x128xbf16> to vector<3x128xbf16>
    %1014 = vector.extract_strided_slice %1011 {offsets = [0, 0], sizes = [12, 1], strides = [1, 1]} : vector<12x3xbf16> to vector<12x1xbf16>
    %1015 = arith.extf %1014 : vector<12x1xbf16> to vector<12x1xf32>
    %1016 = vector.extract_strided_slice %1013 {offsets = [0, 0], sizes = [1, 128], strides = [1, 1]} : vector<3x128xbf16> to vector<1x128xbf16>
    %1017 = arith.extf %1016 : vector<1x128xbf16> to vector<1x128xf32>
    %1018 = vector.broadcast %1015 : vector<12x1xf32> to vector<12x128xf32>
    %1019 = vector.broadcast %1017 : vector<1x128xf32> to vector<12x128xf32>
    %1020 = arith.mulf %1018, %1019 : vector<12x128xf32>
    %1021 = vector.extract_strided_slice %1011 {offsets = [0, 1], sizes = [12, 1], strides = [1, 1]} : vector<12x3xbf16> to vector<12x1xbf16>
    %1022 = arith.extf %1021 : vector<12x1xbf16> to vector<12x1xf32>
    %1023 = vector.extract_strided_slice %1013 {offsets = [1, 0], sizes = [1, 128], strides = [1, 1]} : vector<3x128xbf16> to vector<1x128xbf16>
    %1024 = arith.extf %1023 : vector<1x128xbf16> to vector<1x128xf32>
    %1025 = vector.broadcast %1022 : vector<12x1xf32> to vector<12x128xf32>
    %1026 = vector.broadcast %1024 : vector<1x128xf32> to vector<12x128xf32>
    %1027 = arith.mulf %1025, %1026 : vector<12x128xf32>
    %1028 = arith.addf %1020, %1027 : vector<12x128xf32>
    %1029 = vector.extract_strided_slice %1011 {offsets = [0, 2], sizes = [12, 1], strides = [1, 1]} : vector<12x3xbf16> to vector<12x1xbf16>
    %1030 = arith.extf %1029 : vector<12x1xbf16> to vector<12x1xf32>
    %1031 = vector.extract_strided_slice %1013 {offsets = [2, 0], sizes = [1, 128], strides = [1, 1]} : vector<3x128xbf16> to vector<1x128xbf16>
    %1032 = arith.extf %1031 : vector<1x128xbf16> to vector<1x128xf32>
    %1033 = vector.broadcast %1030 : vector<12x1xf32> to vector<12x128xf32>
    %1034 = vector.broadcast %1032 : vector<1x128xf32> to vector<12x128xf32>
    %1035 = arith.mulf %1033, %1034 : vector<12x128xf32>
    %1036 = arith.addf %1028, %1035 : vector<12x128xf32>
    %c0_375 = arith.constant 0 : index
    %c0_376 = arith.constant 0 : index
    %1037 = vector.load %arg9[%c0_375, %c0_376] : memref<12x128xf32, #tpu.memory_space<vmem>>, vector<12x128xf32>
    %1038 = arith.addf %1037, %1036 : vector<12x128xf32>
    %c0_377 = arith.constant 0 : index
    %c0_378 = arith.constant 0 : index
    %1039 = vector.load %arg9[%c0_377, %c0_378] : memref<12x128xf32, #tpu.memory_space<vmem>>, vector<12x128xf32>
    tpu.vector_store %arg9[%c0_377, %c0_378], %1038 {strides = array<i32>} : memref<12x128xf32, #tpu.memory_space<vmem>>, vector<12x128xf32>,
    %c0_379 = arith.constant 0 : index
    %c0_380 = arith.constant 0 : index
    %c1_381 = arith.constant 1 : index
    %c0_382 = arith.constant 0 : index
    %1040 = vector.load %arg4[%c0_379, %c0_380, %c1_381, %c0_382] : memref<1x1x14x3xbf16, #tpu.memory_space<vmem>>, vector<1x1x12x3xbf16>
    %1041 = vector.shape_cast %1040 : vector<1x1x12x3xbf16> to vector<12x3xbf16>
    %c7_383 = arith.constant 7 : index
    %c0_384 = arith.constant 0 : index
    %c0_385 = arith.constant 0 : index
    %1042 = vector.load %arg6[%c7_383, %c0_384, %c0_385] : memref<9x3x128xbf16, #tpu.memory_space<vmem>>, vector<1x3x128xbf16>
    %1043 = vector.shape_cast %1042 : vector<1x3x128xbf16> to vector<3x128xbf16>
    %1044 = vector.extract_strided_slice %1041 {offsets = [0, 0], sizes = [12, 1], strides = [1, 1]} : vector<12x3xbf16> to vector<12x1xbf16>
    %1045 = arith.extf %1044 : vector<12x1xbf16> to vector<12x1xf32>
    %1046 = vector.extract_strided_slice %1043 {offsets = [0, 0], sizes = [1, 128], strides = [1, 1]} : vector<3x128xbf16> to vector<1x128xbf16>
    %1047 = arith.extf %1046 : vector<1x128xbf16> to vector<1x128xf32>
    %1048 = vector.broadcast %1045 : vector<12x1xf32> to vector<12x128xf32>
    %1049 = vector.broadcast %1047 : vector<1x128xf32> to vector<12x128xf32>
    %1050 = arith.mulf %1048, %1049 : vector<12x128xf32>
    %1051 = vector.extract_strided_slice %1041 {offsets = [0, 1], sizes = [12, 1], strides = [1, 1]} : vector<12x3xbf16> to vector<12x1xbf16>
    %1052 = arith.extf %1051 : vector<12x1xbf16> to vector<12x1xf32>
    %1053 = vector.extract_strided_slice %1043 {offsets = [1, 0], sizes = [1, 128], strides = [1, 1]} : vector<3x128xbf16> to vector<1x128xbf16>
    %1054 = arith.extf %1053 : vector<1x128xbf16> to vector<1x128xf32>
    %1055 = vector.broadcast %1052 : vector<12x1xf32> to vector<12x128xf32>
    %1056 = vector.broadcast %1054 : vector<1x128xf32> to vector<12x128xf32>
    %1057 = arith.mulf %1055, %1056 : vector<12x128xf32>
    %1058 = arith.addf %1050, %1057 : vector<12x128xf32>
    %1059 = vector.extract_strided_slice %1041 {offsets = [0, 2], sizes = [12, 1], strides = [1, 1]} : vector<12x3xbf16> to vector<12x1xbf16>
    %1060 = arith.extf %1059 : vector<12x1xbf16> to vector<12x1xf32>
    %1061 = vector.extract_strided_slice %1043 {offsets = [2, 0], sizes = [1, 128], strides = [1, 1]} : vector<3x128xbf16> to vector<1x128xbf16>
    %1062 = arith.extf %1061 : vector<1x128xbf16> to vector<1x128xf32>
    %1063 = vector.broadcast %1060 : vector<12x1xf32> to vector<12x128xf32>
    %1064 = vector.broadcast %1062 : vector<1x128xf32> to vector<12x128xf32>
    %1065 = arith.mulf %1063, %1064 : vector<12x128xf32>
    %1066 = arith.addf %1058, %1065 : vector<12x128xf32>
    %c0_386 = arith.constant 0 : index
    %c0_387 = arith.constant 0 : index
    %1067 = vector.load %arg9[%c0_386, %c0_387] : memref<12x128xf32, #tpu.memory_space<vmem>>, vector<12x128xf32>
    %1068 = arith.addf %1067, %1066 : vector<12x128xf32>
    %c0_388 = arith.constant 0 : index
    %c0_389 = arith.constant 0 : index
    %1069 = vector.load %arg9[%c0_388, %c0_389] : memref<12x128xf32, #tpu.memory_space<vmem>>, vector<12x128xf32>
    tpu.vector_store %arg9[%c0_388, %c0_389], %1068 {strides = array<i32>} : memref<12x128xf32, #tpu.memory_space<vmem>>, vector<12x128xf32>,
    %c0_390 = arith.constant 0 : index
    %c0_391 = arith.constant 0 : index
    %c2_392 = arith.constant 2 : index
    %c0_393 = arith.constant 0 : index
    %1070 = vector.load %arg4[%c0_390, %c0_391, %c2_392, %c0_393] : memref<1x1x14x3xbf16, #tpu.memory_space<vmem>>, vector<1x1x12x3xbf16>
    %1071 = vector.shape_cast %1070 : vector<1x1x12x3xbf16> to vector<12x3xbf16>
    %c8_394 = arith.constant 8 : index
    %c0_395 = arith.constant 0 : index
    %c0_396 = arith.constant 0 : index
    %1072 = vector.load %arg6[%c8_394, %c0_395, %c0_396] : memref<9x3x128xbf16, #tpu.memory_space<vmem>>, vector<1x3x128xbf16>
    %1073 = vector.shape_cast %1072 : vector<1x3x128xbf16> to vector<3x128xbf16>
    %1074 = vector.extract_strided_slice %1071 {offsets = [0, 0], sizes = [12, 1], strides = [1, 1]} : vector<12x3xbf16> to vector<12x1xbf16>
    %1075 = arith.extf %1074 : vector<12x1xbf16> to vector<12x1xf32>
    %1076 = vector.extract_strided_slice %1073 {offsets = [0, 0], sizes = [1, 128], strides = [1, 1]} : vector<3x128xbf16> to vector<1x128xbf16>
    %1077 = arith.extf %1076 : vector<1x128xbf16> to vector<1x128xf32>
    %1078 = vector.broadcast %1075 : vector<12x1xf32> to vector<12x128xf32>
    %1079 = vector.broadcast %1077 : vector<1x128xf32> to vector<12x128xf32>
    %1080 = arith.mulf %1078, %1079 : vector<12x128xf32>
    %1081 = vector.extract_strided_slice %1071 {offsets = [0, 1], sizes = [12, 1], strides = [1, 1]} : vector<12x3xbf16> to vector<12x1xbf16>
    %1082 = arith.extf %1081 : vector<12x1xbf16> to vector<12x1xf32>
    %1083 = vector.extract_strided_slice %1073 {offsets = [1, 0], sizes = [1, 128], strides = [1, 1]} : vector<3x128xbf16> to vector<1x128xbf16>
    %1084 = arith.extf %1083 : vector<1x128xbf16> to vector<1x128xf32>
    %1085 = vector.broadcast %1082 : vector<12x1xf32> to vector<12x128xf32>
    %1086 = vector.broadcast %1084 : vector<1x128xf32> to vector<12x128xf32>
    %1087 = arith.mulf %1085, %1086 : vector<12x128xf32>
    %1088 = arith.addf %1080, %1087 : vector<12x128xf32>
    %1089 = vector.extract_strided_slice %1071 {offsets = [0, 2], sizes = [12, 1], strides = [1, 1]} : vector<12x3xbf16> to vector<12x1xbf16>
    %1090 = arith.extf %1089 : vector<12x1xbf16> to vector<12x1xf32>
    %1091 = vector.extract_strided_slice %1073 {offsets = [2, 0], sizes = [1, 128], strides = [1, 1]} : vector<3x128xbf16> to vector<1x128xbf16>
    %1092 = arith.extf %1091 : vector<1x128xbf16> to vector<1x128xf32>
    %1093 = vector.broadcast %1090 : vector<12x1xf32> to vector<12x128xf32>
    %1094 = vector.broadcast %1092 : vector<1x128xf32> to vector<12x128xf32>
    %1095 = arith.mulf %1093, %1094 : vector<12x128xf32>
    %1096 = arith.addf %1088, %1095 : vector<12x128xf32>
    %c0_397 = arith.constant 0 : index
    %c0_398 = arith.constant 0 : index
    %1097 = vector.load %arg9[%c0_397, %c0_398] : memref<12x128xf32, #tpu.memory_space<vmem>>, vector<12x128xf32>
    %1098 = arith.addf %1097, %1096 : vector<12x128xf32>
    %c0_399 = arith.constant 0 : index
    %c0_400 = arith.constant 0 : index
    %1099 = vector.load %arg9[%c0_399, %c0_400] : memref<12x128xf32, #tpu.memory_space<vmem>>, vector<12x128xf32>
    tpu.vector_store %arg9[%c0_399, %c0_400], %1098 {strides = array<i32>} : memref<12x128xf32, #tpu.memory_space<vmem>>, vector<12x128xf32>,
    %c0_401 = arith.constant 0 : index
    %c0_402 = arith.constant 0 : index
    %1100 = vector.load %arg9[%c0_401, %c0_402] : memref<12x128xf32, #tpu.memory_space<vmem>>, vector<12x128xf32>
    %1101 = vector.broadcast %0 : vector<1x128xf32> to vector<12x128xf32>
    %1102 = arith.addf %1100, %1101 : vector<12x128xf32>
    %cst_403 = arith.constant 0.000000e+00 : f32
    %1103 = vector.broadcast %cst_403 : f32 to vector<12x128xf32>
    %1104 = arith.maximumf %1102, %1103 : vector<12x128xf32>
    %1105 = arith.truncf %1104 : vector<12x128xf32> to vector<12x128xbf16>
    %c0_404 = arith.constant 0 : index
    %c3_405 = arith.constant 3 : index
    %c0_406 = arith.constant 0 : index
    %c0_407 = arith.constant 0 : index
    %1106 = vector.load %arg8[%c0_404, %c3_405, %c0_406, %c0_407] : memref<1x5x12x128xbf16, #tpu.memory_space<vmem>>, vector<1x1x12x128xbf16>
    %1107 = vector.shape_cast %1106 : vector<1x1x12x128xbf16> to vector<12x128xbf16>
    %1108 = vector.shape_cast %1105 : vector<12x128xbf16> to vector<1x1x12x128xbf16>
    tpu.vector_store %arg8[%c0_404, %c3_405, %c0_406, %c0_407], %1108 {strides = array<i32>} : memref<1x5x12x128xbf16, #tpu.memory_space<vmem>>, vector<1x1x12x128xbf16>,
    %c0_408 = arith.constant 0 : index
    %c4_409 = arith.constant 4 : index
    %c0_410 = arith.constant 0 : index
    %c0_411 = arith.constant 0 : index
    %1109 = vector.load %arg3[%c0_408, %c4_409, %c0_410, %c0_411] : memref<1x5x14x3xbf16, #tpu.memory_space<vmem>>, vector<1x1x12x3xbf16>
    %1110 = vector.shape_cast %1109 : vector<1x1x12x3xbf16> to vector<12x3xbf16>
    %c0_412 = arith.constant 0 : index
    %c0_413 = arith.constant 0 : index
    %c0_414 = arith.constant 0 : index
    %1111 = vector.load %arg6[%c0_412, %c0_413, %c0_414] : memref<9x3x128xbf16, #tpu.memory_space<vmem>>, vector<1x3x128xbf16>
    %1112 = vector.shape_cast %1111 : vector<1x3x128xbf16> to vector<3x128xbf16>
    %1113 = vector.extract_strided_slice %1110 {offsets = [0, 0], sizes = [12, 1], strides = [1, 1]} : vector<12x3xbf16> to vector<12x1xbf16>
    %1114 = arith.extf %1113 : vector<12x1xbf16> to vector<12x1xf32>
    %1115 = vector.extract_strided_slice %1112 {offsets = [0, 0], sizes = [1, 128], strides = [1, 1]} : vector<3x128xbf16> to vector<1x128xbf16>
    %1116 = arith.extf %1115 : vector<1x128xbf16> to vector<1x128xf32>
    %1117 = vector.broadcast %1114 : vector<12x1xf32> to vector<12x128xf32>
    %1118 = vector.broadcast %1116 : vector<1x128xf32> to vector<12x128xf32>
    %1119 = arith.mulf %1117, %1118 : vector<12x128xf32>
    %1120 = vector.extract_strided_slice %1110 {offsets = [0, 1], sizes = [12, 1], strides = [1, 1]} : vector<12x3xbf16> to vector<12x1xbf16>
    %1121 = arith.extf %1120 : vector<12x1xbf16> to vector<12x1xf32>
    %1122 = vector.extract_strided_slice %1112 {offsets = [1, 0], sizes = [1, 128], strides = [1, 1]} : vector<3x128xbf16> to vector<1x128xbf16>
    %1123 = arith.extf %1122 : vector<1x128xbf16> to vector<1x128xf32>
    %1124 = vector.broadcast %1121 : vector<12x1xf32> to vector<12x128xf32>
    %1125 = vector.broadcast %1123 : vector<1x128xf32> to vector<12x128xf32>
    %1126 = arith.mulf %1124, %1125 : vector<12x128xf32>
    %1127 = arith.addf %1119, %1126 : vector<12x128xf32>
    %1128 = vector.extract_strided_slice %1110 {offsets = [0, 2], sizes = [12, 1], strides = [1, 1]} : vector<12x3xbf16> to vector<12x1xbf16>
    %1129 = arith.extf %1128 : vector<12x1xbf16> to vector<12x1xf32>
    %1130 = vector.extract_strided_slice %1112 {offsets = [2, 0], sizes = [1, 128], strides = [1, 1]} : vector<3x128xbf16> to vector<1x128xbf16>
    %1131 = arith.extf %1130 : vector<1x128xbf16> to vector<1x128xf32>
    %1132 = vector.broadcast %1129 : vector<12x1xf32> to vector<12x128xf32>
    %1133 = vector.broadcast %1131 : vector<1x128xf32> to vector<12x128xf32>
    %1134 = arith.mulf %1132, %1133 : vector<12x128xf32>
    %1135 = arith.addf %1127, %1134 : vector<12x128xf32>
    %c0_415 = arith.constant 0 : index
    %c0_416 = arith.constant 0 : index
    %1136 = vector.load %arg9[%c0_415, %c0_416] : memref<12x128xf32, #tpu.memory_space<vmem>>, vector<12x128xf32>
    tpu.vector_store %arg9[%c0_415, %c0_416], %1135 {strides = array<i32>} : memref<12x128xf32, #tpu.memory_space<vmem>>, vector<12x128xf32>,
    %c0_417 = arith.constant 0 : index
    %c4_418 = arith.constant 4 : index
    %c1_419 = arith.constant 1 : index
    %c0_420 = arith.constant 0 : index
    %1137 = vector.load %arg3[%c0_417, %c4_418, %c1_419, %c0_420] : memref<1x5x14x3xbf16, #tpu.memory_space<vmem>>, vector<1x1x12x3xbf16>
    %1138 = vector.shape_cast %1137 : vector<1x1x12x3xbf16> to vector<12x3xbf16>
    %c1_421 = arith.constant 1 : index
    %c0_422 = arith.constant 0 : index
    %c0_423 = arith.constant 0 : index
    %1139 = vector.load %arg6[%c1_421, %c0_422, %c0_423] : memref<9x3x128xbf16, #tpu.memory_space<vmem>>, vector<1x3x128xbf16>
    %1140 = vector.shape_cast %1139 : vector<1x3x128xbf16> to vector<3x128xbf16>
    %1141 = vector.extract_strided_slice %1138 {offsets = [0, 0], sizes = [12, 1], strides = [1, 1]} : vector<12x3xbf16> to vector<12x1xbf16>
    %1142 = arith.extf %1141 : vector<12x1xbf16> to vector<12x1xf32>
    %1143 = vector.extract_strided_slice %1140 {offsets = [0, 0], sizes = [1, 128], strides = [1, 1]} : vector<3x128xbf16> to vector<1x128xbf16>
    %1144 = arith.extf %1143 : vector<1x128xbf16> to vector<1x128xf32>
    %1145 = vector.broadcast %1142 : vector<12x1xf32> to vector<12x128xf32>
    %1146 = vector.broadcast %1144 : vector<1x128xf32> to vector<12x128xf32>
    %1147 = arith.mulf %1145, %1146 : vector<12x128xf32>
    %1148 = vector.extract_strided_slice %1138 {offsets = [0, 1], sizes = [12, 1], strides = [1, 1]} : vector<12x3xbf16> to vector<12x1xbf16>
    %1149 = arith.extf %1148 : vector<12x1xbf16> to vector<12x1xf32>
    %1150 = vector.extract_strided_slice %1140 {offsets = [1, 0], sizes = [1, 128], strides = [1, 1]} : vector<3x128xbf16> to vector<1x128xbf16>
    %1151 = arith.extf %1150 : vector<1x128xbf16> to vector<1x128xf32>
    %1152 = vector.broadcast %1149 : vector<12x1xf32> to vector<12x128xf32>
    %1153 = vector.broadcast %1151 : vector<1x128xf32> to vector<12x128xf32>
    %1154 = arith.mulf %1152, %1153 : vector<12x128xf32>
    %1155 = arith.addf %1147, %1154 : vector<12x128xf32>
    %1156 = vector.extract_strided_slice %1138 {offsets = [0, 2], sizes = [12, 1], strides = [1, 1]} : vector<12x3xbf16> to vector<12x1xbf16>
    %1157 = arith.extf %1156 : vector<12x1xbf16> to vector<12x1xf32>
    %1158 = vector.extract_strided_slice %1140 {offsets = [2, 0], sizes = [1, 128], strides = [1, 1]} : vector<3x128xbf16> to vector<1x128xbf16>
    %1159 = arith.extf %1158 : vector<1x128xbf16> to vector<1x128xf32>
    %1160 = vector.broadcast %1157 : vector<12x1xf32> to vector<12x128xf32>
    %1161 = vector.broadcast %1159 : vector<1x128xf32> to vector<12x128xf32>
    %1162 = arith.mulf %1160, %1161 : vector<12x128xf32>
    %1163 = arith.addf %1155, %1162 : vector<12x128xf32>
    %c0_424 = arith.constant 0 : index
    %c0_425 = arith.constant 0 : index
    %1164 = vector.load %arg9[%c0_424, %c0_425] : memref<12x128xf32, #tpu.memory_space<vmem>>, vector<12x128xf32>
    %1165 = arith.addf %1164, %1163 : vector<12x128xf32>
    %c0_426 = arith.constant 0 : index
    %c0_427 = arith.constant 0 : index
    %1166 = vector.load %arg9[%c0_426, %c0_427] : memref<12x128xf32, #tpu.memory_space<vmem>>, vector<12x128xf32>
    tpu.vector_store %arg9[%c0_426, %c0_427], %1165 {strides = array<i32>} : memref<12x128xf32, #tpu.memory_space<vmem>>, vector<12x128xf32>,
    %c0_428 = arith.constant 0 : index
    %c4_429 = arith.constant 4 : index
    %c2_430 = arith.constant 2 : index
    %c0_431 = arith.constant 0 : index
    %1167 = vector.load %arg3[%c0_428, %c4_429, %c2_430, %c0_431] : memref<1x5x14x3xbf16, #tpu.memory_space<vmem>>, vector<1x1x12x3xbf16>
    %1168 = vector.shape_cast %1167 : vector<1x1x12x3xbf16> to vector<12x3xbf16>
    %c2_432 = arith.constant 2 : index
    %c0_433 = arith.constant 0 : index
    %c0_434 = arith.constant 0 : index
    %1169 = vector.load %arg6[%c2_432, %c0_433, %c0_434] : memref<9x3x128xbf16, #tpu.memory_space<vmem>>, vector<1x3x128xbf16>
    %1170 = vector.shape_cast %1169 : vector<1x3x128xbf16> to vector<3x128xbf16>
    %1171 = vector.extract_strided_slice %1168 {offsets = [0, 0], sizes = [12, 1], strides = [1, 1]} : vector<12x3xbf16> to vector<12x1xbf16>
    %1172 = arith.extf %1171 : vector<12x1xbf16> to vector<12x1xf32>
    %1173 = vector.extract_strided_slice %1170 {offsets = [0, 0], sizes = [1, 128], strides = [1, 1]} : vector<3x128xbf16> to vector<1x128xbf16>
    %1174 = arith.extf %1173 : vector<1x128xbf16> to vector<1x128xf32>
    %1175 = vector.broadcast %1172 : vector<12x1xf32> to vector<12x128xf32>
    %1176 = vector.broadcast %1174 : vector<1x128xf32> to vector<12x128xf32>
    %1177 = arith.mulf %1175, %1176 : vector<12x128xf32>
    %1178 = vector.extract_strided_slice %1168 {offsets = [0, 1], sizes = [12, 1], strides = [1, 1]} : vector<12x3xbf16> to vector<12x1xbf16>
    %1179 = arith.extf %1178 : vector<12x1xbf16> to vector<12x1xf32>
    %1180 = vector.extract_strided_slice %1170 {offsets = [1, 0], sizes = [1, 128], strides = [1, 1]} : vector<3x128xbf16> to vector<1x128xbf16>
    %1181 = arith.extf %1180 : vector<1x128xbf16> to vector<1x128xf32>
    %1182 = vector.broadcast %1179 : vector<12x1xf32> to vector<12x128xf32>
    %1183 = vector.broadcast %1181 : vector<1x128xf32> to vector<12x128xf32>
    %1184 = arith.mulf %1182, %1183 : vector<12x128xf32>
    %1185 = arith.addf %1177, %1184 : vector<12x128xf32>
    %1186 = vector.extract_strided_slice %1168 {offsets = [0, 2], sizes = [12, 1], strides = [1, 1]} : vector<12x3xbf16> to vector<12x1xbf16>
    %1187 = arith.extf %1186 : vector<12x1xbf16> to vector<12x1xf32>
    %1188 = vector.extract_strided_slice %1170 {offsets = [2, 0], sizes = [1, 128], strides = [1, 1]} : vector<3x128xbf16> to vector<1x128xbf16>
    %1189 = arith.extf %1188 : vector<1x128xbf16> to vector<1x128xf32>
    %1190 = vector.broadcast %1187 : vector<12x1xf32> to vector<12x128xf32>
    %1191 = vector.broadcast %1189 : vector<1x128xf32> to vector<12x128xf32>
    %1192 = arith.mulf %1190, %1191 : vector<12x128xf32>
    %1193 = arith.addf %1185, %1192 : vector<12x128xf32>
    %c0_435 = arith.constant 0 : index
    %c0_436 = arith.constant 0 : index
    %1194 = vector.load %arg9[%c0_435, %c0_436] : memref<12x128xf32, #tpu.memory_space<vmem>>, vector<12x128xf32>
    %1195 = arith.addf %1194, %1193 : vector<12x128xf32>
    %c0_437 = arith.constant 0 : index
    %c0_438 = arith.constant 0 : index
    %1196 = vector.load %arg9[%c0_437, %c0_438] : memref<12x128xf32, #tpu.memory_space<vmem>>, vector<12x128xf32>
    tpu.vector_store %arg9[%c0_437, %c0_438], %1195 {strides = array<i32>} : memref<12x128xf32, #tpu.memory_space<vmem>>, vector<12x128xf32>,
    %c0_439 = arith.constant 0 : index
    %c0_440 = arith.constant 0 : index
    %c0_441 = arith.constant 0 : index
    %c0_442 = arith.constant 0 : index
    %1197 = vector.load %arg4[%c0_439, %c0_440, %c0_441, %c0_442] : memref<1x1x14x3xbf16, #tpu.memory_space<vmem>>, vector<1x1x12x3xbf16>
    %1198 = vector.shape_cast %1197 : vector<1x1x12x3xbf16> to vector<12x3xbf16>
    %c3_443 = arith.constant 3 : index
    %c0_444 = arith.constant 0 : index
    %c0_445 = arith.constant 0 : index
    %1199 = vector.load %arg6[%c3_443, %c0_444, %c0_445] : memref<9x3x128xbf16, #tpu.memory_space<vmem>>, vector<1x3x128xbf16>
    %1200 = vector.shape_cast %1199 : vector<1x3x128xbf16> to vector<3x128xbf16>
    %1201 = vector.extract_strided_slice %1198 {offsets = [0, 0], sizes = [12, 1], strides = [1, 1]} : vector<12x3xbf16> to vector<12x1xbf16>
    %1202 = arith.extf %1201 : vector<12x1xbf16> to vector<12x1xf32>
    %1203 = vector.extract_strided_slice %1200 {offsets = [0, 0], sizes = [1, 128], strides = [1, 1]} : vector<3x128xbf16> to vector<1x128xbf16>
    %1204 = arith.extf %1203 : vector<1x128xbf16> to vector<1x128xf32>
    %1205 = vector.broadcast %1202 : vector<12x1xf32> to vector<12x128xf32>
    %1206 = vector.broadcast %1204 : vector<1x128xf32> to vector<12x128xf32>
    %1207 = arith.mulf %1205, %1206 : vector<12x128xf32>
    %1208 = vector.extract_strided_slice %1198 {offsets = [0, 1], sizes = [12, 1], strides = [1, 1]} : vector<12x3xbf16> to vector<12x1xbf16>
    %1209 = arith.extf %1208 : vector<12x1xbf16> to vector<12x1xf32>
    %1210 = vector.extract_strided_slice %1200 {offsets = [1, 0], sizes = [1, 128], strides = [1, 1]} : vector<3x128xbf16> to vector<1x128xbf16>
    %1211 = arith.extf %1210 : vector<1x128xbf16> to vector<1x128xf32>
    %1212 = vector.broadcast %1209 : vector<12x1xf32> to vector<12x128xf32>
    %1213 = vector.broadcast %1211 : vector<1x128xf32> to vector<12x128xf32>
    %1214 = arith.mulf %1212, %1213 : vector<12x128xf32>
    %1215 = arith.addf %1207, %1214 : vector<12x128xf32>
    %1216 = vector.extract_strided_slice %1198 {offsets = [0, 2], sizes = [12, 1], strides = [1, 1]} : vector<12x3xbf16> to vector<12x1xbf16>
    %1217 = arith.extf %1216 : vector<12x1xbf16> to vector<12x1xf32>
    %1218 = vector.extract_strided_slice %1200 {offsets = [2, 0], sizes = [1, 128], strides = [1, 1]} : vector<3x128xbf16> to vector<1x128xbf16>
    %1219 = arith.extf %1218 : vector<1x128xbf16> to vector<1x128xf32>
    %1220 = vector.broadcast %1217 : vector<12x1xf32> to vector<12x128xf32>
    %1221 = vector.broadcast %1219 : vector<1x128xf32> to vector<12x128xf32>
    %1222 = arith.mulf %1220, %1221 : vector<12x128xf32>
    %1223 = arith.addf %1215, %1222 : vector<12x128xf32>
    %c0_446 = arith.constant 0 : index
    %c0_447 = arith.constant 0 : index
    %1224 = vector.load %arg9[%c0_446, %c0_447] : memref<12x128xf32, #tpu.memory_space<vmem>>, vector<12x128xf32>
    %1225 = arith.addf %1224, %1223 : vector<12x128xf32>
    %c0_448 = arith.constant 0 : index
    %c0_449 = arith.constant 0 : index
    %1226 = vector.load %arg9[%c0_448, %c0_449] : memref<12x128xf32, #tpu.memory_space<vmem>>, vector<12x128xf32>
    tpu.vector_store %arg9[%c0_448, %c0_449], %1225 {strides = array<i32>} : memref<12x128xf32, #tpu.memory_space<vmem>>, vector<12x128xf32>,
    %c0_450 = arith.constant 0 : index
    %c0_451 = arith.constant 0 : index
    %c1_452 = arith.constant 1 : index
    %c0_453 = arith.constant 0 : index
    %1227 = vector.load %arg4[%c0_450, %c0_451, %c1_452, %c0_453] : memref<1x1x14x3xbf16, #tpu.memory_space<vmem>>, vector<1x1x12x3xbf16>
    %1228 = vector.shape_cast %1227 : vector<1x1x12x3xbf16> to vector<12x3xbf16>
    %c4_454 = arith.constant 4 : index
    %c0_455 = arith.constant 0 : index
    %c0_456 = arith.constant 0 : index
    %1229 = vector.load %arg6[%c4_454, %c0_455, %c0_456] : memref<9x3x128xbf16, #tpu.memory_space<vmem>>, vector<1x3x128xbf16>
    %1230 = vector.shape_cast %1229 : vector<1x3x128xbf16> to vector<3x128xbf16>
    %1231 = vector.extract_strided_slice %1228 {offsets = [0, 0], sizes = [12, 1], strides = [1, 1]} : vector<12x3xbf16> to vector<12x1xbf16>
    %1232 = arith.extf %1231 : vector<12x1xbf16> to vector<12x1xf32>
    %1233 = vector.extract_strided_slice %1230 {offsets = [0, 0], sizes = [1, 128], strides = [1, 1]} : vector<3x128xbf16> to vector<1x128xbf16>
    %1234 = arith.extf %1233 : vector<1x128xbf16> to vector<1x128xf32>
    %1235 = vector.broadcast %1232 : vector<12x1xf32> to vector<12x128xf32>
    %1236 = vector.broadcast %1234 : vector<1x128xf32> to vector<12x128xf32>
    %1237 = arith.mulf %1235, %1236 : vector<12x128xf32>
    %1238 = vector.extract_strided_slice %1228 {offsets = [0, 1], sizes = [12, 1], strides = [1, 1]} : vector<12x3xbf16> to vector<12x1xbf16>
    %1239 = arith.extf %1238 : vector<12x1xbf16> to vector<12x1xf32>
    %1240 = vector.extract_strided_slice %1230 {offsets = [1, 0], sizes = [1, 128], strides = [1, 1]} : vector<3x128xbf16> to vector<1x128xbf16>
    %1241 = arith.extf %1240 : vector<1x128xbf16> to vector<1x128xf32>
    %1242 = vector.broadcast %1239 : vector<12x1xf32> to vector<12x128xf32>
    %1243 = vector.broadcast %1241 : vector<1x128xf32> to vector<12x128xf32>
    %1244 = arith.mulf %1242, %1243 : vector<12x128xf32>
    %1245 = arith.addf %1237, %1244 : vector<12x128xf32>
    %1246 = vector.extract_strided_slice %1228 {offsets = [0, 2], sizes = [12, 1], strides = [1, 1]} : vector<12x3xbf16> to vector<12x1xbf16>
    %1247 = arith.extf %1246 : vector<12x1xbf16> to vector<12x1xf32>
    %1248 = vector.extract_strided_slice %1230 {offsets = [2, 0], sizes = [1, 128], strides = [1, 1]} : vector<3x128xbf16> to vector<1x128xbf16>
    %1249 = arith.extf %1248 : vector<1x128xbf16> to vector<1x128xf32>
    %1250 = vector.broadcast %1247 : vector<12x1xf32> to vector<12x128xf32>
    %1251 = vector.broadcast %1249 : vector<1x128xf32> to vector<12x128xf32>
    %1252 = arith.mulf %1250, %1251 : vector<12x128xf32>
    %1253 = arith.addf %1245, %1252 : vector<12x128xf32>
    %c0_457 = arith.constant 0 : index
    %c0_458 = arith.constant 0 : index
    %1254 = vector.load %arg9[%c0_457, %c0_458] : memref<12x128xf32, #tpu.memory_space<vmem>>, vector<12x128xf32>
    %1255 = arith.addf %1254, %1253 : vector<12x128xf32>
    %c0_459 = arith.constant 0 : index
    %c0_460 = arith.constant 0 : index
    %1256 = vector.load %arg9[%c0_459, %c0_460] : memref<12x128xf32, #tpu.memory_space<vmem>>, vector<12x128xf32>
    tpu.vector_store %arg9[%c0_459, %c0_460], %1255 {strides = array<i32>} : memref<12x128xf32, #tpu.memory_space<vmem>>, vector<12x128xf32>,
    %c0_461 = arith.constant 0 : index
    %c0_462 = arith.constant 0 : index
    %c2_463 = arith.constant 2 : index
    %c0_464 = arith.constant 0 : index
    %1257 = vector.load %arg4[%c0_461, %c0_462, %c2_463, %c0_464] : memref<1x1x14x3xbf16, #tpu.memory_space<vmem>>, vector<1x1x12x3xbf16>
    %1258 = vector.shape_cast %1257 : vector<1x1x12x3xbf16> to vector<12x3xbf16>
    %c5_465 = arith.constant 5 : index
    %c0_466 = arith.constant 0 : index
    %c0_467 = arith.constant 0 : index
    %1259 = vector.load %arg6[%c5_465, %c0_466, %c0_467] : memref<9x3x128xbf16, #tpu.memory_space<vmem>>, vector<1x3x128xbf16>
    %1260 = vector.shape_cast %1259 : vector<1x3x128xbf16> to vector<3x128xbf16>
    %1261 = vector.extract_strided_slice %1258 {offsets = [0, 0], sizes = [12, 1], strides = [1, 1]} : vector<12x3xbf16> to vector<12x1xbf16>
    %1262 = arith.extf %1261 : vector<12x1xbf16> to vector<12x1xf32>
    %1263 = vector.extract_strided_slice %1260 {offsets = [0, 0], sizes = [1, 128], strides = [1, 1]} : vector<3x128xbf16> to vector<1x128xbf16>
    %1264 = arith.extf %1263 : vector<1x128xbf16> to vector<1x128xf32>
    %1265 = vector.broadcast %1262 : vector<12x1xf32> to vector<12x128xf32>
    %1266 = vector.broadcast %1264 : vector<1x128xf32> to vector<12x128xf32>
    %1267 = arith.mulf %1265, %1266 : vector<12x128xf32>
    %1268 = vector.extract_strided_slice %1258 {offsets = [0, 1], sizes = [12, 1], strides = [1, 1]} : vector<12x3xbf16> to vector<12x1xbf16>
    %1269 = arith.extf %1268 : vector<12x1xbf16> to vector<12x1xf32>
    %1270 = vector.extract_strided_slice %1260 {offsets = [1, 0], sizes = [1, 128], strides = [1, 1]} : vector<3x128xbf16> to vector<1x128xbf16>
    %1271 = arith.extf %1270 : vector<1x128xbf16> to vector<1x128xf32>
    %1272 = vector.broadcast %1269 : vector<12x1xf32> to vector<12x128xf32>
    %1273 = vector.broadcast %1271 : vector<1x128xf32> to vector<12x128xf32>
    %1274 = arith.mulf %1272, %1273 : vector<12x128xf32>
    %1275 = arith.addf %1267, %1274 : vector<12x128xf32>
    %1276 = vector.extract_strided_slice %1258 {offsets = [0, 2], sizes = [12, 1], strides = [1, 1]} : vector<12x3xbf16> to vector<12x1xbf16>
    %1277 = arith.extf %1276 : vector<12x1xbf16> to vector<12x1xf32>
    %1278 = vector.extract_strided_slice %1260 {offsets = [2, 0], sizes = [1, 128], strides = [1, 1]} : vector<3x128xbf16> to vector<1x128xbf16>
    %1279 = arith.extf %1278 : vector<1x128xbf16> to vector<1x128xf32>
    %1280 = vector.broadcast %1277 : vector<12x1xf32> to vector<12x128xf32>
    %1281 = vector.broadcast %1279 : vector<1x128xf32> to vector<12x128xf32>
    %1282 = arith.mulf %1280, %1281 : vector<12x128xf32>
    %1283 = arith.addf %1275, %1282 : vector<12x128xf32>
    %c0_468 = arith.constant 0 : index
    %c0_469 = arith.constant 0 : index
    %1284 = vector.load %arg9[%c0_468, %c0_469] : memref<12x128xf32, #tpu.memory_space<vmem>>, vector<12x128xf32>
    %1285 = arith.addf %1284, %1283 : vector<12x128xf32>
    %c0_470 = arith.constant 0 : index
    %c0_471 = arith.constant 0 : index
    %1286 = vector.load %arg9[%c0_470, %c0_471] : memref<12x128xf32, #tpu.memory_space<vmem>>, vector<12x128xf32>
    tpu.vector_store %arg9[%c0_470, %c0_471], %1285 {strides = array<i32>} : memref<12x128xf32, #tpu.memory_space<vmem>>, vector<12x128xf32>,
    %c0_472 = arith.constant 0 : index
    %c0_473 = arith.constant 0 : index
    %c0_474 = arith.constant 0 : index
    %c0_475 = arith.constant 0 : index
    %1287 = vector.load %arg5[%c0_472, %c0_473, %c0_474, %c0_475] : memref<1x1x14x3xbf16, #tpu.memory_space<vmem>>, vector<1x1x12x3xbf16>
    %1288 = vector.shape_cast %1287 : vector<1x1x12x3xbf16> to vector<12x3xbf16>
    %c6_476 = arith.constant 6 : index
    %c0_477 = arith.constant 0 : index
    %c0_478 = arith.constant 0 : index
    %1289 = vector.load %arg6[%c6_476, %c0_477, %c0_478] : memref<9x3x128xbf16, #tpu.memory_space<vmem>>, vector<1x3x128xbf16>
    %1290 = vector.shape_cast %1289 : vector<1x3x128xbf16> to vector<3x128xbf16>
    %1291 = vector.extract_strided_slice %1288 {offsets = [0, 0], sizes = [12, 1], strides = [1, 1]} : vector<12x3xbf16> to vector<12x1xbf16>
    %1292 = arith.extf %1291 : vector<12x1xbf16> to vector<12x1xf32>
    %1293 = vector.extract_strided_slice %1290 {offsets = [0, 0], sizes = [1, 128], strides = [1, 1]} : vector<3x128xbf16> to vector<1x128xbf16>
    %1294 = arith.extf %1293 : vector<1x128xbf16> to vector<1x128xf32>
    %1295 = vector.broadcast %1292 : vector<12x1xf32> to vector<12x128xf32>
    %1296 = vector.broadcast %1294 : vector<1x128xf32> to vector<12x128xf32>
    %1297 = arith.mulf %1295, %1296 : vector<12x128xf32>
    %1298 = vector.extract_strided_slice %1288 {offsets = [0, 1], sizes = [12, 1], strides = [1, 1]} : vector<12x3xbf16> to vector<12x1xbf16>
    %1299 = arith.extf %1298 : vector<12x1xbf16> to vector<12x1xf32>
    %1300 = vector.extract_strided_slice %1290 {offsets = [1, 0], sizes = [1, 128], strides = [1, 1]} : vector<3x128xbf16> to vector<1x128xbf16>
    %1301 = arith.extf %1300 : vector<1x128xbf16> to vector<1x128xf32>
    %1302 = vector.broadcast %1299 : vector<12x1xf32> to vector<12x128xf32>
    %1303 = vector.broadcast %1301 : vector<1x128xf32> to vector<12x128xf32>
    %1304 = arith.mulf %1302, %1303 : vector<12x128xf32>
    %1305 = arith.addf %1297, %1304 : vector<12x128xf32>
    %1306 = vector.extract_strided_slice %1288 {offsets = [0, 2], sizes = [12, 1], strides = [1, 1]} : vector<12x3xbf16> to vector<12x1xbf16>
    %1307 = arith.extf %1306 : vector<12x1xbf16> to vector<12x1xf32>
    %1308 = vector.extract_strided_slice %1290 {offsets = [2, 0], sizes = [1, 128], strides = [1, 1]} : vector<3x128xbf16> to vector<1x128xbf16>
    %1309 = arith.extf %1308 : vector<1x128xbf16> to vector<1x128xf32>
    %1310 = vector.broadcast %1307 : vector<12x1xf32> to vector<12x128xf32>
    %1311 = vector.broadcast %1309 : vector<1x128xf32> to vector<12x128xf32>
    %1312 = arith.mulf %1310, %1311 : vector<12x128xf32>
    %1313 = arith.addf %1305, %1312 : vector<12x128xf32>
    %c0_479 = arith.constant 0 : index
    %c0_480 = arith.constant 0 : index
    %1314 = vector.load %arg9[%c0_479, %c0_480] : memref<12x128xf32, #tpu.memory_space<vmem>>, vector<12x128xf32>
    %1315 = arith.addf %1314, %1313 : vector<12x128xf32>
    %c0_481 = arith.constant 0 : index
    %c0_482 = arith.constant 0 : index
    %1316 = vector.load %arg9[%c0_481, %c0_482] : memref<12x128xf32, #tpu.memory_space<vmem>>, vector<12x128xf32>
    tpu.vector_store %arg9[%c0_481, %c0_482], %1315 {strides = array<i32>} : memref<12x128xf32, #tpu.memory_space<vmem>>, vector<12x128xf32>,
    %c0_483 = arith.constant 0 : index
    %c0_484 = arith.constant 0 : index
    %c1_485 = arith.constant 1 : index
    %c0_486 = arith.constant 0 : index
    %1317 = vector.load %arg5[%c0_483, %c0_484, %c1_485, %c0_486] : memref<1x1x14x3xbf16, #tpu.memory_space<vmem>>, vector<1x1x12x3xbf16>
    %1318 = vector.shape_cast %1317 : vector<1x1x12x3xbf16> to vector<12x3xbf16>
    %c7_487 = arith.constant 7 : index
    %c0_488 = arith.constant 0 : index
    %c0_489 = arith.constant 0 : index
    %1319 = vector.load %arg6[%c7_487, %c0_488, %c0_489] : memref<9x3x128xbf16, #tpu.memory_space<vmem>>, vector<1x3x128xbf16>
    %1320 = vector.shape_cast %1319 : vector<1x3x128xbf16> to vector<3x128xbf16>
    %1321 = vector.extract_strided_slice %1318 {offsets = [0, 0], sizes = [12, 1], strides = [1, 1]} : vector<12x3xbf16> to vector<12x1xbf16>
    %1322 = arith.extf %1321 : vector<12x1xbf16> to vector<12x1xf32>
    %1323 = vector.extract_strided_slice %1320 {offsets = [0, 0], sizes = [1, 128], strides = [1, 1]} : vector<3x128xbf16> to vector<1x128xbf16>
    %1324 = arith.extf %1323 : vector<1x128xbf16> to vector<1x128xf32>
    %1325 = vector.broadcast %1322 : vector<12x1xf32> to vector<12x128xf32>
    %1326 = vector.broadcast %1324 : vector<1x128xf32> to vector<12x128xf32>
    %1327 = arith.mulf %1325, %1326 : vector<12x128xf32>
    %1328 = vector.extract_strided_slice %1318 {offsets = [0, 1], sizes = [12, 1], strides = [1, 1]} : vector<12x3xbf16> to vector<12x1xbf16>
    %1329 = arith.extf %1328 : vector<12x1xbf16> to vector<12x1xf32>
    %1330 = vector.extract_strided_slice %1320 {offsets = [1, 0], sizes = [1, 128], strides = [1, 1]} : vector<3x128xbf16> to vector<1x128xbf16>
    %1331 = arith.extf %1330 : vector<1x128xbf16> to vector<1x128xf32>
    %1332 = vector.broadcast %1329 : vector<12x1xf32> to vector<12x128xf32>
    %1333 = vector.broadcast %1331 : vector<1x128xf32> to vector<12x128xf32>
    %1334 = arith.mulf %1332, %1333 : vector<12x128xf32>
    %1335 = arith.addf %1327, %1334 : vector<12x128xf32>
    %1336 = vector.extract_strided_slice %1318 {offsets = [0, 2], sizes = [12, 1], strides = [1, 1]} : vector<12x3xbf16> to vector<12x1xbf16>
    %1337 = arith.extf %1336 : vector<12x1xbf16> to vector<12x1xf32>
    %1338 = vector.extract_strided_slice %1320 {offsets = [2, 0], sizes = [1, 128], strides = [1, 1]} : vector<3x128xbf16> to vector<1x128xbf16>
    %1339 = arith.extf %1338 : vector<1x128xbf16> to vector<1x128xf32>
    %1340 = vector.broadcast %1337 : vector<12x1xf32> to vector<12x128xf32>
    %1341 = vector.broadcast %1339 : vector<1x128xf32> to vector<12x128xf32>
    %1342 = arith.mulf %1340, %1341 : vector<12x128xf32>
    %1343 = arith.addf %1335, %1342 : vector<12x128xf32>
    %c0_490 = arith.constant 0 : index
    %c0_491 = arith.constant 0 : index
    %1344 = vector.load %arg9[%c0_490, %c0_491] : memref<12x128xf32, #tpu.memory_space<vmem>>, vector<12x128xf32>
    %1345 = arith.addf %1344, %1343 : vector<12x128xf32>
    %c0_492 = arith.constant 0 : index
    %c0_493 = arith.constant 0 : index
    %1346 = vector.load %arg9[%c0_492, %c0_493] : memref<12x128xf32, #tpu.memory_space<vmem>>, vector<12x128xf32>
    tpu.vector_store %arg9[%c0_492, %c0_493], %1345 {strides = array<i32>} : memref<12x128xf32, #tpu.memory_space<vmem>>, vector<12x128xf32>,
    %c0_494 = arith.constant 0 : index
    %c0_495 = arith.constant 0 : index
    %c2_496 = arith.constant 2 : index
    %c0_497 = arith.constant 0 : index
    %1347 = vector.load %arg5[%c0_494, %c0_495, %c2_496, %c0_497] : memref<1x1x14x3xbf16, #tpu.memory_space<vmem>>, vector<1x1x12x3xbf16>
    %1348 = vector.shape_cast %1347 : vector<1x1x12x3xbf16> to vector<12x3xbf16>
    %c8_498 = arith.constant 8 : index
    %c0_499 = arith.constant 0 : index
    %c0_500 = arith.constant 0 : index
    %1349 = vector.load %arg6[%c8_498, %c0_499, %c0_500] : memref<9x3x128xbf16, #tpu.memory_space<vmem>>, vector<1x3x128xbf16>
    %1350 = vector.shape_cast %1349 : vector<1x3x128xbf16> to vector<3x128xbf16>
    %1351 = vector.extract_strided_slice %1348 {offsets = [0, 0], sizes = [12, 1], strides = [1, 1]} : vector<12x3xbf16> to vector<12x1xbf16>
    %1352 = arith.extf %1351 : vector<12x1xbf16> to vector<12x1xf32>
    %1353 = vector.extract_strided_slice %1350 {offsets = [0, 0], sizes = [1, 128], strides = [1, 1]} : vector<3x128xbf16> to vector<1x128xbf16>
    %1354 = arith.extf %1353 : vector<1x128xbf16> to vector<1x128xf32>
    %1355 = vector.broadcast %1352 : vector<12x1xf32> to vector<12x128xf32>
    %1356 = vector.broadcast %1354 : vector<1x128xf32> to vector<12x128xf32>
    %1357 = arith.mulf %1355, %1356 : vector<12x128xf32>
    %1358 = vector.extract_strided_slice %1348 {offsets = [0, 1], sizes = [12, 1], strides = [1, 1]} : vector<12x3xbf16> to vector<12x1xbf16>
    %1359 = arith.extf %1358 : vector<12x1xbf16> to vector<12x1xf32>
    %1360 = vector.extract_strided_slice %1350 {offsets = [1, 0], sizes = [1, 128], strides = [1, 1]} : vector<3x128xbf16> to vector<1x128xbf16>
    %1361 = arith.extf %1360 : vector<1x128xbf16> to vector<1x128xf32>
    %1362 = vector.broadcast %1359 : vector<12x1xf32> to vector<12x128xf32>
    %1363 = vector.broadcast %1361 : vector<1x128xf32> to vector<12x128xf32>
    %1364 = arith.mulf %1362, %1363 : vector<12x128xf32>
    %1365 = arith.addf %1357, %1364 : vector<12x128xf32>
    %1366 = vector.extract_strided_slice %1348 {offsets = [0, 2], sizes = [12, 1], strides = [1, 1]} : vector<12x3xbf16> to vector<12x1xbf16>
    %1367 = arith.extf %1366 : vector<12x1xbf16> to vector<12x1xf32>
    %1368 = vector.extract_strided_slice %1350 {offsets = [2, 0], sizes = [1, 128], strides = [1, 1]} : vector<3x128xbf16> to vector<1x128xbf16>
    %1369 = arith.extf %1368 : vector<1x128xbf16> to vector<1x128xf32>
    %1370 = vector.broadcast %1367 : vector<12x1xf32> to vector<12x128xf32>
    %1371 = vector.broadcast %1369 : vector<1x128xf32> to vector<12x128xf32>
    %1372 = arith.mulf %1370, %1371 : vector<12x128xf32>
    %1373 = arith.addf %1365, %1372 : vector<12x128xf32>
    %c0_501 = arith.constant 0 : index
    %c0_502 = arith.constant 0 : index
    %1374 = vector.load %arg9[%c0_501, %c0_502] : memref<12x128xf32, #tpu.memory_space<vmem>>, vector<12x128xf32>
    %1375 = arith.addf %1374, %1373 : vector<12x128xf32>
    %c0_503 = arith.constant 0 : index
    %c0_504 = arith.constant 0 : index
    %1376 = vector.load %arg9[%c0_503, %c0_504] : memref<12x128xf32, #tpu.memory_space<vmem>>, vector<12x128xf32>
    tpu.vector_store %arg9[%c0_503, %c0_504], %1375 {strides = array<i32>} : memref<12x128xf32, #tpu.memory_space<vmem>>, vector<12x128xf32>,
    %c0_505 = arith.constant 0 : index
    %c0_506 = arith.constant 0 : index
    %1377 = vector.load %arg9[%c0_505, %c0_506] : memref<12x128xf32, #tpu.memory_space<vmem>>, vector<12x128xf32>
    %1378 = vector.broadcast %0 : vector<1x128xf32> to vector<12x128xf32>
    %1379 = arith.addf %1377, %1378 : vector<12x128xf32>
    %cst_507 = arith.constant 0.000000e+00 : f32
    %1380 = vector.broadcast %cst_507 : f32 to vector<12x128xf32>
    %1381 = arith.maximumf %1379, %1380 : vector<12x128xf32>
    %1382 = arith.truncf %1381 : vector<12x128xf32> to vector<12x128xbf16>
    %c0_508 = arith.constant 0 : index
    %c4_509 = arith.constant 4 : index
    %c0_510 = arith.constant 0 : index
    %c0_511 = arith.constant 0 : index
    %1383 = vector.load %arg8[%c0_508, %c4_509, %c0_510, %c0_511] : memref<1x5x12x128xbf16, #tpu.memory_space<vmem>>, vector<1x1x12x128xbf16>
    %1384 = vector.shape_cast %1383 : vector<1x1x12x128xbf16> to vector<12x128xbf16>
    %1385 = vector.shape_cast %1382 : vector<12x128xbf16> to vector<1x1x12x128xbf16>
    tpu.vector_store %arg8[%c0_508, %c4_509, %c0_510, %c0_511], %1385 {strides = array<i32>} : memref<1x5x12x128xbf16, #tpu.memory_space<vmem>>, vector<1x1x12x128xbf16>,
    return
  }
  func.func @transform_0(%arg0: i32, %arg1: i32, %arg2: i32) -> (i32, i32, i32, i32) {
    %c0_i32 = arith.constant 0 : i32
    %c0_i32_0 = arith.constant 0 : i32
    %c0_i32_1 = arith.constant 0 : i32
    return %arg0, %arg2, %c0_i32, %c0_i32_0 : i32, i32, i32, i32
  }
  func.func @transform_1(%arg0: i32, %arg1: i32, %arg2: i32) -> (i32, i32, i32, i32) {
    %c5_i32 = arith.constant 5 : i32
    %0 = arith.muli %arg2, %c5_i32 : i32
    %c5_i32_0 = arith.constant 5 : i32
    %1 = arith.addi %0, %c5_i32_0 : i32
    %c0_i32 = arith.constant 0 : i32
    %c0_i32_1 = arith.constant 0 : i32
    %c0_i32_2 = arith.constant 0 : i32
    return %arg0, %1, %c0_i32, %c0_i32_1 : i32, i32, i32, i32
  }
  func.func @transform_2(%arg0: i32, %arg1: i32, %arg2: i32) -> (i32, i32, i32, i32) {
    %c5_i32 = arith.constant 5 : i32
    %0 = arith.muli %arg2, %c5_i32 : i32
    %c5_i32_0 = arith.constant 5 : i32
    %1 = arith.addi %0, %c5_i32_0 : i32
    %c1_i32 = arith.constant 1 : i32
    %2 = arith.addi %1, %c1_i32 : i32
    %c0_i32 = arith.constant 0 : i32
    %c0_i32_1 = arith.constant 0 : i32
    %c0_i32_2 = arith.constant 0 : i32
    return %arg0, %2, %c0_i32, %c0_i32_1 : i32, i32, i32, i32
  }
  func.func @transform_3(%arg0: i32, %arg1: i32, %arg2: i32) -> (i32, i32, i32) {
    %c0_i32 = arith.constant 0 : i32
    %c0_i32_0 = arith.constant 0 : i32
    %c0_i32_1 = arith.constant 0 : i32
    return %c0_i32, %c0_i32_0, %arg1 : i32, i32, i32
  }
  func.func @transform_4(%arg0: i32, %arg1: i32, %arg2: i32) -> (i32, i32) {
    %c0_i32 = arith.constant 0 : i32
    %c0_i32_0 = arith.constant 0 : i32
    return %c0_i32, %arg1 : i32, i32
  }
  func.func @transform_5(%arg0: i32, %arg1: i32, %arg2: i32) -> (i32, i32, i32, i32) {
    %c0_i32 = arith.constant 0 : i32
    %c0_i32_0 = arith.constant 0 : i32
    return %arg0, %arg2, %c0_i32, %arg1 : i32, i32, i32, i32
  }
}

</mosaic_0001>

<bundles_post_ra>
// kernel: tpu_custom_call.1
= control target key start
LH: loop header
LB: loop body
LE: loop exit
PB: predicated region body
PF: predicated region fallthrough
CT: control target
= control target key end

     0   :  { %10 = vsyncpa [#allocation4], 0  ;;  %s6601_s0 = inlined_call_operand.vmem [shape: bf16[1,12,14,3], index: 0, kind: input, shape index: {}]   ;;  %s6602_s1 = inlined_call_operand.vmem [shape: bf16[1,12,14,3], index: 1, kind: input, shape index: {}]   ;;  %s6603_s2 = inlined_call_operand.vmem [shape: bf16[1,12,14,3], index: 2, kind: input, shape index: {}]   ;;  %s6604_s3 = inlined_call_operand.vmem [shape: bf16[9,3,128], index: 3, kind: input, shape index: {}]   ;;  %s6605_s4 = inlined_call_operand.vmem [shape: f32[1,128], index: 4, kind: input, shape index: {}]   ;;  %s6606_s5 = inlined_call_operand.hbm [shape: bf16[1,10,12,128], index: 5, kind: output, shape index: {}]  }
   0x1   :  { %12 = vsyncpa [#allocation4 + $0x1], 0  ;;  %s4708_s18 = smov 0   ;;  %s4710_s19 = smov 0  }
   0x2   :  { %s4712_s20 = smov 0   ;;  %s4714_s21 = smov 0  }
   0x3   :  { %s4716_s22 = smov 0   ;;  %s4718_s23 = smov 0  }
   0x4 LB: > { %s3586_s24 = sadd.s32 4294967295, %s4670_s23   ;;  %s3587_s25 = sadd.s32 4294967294, %s4670_s23   ;;  %s4670_s23 = sphi %s4718_s23, %s18_s23   ;;  %s4666_s22 = sphi %s4716_s22, %s6729_s22   ;;  %s4662_s21 = sphi %s4714_s21, %s6728_s21   ;;  %s4658_s20 = sphi %s4712_s20, %s6727_s20   ;;  %s4654_s19 = sphi %s4710_s19, %s6726_s19   ;;  %s4650_s18 = sphi %s4708_s18, %s6725_s18  }
   0x5   : > { %s30_s26 = sadd.s32 1, %s4666_s22  ;;  %s192_s27 = sadd.s32 1, %s4658_s20 }
   0x6   : > { %p31_p0 = scmp.ge.s32.totalorder %s30_s26, 2  ;;  %p202_p1 = scmp.ne.s32.totalorder %s4658_s20, %s4654_s19 }
   0x7   : > { %p203_p2 = scmp.eq.s32.totalorder %s3586_s24, 1  ;;  %p208_p3 = scmp.ne.s32.totalorder %s4654_s19, %s4650_s18 }
   0x8   : > { %s6731_s26 = smov (%p31_p0, %s30_s26), 0  ;;  %p209_p5 = scmp.eq.s32.totalorder %s3587_s25, 1 }
   0x9   : > { %p4748_p4 = por %p203_p2, %p202_p1  ;;  %s186_s29 = ssub.s32 %s4666_s22, %s6731_s26 }
   0xa   : > { %p3592_p6 = scmp.ge.s32.totalorder %s4670_s23, 1  ;;  %p190_p7 = scmp.eq.s32.totalorder %s186_s29, 0 }
   0xb   : > { %p4755_p8 = por %p209_p5, %p208_p3  ;;  %p296_p9 = scmp.lt.s32.totalorder %s4670_s23, 3 }
   0xc   : > { %s4761_s6 = scalar_select %p190_p7, %s4658_s20, %s192_s27  }
   0xd   : > { %p297_p10 = pnand %p3592_p6, %p296_p9 }
   0xf   : > { %300 = sbr.rel (%p297_p10) target bundleno = 637 (0x27d), region = 40 }
  0x16   : > { %s4764_s7 = smul.u32 5, %s4662_s21  ;;  %v6611_v0 = vmov 2   ;;  %v6613_v1 = vmov 0   ;;  %v6608_v14 = vmov 1   ;;  %vm534_vm0 = vcmask 1046528   ;;  %s360_s11 = sand.u32 1, %s4654_s19  }
  0x17   : > { %3817 = vset.pattern.permute.xlu1 %v6611_v0  ;;  %3805 = vset.pattern.permute.xlu0 %v6613_v1  ;;  %vm603_vm1 = vcmask 1045504   ;;  %s3744_s17 = smul.u32 40, %s360_s11 }
  0x18   : > { %p371_p11 = scmp.lt.s32.totalorder %s4764_s7, 11 }
  0x19   : > { %s5387_s24 = scalar_lea.vmem [#allocation3], %s3744_s17  ;;  %s3743_s17 = smul.u32 640, %s4662_s21 }
  0x1a   : > { %s372_s8 = scalar_select %p371_p11, %s4764_s7, 11 }
  0x1b   : > { %s3431_s25 = sshll.u32 %s5387_s24, 4  ;;  %s4675_s21 = smov [#allocation3]   ;;  %s6545_s25 = int_to_ptr.vmem [resolvable:$true] %s3431_s25 }
  0x1c   : > { %s3728_s9 = sshll.u32 %s372_s8, 3  ;;  %s6550_s8 = scalar_lea.hbm %s6606_s5, %s3743_s17 }
  0x1d   : > { %s4773_s12 = scalar_lea.vmem %s6601_s0, %s3728_s9  ;;  %s385_s9 = sadd.s32 5, %s4764_s7 }
  0x1e   : > { %v419_v2 = vld [vmem:[%s4773_s12] ss:$8 sps:$4 sm:$0xff]   ;;  %v420_v3 = vld [vmem:[%s4773_s12 + $0x4] sm:$0x3]  ;;  %v3602_v18 = vld [vmem:[%s4773_s12 + $0xc] sm:$0x3] }
  0x1f   : > { %v475_v4 = vld [vmem:[%s4773_s12] ss:$8 sps:$4 sm:$0xff]   ;;  %v422_v5 = vunpack.c.l.bf16 %v419_v2  ;;  %v423_v6 = vunpack.c.l.bf16 %v420_v3  ;;  %v476_v7 = vld [vmem:[%s4773_s12 + $0x4] sm:$0x7]  ;;  %v3605_v19 = vld [vmem:[%s4773_s12 + $0xc] sm:$0x7]  ;;  %v618_v20 = vunpack.c.h.bf16 %v419_v2  ;;  %v619_v21 = vunpack.c.l.bf16 %v3602_v18 }
  0x20   : > { %v479_v8 = vunpack.c.l.bf16 %v475_v4  ;;  %v480_v9 = vunpack.c.l.bf16 %v476_v7  ;;  %v544_v12 = vld [vmem:[%s4773_s12] sm:$0xe]  ;;  %v545_v13 = vld [vmem:[%s4773_s12 + $0x4] sm:$0x7]  ;;  %v679_v23 = vunpack.c.h.bf16 %v475_v4  ;;  %v680_v24 = vunpack.c.l.bf16 %v3605_v19  ;;  %v3607_v26 = vld [vmem:[%s4773_s12 + $0x8] sm:$0xe] }
  0x21   : > { %v3818_v10 = vpack.i.bf16 %v423_v6, %v422_v5  ;;  %v548_v15 = vunpack.c.l.bf16 %v544_v12  ;;  %v549_v16 = vunpack.c.l.bf16 %v545_v13  ;;  %v3865_v22 = vpack.i.bf16 %v619_v21, %v618_v20  ;;  %v3608_v27 = vld [vmem:[%s4773_s12 + $0xc] sm:$0x7]  ;;  %v3610_v28 = vld [vmem:[%s4773_s12 + $0x8] ss:$8 sps:$4 sm:$0xff]   ;;  %v3611_v29 = vld [vmem:[%s4773_s12 + $0x14] sm:$0x3] }
  0x22   : > { %v3824_v11 = vpack.i.bf16 %v480_v9, %v479_v8  ;;  %v3882_v25 = vpack.i.bf16 %v680_v24, %v679_v23  ;;  %v747_v30 = vunpack.c.l.bf16 %v3607_v26  ;;  %v748_v31 = vunpack.c.l.bf16 %v3608_v27  ;;  %v4798_v36 = vld [vmem:[%s4773_s12 + $0x10] ss:$8 sps:$4 sm:$0xff]   ;;  %v3653_v37 = vld [vmem:[%s4773_s12 + $0x14] sm:$0x3]  ;;  %v3623_v52 = vld [vmem:[%s4773_s12 + $0xc] sm:$0x3] }
  0x23   : > { %3819 = vperm.xlu1 %3817, %v3818_v10   ;;  %3807 = vperm.xlu0 %3805, %v3818_v10   ;;  %v3853_v17 = vpack.i.bf16 %v549_v16, %v548_v15  ;;  %v816_v33 = vunpack.c.h.bf16 %v3610_v28  ;;  %v817_v34 = vunpack.c.l.bf16 %v3611_v29  ;;  %v3613_v38 = vld [vmem:[%s4773_s12 + $0x8] ss:$8 sps:$4 sm:$0xff]   ;;  %v3614_v39 = vld [vmem:[%s4773_s12 + $0x14] sm:$0x7]  ;;  %v1630_v40 = vunpack.c.l.bf16 %v4798_v36  ;;  %v3625_v60 = vld [vmem:[%s4773_s12 + $0xc] sm:$0x7] }
  0x24   : > { %v3894_v32 = vpack.i.bf16 %v748_v31, %v747_v30  ;;  %v1631_v41 = vunpack.c.l.bf16 %v3653_v37  ;;  %v877_v42 = vunpack.c.h.bf16 %v3613_v38  ;;  %v878_v43 = vunpack.c.l.bf16 %v3614_v39  ;;  %v3616_v45 = vld [vmem:[%s4773_s12 + $0x10] sm:$0xe]  ;;  %v3617_v47 = vld [vmem:[%s4773_s12 + $0x14] sm:$0x7]  ;;  %v3627_v63 = vld [vmem:[%s4773_s12 + $0x8] sm:$0xe] }
  0x25   : > { %v3911_v35 = vpack.i.bf16 %v817_v34, %v816_v33  ;;  %v3654_v48 = vld [vmem:[%s4773_s12 + $0x10] ss:$8 sps:$4 sm:$0xff]   ;;  %v3655_v49 = vld [vmem:[%s4773_s12 + $0x14] sm:$0x7]  ;;  %v945_v53 = vunpack.c.l.bf16 %v3616_v45  ;;  %v946_v54 = vunpack.c.l.bf16 %v3617_v47  ;;  %v1034_v57 = vunpack.c.l.bf16 %v3610_v28  ;;  %v3628_v2 = vld [vmem:[%s4773_s12 + $0xc] sm:$0x7] }
  0x26   : > { %v4805_v44 = vpack.i.bf16 %v1631_v41, %v1630_v40  ;;  %v3940_v46 = vpack.i.bf16 %v878_v43, %v877_v42  ;;  %v1686_v50 = vunpack.c.l.bf16 %v3654_v48  ;;  %v1687_v51 = vunpack.c.l.bf16 %v3655_v49  ;;  %v3657_v61 = vld [vmem:[%s4773_s12 + $0x10] sm:$0xe]  ;;  %v3658_v62 = vld [vmem:[%s4773_s12 + $0x14] sm:$0x7]  ;;  %v3661_v12 = vld [vmem:[%s4773_s12 + $0x1c] sm:$0x3] }
  0x27   : > { %3823 = vset.pattern.permute.xlu1 %v6613_v1  ;;  %3811 = vset.pattern.permute.xlu0 %v6608_v14  ;;  %v4816_v56 = vpack.i.bf16 %v946_v54, %v945_v53  ;;  %v1035_v58 = vunpack.c.l.bf16 %v3623_v52  ;;  %v1753_v3 = vunpack.c.l.bf16 %v3657_v61  ;;  %v1754_v4 = vunpack.c.l.bf16 %v3658_v62  ;;  %v3630_v16 = vld [vmem:[%s4773_s12 + $0x10] ss:$8 sps:$4 sm:$0xff]   ;;  %v3664_v21 = vld [vmem:[%s4773_s12 + $0x1c] sm:$0x7]  ;;  %v3634_v26 = vld [vmem:[%s4773_s12 + $0x14] sm:$0x7] }
  0x28   : > { %3825 = vperm.xlu1 %3823, %v3824_v11   ;;  %3813 = vperm.xlu0 %3811, %v3818_v10   ;;  %v4814_v55 = vpack.i.bf16 %v1687_v51, %v1686_v50  ;;  %v1090_v5 = vunpack.c.l.bf16 %v3613_v38  ;;  %v1091_v6 = vunpack.c.l.bf16 %v3625_v60  ;;  %v1157_v9 = vunpack.c.l.bf16 %v3627_v63  ;;  %v3636_v30 = vld [vmem:[%s4773_s12 + $0x10] sm:$0xe]  ;;  %v3637_v31 = vld [vmem:[%s4773_s12 + $0x14] sm:$0x7]  ;;  %v3640_v38 = vld [vmem:[%s4773_s12 + $0x1c] sm:$0x3] }
  0x29   : > { %v4821_v59 = vpack.i.bf16 %v1035_v58, %v1034_v57  ;;  %v4830_v7 = vpack.i.bf16 %v1754_v4, %v1753_v3  ;;  %v1158_v10 = vunpack.c.l.bf16 %v3628_v2  ;;  %v1820_v13 = vunpack.c.h.bf16 %v4798_v36  ;;  %v3667_v36 = vld [vmem:[%s4773_s12 + $0x1c] sm:$0x7]  ;;  %v3669_v50 = vld [vmem:[%s4773_s12 + $0x18] ss:$8 sps:$4 sm:$0xff]   ;;  %v3670_v51 = vld [vmem:[%s4773_s12 + $0x24] sm:$0x3] }
  0x2a   : > { %v4832_v8 = vpack.i.bf16 %v1091_v6, %v1090_v5  ;;  %v1821_v15 = vunpack.c.l.bf16 %v3661_v12  ;;  %v1224_v19 = vunpack.c.l.bf16 %v3630_v16  ;;  %v1881_v23 = vunpack.c.l.bf16 %v3664_v21  ;;  %v3643_v41 = vld [vmem:[%s4773_s12 + $0x1c] sm:$0x7]  ;;  %v3673_v62 = vld [vmem:[%s4773_s12 + $0x24] sm:$0x7]  ;;  %v3675_v4 = vld [vmem:[%s4773_s12 + $0x20] sm:$0xe] }
  0x2b   : > { %v1285_v29 = vunpack.c.l.bf16 %v3634_v26  ;;  %v1351_v33 = vunpack.c.l.bf16 %v3636_v30  ;;  %v1352_v34 = vunpack.c.l.bf16 %v3637_v31  ;;  %v1948_v40 = vunpack.c.l.bf16 %v3667_v36  ;;  %v3646_v57 = vld [vmem:[%s4773_s12 + $0x1c] sm:$0x7]  ;;  %v3676_v5 = vld [vmem:[%s4773_s12 + $0x24] sm:$0x7]  ;;  %v3687_v30 = vld [vmem:[%s4773_s12 + $0x18] sm:$0xe] }
  0x2c   : > { %3829 = vset.pattern.permute.xlu1 %v6608_v14  ;;  %3835 = vset.pattern.permute.xlu0 %v6611_v0  ;;  %v4845_v18 = vpack.i.bf16 %v1821_v15, %v1820_v13  ;;  %v1419_v43 = vunpack.c.h.bf16 %v3630_v16  ;;  %v1420_v45 = vunpack.c.l.bf16 %v3640_v38  ;;  %v2015_v52 = vunpack.c.h.bf16 %v3669_v50  ;;  %v3685_v15 = vld [vmem:[%s4773_s12 + $0x1c] sm:$0x7]  ;;  %p388_p12 = scmp.lt.s32.totalorder %s385_s9, 11  ;;  %s4592_s10 = scalar_lea.vmem %s6545_s25, 640 }
  0x2d   : > { %3831 = vperm.xlu1 %3829, %v3824_v11   ;;  %3837 = vperm.xlu0 %3835, %v3824_v11   ;;  %v4837_v11 = vpack.i.bf16 %v1158_v10, %v1157_v9  ;;  %v4868_v37 = vpack.i.bf16 %v1352_v34, %v1351_v33  ;;  %v2016_v53 = vunpack.c.l.bf16 %v3670_v51  ;;  %v1547_v60 = vunpack.c.l.bf16 %v3646_v57  ;;  %v3683_v10 = vld [vmem:[%s4773_s12 + $0x1c] sm:$0x3]  ;;  %p4593_p0 = scmp.ne.s32.totalorder %s6545_s25, %s4592_s10 }
  0x2e   : > { %v2076_v2 = vunpack.c.l.bf16 %v3673_v62  ;;  %v2142_v6 = vunpack.c.l.bf16 %v3675_v4  ;;  %v2143_v9 = vunpack.c.l.bf16 %v3676_v5  ;;  %v2226_v12 = vunpack.c.l.bf16 %v3669_v50  ;;  %v3688_v31 = vld [vmem:[%s4773_s12 + $0x1c] sm:$0x7]  ;;  %v3691_v4 = vld [vmem:[%s4773_s12 + $0x24] sm:$0x3]  ;;  %s6733_s9 = smov (!%p388_p12, %s385_s9), 11 }
  0x2f   : > { %v4889_v54 = vpack.i.bf16 %v2016_v53, %v2015_v52  ;;  %v435_v16 = vlaneseq  ;;  %v2349_v33 = vunpack.c.l.bf16 %v3687_v30  ;;  %v2350_v34 = vunpack.c.l.bf16 %v3688_v31  ;;  %v3693_v30 = vld [vmem:[%s4773_s12 + $0x20] sm:$0xf]  ;;  %v3694_v31 = vld [vmem:[%s4773_s12 + $0x24] sm:$0x7]  ;;  %s3729_s13 = sshll.u32 %s6733_s9, 3  ;;  %s6555_s9 = scalar_lea.sflag [#allocation4], %s360_s11 }
  0x30   : > { %s5106_s16 = scalar_lea.vmem %s6602_s1, %s3729_s13  ;;  %s398_s13 = sadd.s32 6, %s4764_s7 }
  0x31   : > { %3841 = vset.pattern.permute.xlu1 %v6613_v1  ;;  %3854 = vperm.xlu0 %3835, %v3853_v17   ;;  %v436_v21 = vshrl.u32 %v435_v16, 7  ;;  %p401_p13 = scmp.lt.s32.totalorder %s398_s13, 11  ;;  %p4594_p1 = pnand %p4593_p0, %p4748_p4 }
  0x32   : > { %3843 = vperm.xlu1 %3841, %v3853_v17  }
  0x33   : > { %s6735_s13 = smov (!%p401_p13, %s398_s13), 11  ;;  %p4595_p2 = pneg %p4594_p1 }
  0x34   : > { %s3730_s14 = sshll.u32 %s6735_s13, 3  ;;  %s4596_s13 = sshll.u32 %s4675_s21, 4  ;;  %s4597_s13 = int_to_ptr.vmem [resolvable:$false] %s4596_s13 }
  0x35   : > { %3864 = vset.pattern.permute.xlu0 %v6608_v14  ;;  %s5478_s27 = scalar_lea.vmem %s6603_s2, %s3730_s14  ;;  %s4598_s7 = scalar_lea.vmem %s4597_s13, 1280 }
  0x36   : > { %3847 = vset.pattern.permute.xlu1 %v6608_v14  ;;  %3866 = vperm.xlu0 %3864, %v3865_v22   ;;  %p4599_p3 = scmp.lt.s32.totalorder %s6545_s25, %s4597_s13  ;;  %p4600_p5 = scmp.lt.s32.totalorder %s4598_s7, %s4592_s10 }
  0x37   : > { %3849 = vperm.xlu1 %3847, %v3853_v17   ;;  %v3631_v17 = vld [vmem:[%s4773_s12 + $0x14] sm:$0x3] }
  0x38   : > { %v1225_v20 = vunpack.c.l.bf16 %v3631_v17  ;;  %p4601_p6 = por %p4600_p5, %p4599_p3 }
  0x3a   : > { %3883 = vperm.xlu0 %3864, %v3882_v25   ;;  %v4851_v24 = vpack.i.bf16 %v1225_v20, %v1224_v19  ;;  %v2283_v19 = vunpack.c.l.bf16 %v3685_v15  ;;  %v2417_v15 = vunpack.c.l.bf16 %v3691_v4  ;;  %p4602_p7 = pnand %p4601_p6, %p4595_p2 }
  0x3b   : > { %3858 = vset.pattern.permute.xlu1 %v6613_v1 }
  0x3c   : > { %3860 = vperm.xlu1 %3858, %v3865_v22  }
  0x3e   : > { %3893 = vset.pattern.permute.xlu0 %v6613_v1 }
  0x3f   : > { %3895 = vperm.xlu0 %3893, %v3894_v32  }
  0x40   : > { %3870 = vset.pattern.permute.xlu1 %v6611_v0 }
  0x41   : > { %3872 = vperm.xlu1 %3870, %v3865_v22   ;;  %v1880_v22 = vunpack.c.h.bf16 %v3654_v48  ;;  %v1480_v48 = vunpack.c.l.bf16 %v3643_v41 }
  0x43   : > { %3912 = vperm.xlu0 %3893, %v3911_v35   ;;  %v4855_v27 = vpack.i.bf16 %v1881_v23, %v1880_v22  ;;  %v421_v22 = vld [vmem:[%s6604_s3] sm:$0x3] }
  0x44   : > { %v424_v23 = vunpack.c.l.bf16 %v421_v22 }
  0x45   : > { %3876 = vset.pattern.permute.xlu1 %v6613_v1 }
  0x46   : > { %3878 = vperm.xlu1 %3876, %v3882_v25  }
  0x47   : > { %3922 = vset.pattern.permute.xlu0 %v6611_v0 }
  0x48   : > { %3924 = vperm.xlu0 %3922, %v3911_v35  }
  0x4a   : > { %3887 = vset.pattern.permute.xlu1 %v6611_v0 }
  0x4b   : > { %3889 = vperm.xlu1 %3887, %v3882_v25   ;;  %v3633_v25 = vld [vmem:[%s4773_s12 + $0x10] ss:$8 sps:$4 sm:$0xff]  }
  0x4c   : > { %3941 = vperm.xlu0 %3922, %v3940_v46   ;;  %v1284_v28 = vunpack.c.l.bf16 %v3633_v25  ;;  %v1479_v47 = vunpack.c.h.bf16 %v3633_v25  ;;  %v3599_v25 = vld [vmem:[%s6604_s3 + $0x2] sm:$0x3] }
  0x4d   : > { %v481_v36 = vunpack.c.l.bf16 %v3599_v25 }
  0x4e   : > { %v4883_v49 = vpack.i.bf16 %v1480_v48, %v1479_v47 }
  0x4f   : > { %3899 = vset.pattern.permute.xlu1 %v6608_v14 }
  0x50   : > { %3901 = vperm.xlu1 %3899, %v3894_v32   ;;  %3951 = vset.pattern.permute.xlu0 %v6608_v14 }
  0x51   : > { %3953 = vperm.xlu0 %3951, %v4816_v56  }
  0x54   : > { %3905 = vset.pattern.permute.xlu1 %v6611_v0 }
  0x55   : > { %3907 = vperm.xlu1 %3905, %v3894_v32   ;;  %3970 = vperm.xlu0 %3951, %v4821_v59   ;;  %v4861_v32 = vpack.i.bf16 %v1285_v29, %v1284_v28  ;;  %v4951_v29 = vsub.s32 1, %v436_v21 }
  0x57   : > { %6665 = vst [vmem:[#allocation7_spill] sm:$0xff] %v4951_v29 }
  0x59   : > { %3916 = vset.pattern.permute.xlu1 %v6608_v14  ;;  %3980 = vset.pattern.permute.xlu0 %v6613_v1 }
  0x5a   : > { %3918 = vperm.xlu1 %3916, %v3911_v35   ;;  %3982 = vperm.xlu0 %3980, %v4832_v8   ;;  %v3666_v35 = vld [vmem:[%s4773_s12 + $0x18] sm:$0xe] }
  0x5b   : > { %v1947_v39 = vunpack.c.l.bf16 %v3666_v35 }
  0x5d   : > { %v4874_v42 = vpack.i.bf16 %v1948_v40, %v1947_v39  ;;  %v4965_v39 = vrot.slane %v424_v23, %v4951_v29  ;;  %v4968_v40 = vpack.i.bf16 %v2350_v34, %v2349_v33 }
  0x5e   : > { %3928 = vset.pattern.permute.xlu1 %v6613_v1  ;;  %3999 = vperm.xlu0 %3980, %v4837_v11  }
  0x5f   : > { %3930 = vperm.xlu1 %3928, %v3940_v46   ;;  %6666 = vst [vmem:[#allocation8_spill] sm:$0xff] %v4968_v40 }
  0x62   : > { %4009 = vset.pattern.permute.xlu0 %v6611_v0 }
  0x63   : > { %3934 = vset.pattern.permute.xlu1 %v6608_v14  ;;  %4011 = vperm.xlu0 %4009, %v4837_v11  }
  0x64   : > { %3936 = vperm.xlu1 %3934, %v3940_v46   ;;  %v4877_v46 = vpack.i.bf16 %v1420_v45, %v1419_v43 }
  0x67   : > { %4028 = vperm.xlu0 %4009, %v4851_v24  }
  0x68   : > { %3945 = vset.pattern.permute.xlu1 %v6613_v1 }
  0x69   : > { %3947 = vperm.xlu1 %3945, %v4816_v56  }
  0x6b   : > { %4038 = vset.pattern.permute.xlu0 %v6608_v14 }
  0x6c   : > { %4040 = vperm.xlu0 %4038, %v4861_v32  }
  0x6d   : > { %3957 = vset.pattern.permute.xlu1 %v6611_v0 }
  0x6e   : > { %3959 = vperm.xlu1 %3957, %v4816_v56   ;;  %v3645_v56 = vld [vmem:[%s4773_s12 + $0x18] sm:$0xe] }
  0x6f   : > { %v1546_v58 = vunpack.c.l.bf16 %v3645_v56  ;;  %v4991_v56 = vrot.slane %v481_v36, %v4951_v29 }
  0x70   : > { %4057 = vperm.xlu0 %4038, %v4868_v37  }
  0x71   : > { %v4898_v61 = vpack.i.bf16 %v1547_v60, %v1546_v58 }
  0x72   : > { %3963 = vset.pattern.permute.xlu1 %v6613_v1 }
  0x73   : > { %3965 = vperm.xlu1 %3963, %v4821_v59  }
  0x74   : > { %4067 = vset.pattern.permute.xlu0 %v6613_v1 }
  0x75   : > { %4069 = vperm.xlu0 %4067, %v4877_v46  }
  0x77   : > { %3974 = vset.pattern.permute.xlu1 %v6611_v0 }
  0x78   : > { %3976 = vperm.xlu1 %3974, %v4821_v59   ;;  %v3672_v59 = vld [vmem:[%s4773_s12 + $0x18] ss:$8 sps:$4 sm:$0xff]  }
  0x79   : > { %4086 = vperm.xlu0 %4067, %v4883_v49   ;;  %v2075_v63 = vunpack.c.h.bf16 %v3672_v59  ;;  %v2282_v17 = vunpack.c.l.bf16 %v3672_v59 }
  0x7b   : > { %v4905_v3 = vpack.i.bf16 %v2076_v2, %v2075_v63  ;;  %v4933_v20 = vpack.i.bf16 %v2283_v19, %v2282_v17  ;;  %v3690_v2 = vld [vmem:[%s4773_s12 + $0x20] sm:$0xf] }
  0x7c   : > { %3986 = vset.pattern.permute.xlu1 %v6608_v14 }
  0x7d   : > { %3988 = vperm.xlu1 %3986, %v4832_v8   ;;  %4096 = vset.pattern.permute.xlu0 %v6611_v0 }
  0x7e   : > { %4098 = vperm.xlu0 %4096, %v4883_v49  }
  0x81   : > { %3992 = vset.pattern.permute.xlu1 %v6611_v0 }
  0x82   : > { %3994 = vperm.xlu1 %3992, %v4832_v8   ;;  %4115 = vperm.xlu0 %4096, %v4898_v61   ;;  %v4916_v8 = vpack.i.bf16 %v2143_v9, %v2142_v6 }
  0x86   : > { %4003 = vset.pattern.permute.xlu1 %v6608_v14  ;;  %4125 = vset.pattern.permute.xlu0 %v6608_v14 }
  0x87   : > { %4005 = vperm.xlu1 %4003, %v4837_v11   ;;  %4127 = vperm.xlu0 %4125, %v4805_v44   ;;  %v2227_v11 = vunpack.c.l.bf16 %v3683_v10 }
  0x89   : > { %v4923_v13 = vpack.i.bf16 %v2227_v11, %v2226_v12  ;;  %v3600_v12 = vld [vmem:[%s6604_s3 + $0x4] sm:$0x3]  ;;  %v2416_v11 = vunpack.c.l.bf16 %v3690_v2 }
  0x8a   : > { %v550_v19 = vunpack.c.l.bf16 %v3600_v12 }
  0x8b   : > { %4015 = vset.pattern.permute.xlu1 %v6613_v1  ;;  %4144 = vperm.xlu0 %4125, %v4814_v55  }
  0x8c   : > { %4017 = vperm.xlu1 %4015, %v4851_v24   ;;  %v5026_v25 = vrot.slane %v550_v19, %v4951_v29 }
  0x8f   : > { %4154 = vset.pattern.permute.xlu0 %v6613_v1 }
  0x90   : > { %4021 = vset.pattern.permute.xlu1 %v6608_v14  ;;  %4156 = vperm.xlu0 %4154, %v4830_v7  }
  0x91   : > { %4023 = vperm.xlu1 %4021, %v4851_v24   ;;  %v4941_v24 = vsub.s32 0, %v436_v21 }
  0x93   : > { %6664 = vst [vmem:[#allocation6_spill] sm:$0xff] %v4941_v24  ;;  %v4960_v35 = vrot.slane %v424_v23, %v4941_v24  ;;  %v4982_v50 = vrot.slane %v481_v36, %v4941_v24 }
  0x94   : > { %4173 = vperm.xlu0 %4154, %v4845_v18  }
  0x95   : > { %4032 = vset.pattern.permute.xlu1 %v6613_v1 }
  0x96   : > { %4034 = vperm.xlu1 %4032, %v4861_v32  }
  0x98   : > { %4183 = vset.pattern.permute.xlu0 %v6611_v0 }
  0x99   : > { %4185 = vperm.xlu0 %4183, %v4845_v18  }
  0x9a   : > { %4044 = vset.pattern.permute.xlu1 %v6611_v0 }
  0x9b   : > { %4046 = vperm.xlu1 %4044, %v4861_v32   ;;  %v4956_v32 = vsub.s32 2, %v436_v21  ;;  %v5015_v21 = vpack.i.bf16 %v2417_v15, %v2416_v11  ;;  %v3606_v11 = vld [vmem:[%s6604_s3 + $0x8] sm:$0x3]  ;;  %v3696_v15 = vld [vmem:[%s4773_s12 + $0x20] sm:$0xe] }
  0x9d   : > { %4202 = vperm.xlu0 %4183, %v4855_v27   ;;  %v4975_v45 = vrot.slane %v424_v23, %v4956_v32  ;;  %v4986_v52 = vrot.slane %v481_v36, %v4956_v32  ;;  %6667 = vst [vmem:[#allocation9_spill] sm:$0xff] %v5015_v21  ;;  %v5036_v36 = vrot.slane %v550_v19, %v4956_v32 }
  0x9f   : > { %4050 = vset.pattern.permute.xlu1 %v6613_v1 }
  0xa0   : > { %4052 = vperm.xlu1 %4050, %v4868_v37  }
  0xa1   : > { %4212 = vset.pattern.permute.xlu0 %v6608_v14 }
  0xa2   : > { %v4947_v26 = vpop.permute.xlu1 %3819  ;;  %v4949_v28 = vpop.permute.xlu0 %3807  ;;  %4214 = vperm.xlu0 %4212, %v4874_v42  }
  0xa3   : > { %v3810_v38 = vunpack.i.h.bf16 %v4949_v28  ;;  %v3822_v47 = vunpack.i.h.bf16 %v4947_v26 }
  0xa4   : > { %4061 = vset.pattern.permute.xlu1 %v6611_v0 }
  0xa5   : > { %4063 = vperm.xlu1 %4061, %v4868_v37   ;;  %v440_v48 = vmul.f32 %v3810_v38, %v4960_v35  ;;  %v470_v57 = vmul.f32 %v3822_v47, %v4975_v45  ;;  %v3603_v47 = vld [vmem:[%s6604_s3 + $0x6] sm:$0x3] }
  0xa6   : > { %4231 = vperm.xlu0 %4212, %v4889_v54  }
  0xa7   : > { %v4970_v41 = vpop.permute.xlu1 %3825  ;;  %v4972_v43 = vpop.permute.xlu0 %3813 }
  0xa8   : > { %v3816_v37 = vunpack.i.h.bf16 %v4972_v43  ;;  %v3828_v53 = vunpack.i.h.bf16 %v4970_v41 }
  0xa9   : > { %4073 = vset.pattern.permute.xlu1 %v6608_v14 }
  0xaa   : > { %v454_v51 = vmul.f32 %v3816_v37, %v4965_v39  ;;  %4075 = vperm.xlu1 %4073, %v4877_v46   ;;  %4241 = vset.pattern.permute.xlu0 %v6613_v1  ;;  %v497_v6 = vmul.f32 %v3828_v53, %v4982_v50  ;;  %v2477_v53 = vunpack.c.l.bf16 %v3694_v31 }
  0xab   : > { %4243 = vperm.xlu0 %4241, %v4905_v3  }
  0xac   : > { %v456_v58 = vadd.f32 %v454_v51, %v440_v48  ;;  %v4995_v60 = vpop.permute.xlu1 %3831  ;;  %v4997_v59 = vpop.permute.xlu0 %3837  ;;  %v2476_v51 = vunpack.c.l.bf16 %v3693_v30 }
  0xad   : > { %v3834_v62 = vunpack.i.h.bf16 %v4995_v60  ;;  %v3840_v63 = vunpack.i.h.bf16 %v4997_v59 }
  0xae   : > { %v472_v5 = vadd.f32 %v470_v57, %v456_v58  ;;  %4079 = vset.pattern.permute.xlu1 %v6611_v0  ;;  %v5052_v2 = vpack.i.bf16 %v2477_v53, %v2476_v51  ;;  %v3833_v51 = vunpack.i.l.bf16 %v4995_v60  ;;  %v3827_v60 = vunpack.i.l.bf16 %v4970_v41 }
  0xaf   : > { %v511_v9 = vmul.f32 %v3834_v62, %v4991_v56  ;;  %v527_v10 = vmul.f32 %v3840_v63, %v4986_v52  ;;  %4081 = vperm.xlu1 %4079, %v4877_v46   ;;  %4260 = vperm.xlu0 %4241, %v4916_v8   ;;  %v5023_v46 = vrot.slane %v550_v19, %v4941_v24  ;;  %v620_v63 = vunpack.c.l.bf16 %v3603_v47 }
  0xb0   : > { %474 = vst [vmem:[#allocation2 + $0x8] sm:$0xf] %v472_v5  ;;  %v5020_v23 = vpop.permute.xlu0 %3854  ;;  %6668 = vst [vmem:[#allocation10_spill] sm:$0xff] %v5052_v2  ;;  %v3839_v41 = vunpack.i.l.bf16 %v4997_v59  ;;  %v496_v59 = vmul.f32 %v3827_v60, %v4982_v50  ;;  %v3612_v50 = vld [vmem:[%s6604_s3 + $0xc] sm:$0x3] }
  0xb1   : > { %v513_v16 = vadd.f32 %v511_v9, %v497_v6  ;;  %v5013_v17 = vpop.permute.xlu1 %3843  ;;  %v3857_v37 = vunpack.i.h.bf16 %v5020_v23  ;;  %v5062_v12 = vrot.slane %v620_v63, %v4941_v24  ;;  %v5073_v30 = vrot.slane %v620_v63, %v4951_v29 }
  0xb2   : > { %v3846_v34 = vunpack.i.h.bf16 %v5013_v17  ;;  %v526_v60 = vmul.f32 %v3839_v41, %v4986_v52 }
  0xb3   : > { %v5017_v22 = vadd.f32 %v527_v10, %v513_v16  ;;  %4090 = vset.pattern.permute.xlu1 %v6608_v14  ;;  %4270 = vset.pattern.permute.xlu0 %v6611_v0  ;;  %v596_v4 = vmul.f32 %v3857_v37, %v5036_v36  ;;  %v3697_v16 = vld [vmem:[%s4773_s12 + $0x24] sm:$0x7]  ;;  %v2543_v37 = vunpack.c.l.bf16 %v3696_v15 }
  0xb4   : > { %4092 = vperm.xlu1 %4090, %v4883_v49   ;;  %4272 = vperm.xlu0 %4270, %v4916_v8   ;;  %v566_v58 = vmul.f32 %v3846_v34, %v5023_v46 }
  0xb5   : > { %v6610_v33 = vrot.slane %v5017_v22, 1  ;;  %v5057_v9 = vpop.permute.xlu0 %3866 }
  0xb6   : > { %v5038_v38 = vpop.permute.xlu1 %3849  ;;  %v3869_v31 = vunpack.i.h.bf16 %v5057_v9 }
  0xb7   : > { %v531_v49 = vld [vmem:[#allocation2 + $0x8] sm:$0xf]  ;;  %v3852_v48 = vunpack.i.h.bf16 %v5038_v38 }
  0xb8   : > { %v541_v57 = vadd.f32 %v6610_v33, %v531_v49  ;;  %4102 = vset.pattern.permute.xlu1 %v6613_v1  ;;  %4289 = vperm.xlu0 %4270, %v4923_v13   ;;  %v681_v49 = vunpack.c.l.bf16 %v3606_v11  ;;  %v3815_v33 = vunpack.i.l.bf16 %v4972_v43 }
  0xb9   : > { %v580_v62 = vmul.f32 %v3852_v48, %v5026_v25  ;;  %4104 = vperm.xlu1 %4102, %v4898_v61   ;;  %v2544_v48 = vunpack.c.l.bf16 %v3697_v16  ;;  %v510_v16 = vmul.f32 %v3833_v51, %v4991_v56 }
  0xba   : > { %543 = vst [vmem:[#allocation2 + $0x8] sm:$0xf] %v541_v57  ;;  %v5084_v57 = vrot.slane %v620_v63, %v4956_v32  ;;  %v5099_v63 = vrot.slane %v681_v49, %v4951_v29 }
  0xbb   : > { %v582_v5 = vadd.f32 %v580_v62, %v566_v58  ;;  %v5055_v6 = vpop.permute.xlu1 %3860  ;;  %v5101_v15 = vpack.i.bf16 %v2544_v48, %v2543_v37  ;;  %v2607_v48 = vld [vmem:[%s5106_s16] sm:$0xf] }
  0xbc   : > { %4299 = vset.pattern.permute.xlu0 %v6608_v14  ;;  %v3863_v19 = vunpack.i.h.bf16 %v5055_v6  ;;  %v2610_v56 = vunpack.c.l.bf16 %v2607_v48 }
  0xbd   : > { %v5059_v10 = vadd.f32 %v596_v4, %v582_v5  ;;  %4108 = vset.pattern.permute.xlu1 %v6608_v14  ;;  %4301 = vperm.xlu0 %4299, %v4933_v20   ;;  %v650_v4 = vmul.f32 %v3869_v31, %v5073_v30  ;;  %6669 = vst [vmem:[#allocation11_spill] sm:$0xff] %v5101_v15  ;;  %v5111_v31 = vpop.permute.xlu0 %3883 }
  0xbe   : > { %4110 = vperm.xlu1 %4108, %v4898_v61   ;;  %v3609_v61 = vld [vmem:[%s6604_s3 + $0xa] sm:$0x3]  ;;  %v636_v62 = vmul.f32 %v3863_v19, %v5062_v12  ;;  %v3851_v19 = vunpack.i.l.bf16 %v5038_v38  ;;  %v3845_v38 = vunpack.i.l.bf16 %v5013_v17  ;;  %v512_v17 = vadd.f32 %v510_v16, %v496_v59 }
  0xbf   : > { %v6607_v34 = vrot.slane %v5059_v10, 2  ;;  %v749_v11 = vunpack.c.l.bf16 %v3609_v61  ;;  %v2608_v61 = vld [vmem:[%s5106_s16 + $0x4] sm:$0x3] }
  0xc0   : > { %v5080_v47 = vpop.permute.xlu1 %3872  ;;  %v2611_v51 = vunpack.c.l.bf16 %v2608_v61  ;;  %v579_v48 = vmul.f32 %v3851_v19, %v5026_v25  ;;  %v3809_v61 = vunpack.i.l.bf16 %v4949_v28  ;;  %v565_v16 = vmul.f32 %v3845_v38, %v5023_v46  ;;  %v3618_v46 = vld [vmem:[%s6604_s3 + $0x10] sm:$0x3] }
  0xc1   : > { %v600_v53 = vld [vmem:[#allocation2 + $0x8] sm:$0xf]  ;;  %v3875_v5 = vunpack.i.h.bf16 %v5080_v47  ;;  %4318 = vperm.xlu0 %4299, %v4968_v40   ;;  %v5153_v41 = vpop.permute.xlu0 %3895  ;;  %v818_v19 = vunpack.c.l.bf16 %v3612_v50  ;;  %v453_v28 = vmul.f32 %v3815_v33, %v4965_v39  ;;  %v3821_v39 = vunpack.i.l.bf16 %v4947_v26 }
  0xc2   : > { %v610_v58 = vadd.f32 %v6607_v34, %v600_v53  ;;  %4119 = vset.pattern.permute.xlu1 %v6613_v1  ;;  %v5114_v53 = vrot.slane %v681_v49, %v4941_v24  ;;  %v5141_v43 = vpack.i.bf16 %v2611_v51, %v2610_v56  ;;  %v528_v56 = vadd.f32 %v526_v60, %v512_v17 }
  0xc3   : > { %4121 = vperm.xlu1 %4119, %v4805_v44   ;;  %v666_v34 = vmul.f32 %v3875_v5, %v5084_v57  ;;  %v5134_v5 = vrot.slane %v749_v11, %v4951_v29  ;;  %v581_v59 = vadd.f32 %v579_v48, %v565_v16  ;;  %v439_v33 = vmul.f32 %v3809_v61, %v4960_v35 }
  0xc4   : > { %612 = vst [vmem:[#allocation2 + $0x8] sm:$0xf] %v610_v58  ;;  %v652_v58 = vadd.f32 %v650_v4, %v636_v62  ;;  %v3886_v62 = vunpack.i.h.bf16 %v5111_v31  ;;  %v5130_v4 = vrot.slane %v681_v49, %v4956_v32  ;;  %6670 = vst [vmem:[#allocation12_spill] sm:$0xff] %v5141_v43  ;;  %v5174_v17 = vrot.slane %v749_v11, %v4956_v32 }
  0xc5   : > { %v5116_v37 = vpop.permute.xlu1 %3878  ;;  %4328 = vset.pattern.permute.xlu0 %v6613_v1  ;;  %v5148_v1 = vrot.slane %v749_v11, %v4941_v24  ;;  %v5176_v48 = vunpack.c.l.bf16 %v3618_v46  ;;  %v6672_v16 = vmov 2   ;;  %v455_v26 = vadd.f32 %v453_v28, %v439_v33 }
  0xc6   : > { %v3881_v14 = vunpack.i.h.bf16 %v5116_v37  ;;  %4330 = vperm.xlu0 %4328, %v5015_v21   ;;  %v668_v49 = vadd.f32 %v666_v34, %v652_v58  ;;  %v3856_v21 = vunpack.i.l.bf16 %v5020_v23  ;;  %v711_v34 = vmul.f32 %v3886_v62, %v5099_v63  ;;  %v3615_v23 = vld [vmem:[%s6604_s3 + $0xe] sm:$0x3] }
  0xc7   : > { %4131 = vset.pattern.permute.xlu1 %v6611_v0  ;;  %v6671_v58 = vmov 0   ;;  %v3898_v62 = vunpack.i.h.bf16 %v5153_v41  ;;  %v879_v60 = vunpack.c.l.bf16 %v3615_v23  ;;  %v5184_v61 = vrot.slane %v818_v19, %v4941_v24 }
  0xc8   : > { %4133 = vperm.xlu1 %4131, %v4805_v44   ;;  %v697_v44 = vmul.f32 %v3881_v14, %v5114_v53  ;;  %v595_v50 = vmul.f32 %v3856_v21, %v5036_v36  ;;  %v535_v21 = vrot.slane %v528_v56, 1  ;;  %v5188_v11 = vrot.slane %v818_v19, %v4951_v29 }
  0xc9   : > { %v765_v28 = vmul.f32 %v3898_v62, %v5148_v1  ;;  %v3868_v23 = vunpack.i.l.bf16 %v5057_v9  ;;  %v5200_v46 = vrot.slane %v879_v60, %v4941_v24  ;;  %v5203_v56 = vrot.slane %v879_v60, %v4951_v29 }
  0xca   : > { %v5145_v0 = vpop.permute.xlu1 %3889  ;;  %4347 = vperm.xlu0 %4328, %v5052_v2   ;;  %v713_v51 = vadd.f32 %v711_v34, %v697_v44  ;;  %v597_v36 = vadd.f32 %v595_v50, %v581_v59  ;;  %v469_v44 = vmul.f32 %v3821_v39, %v4975_v45  ;;  %v3862_v34 = vunpack.i.l.bf16 %v5055_v6  ;;  %v2667_v45 = vld [vmem:[%s5106_s16] sm:$0xf]  ;;  %v2668_v59 = vld [vmem:[%s5106_s16 + $0x4] sm:$0x7] }
  0xcb   : > { %v670_v52 = vld [vmem:[#allocation2 + $0x8] sm:$0xf]  ;;  %v3892_v25 = vunpack.i.h.bf16 %v5145_v0  ;;  %v5215_v6 = vrot.slane %v5176_v48, %v4941_v24  ;;  %v6673_v9 = vrot.slane %v5017_v22, 1  ;;  %v2671_v40 = vunpack.c.l.bf16 %v2668_v59  ;;  %v2734_v59 = vld [vmem:[%s5106_s16] sm:$0xe] }
  0xcc   : > { %v672_v14 = vadd.f32 %v670_v52, %v668_v49  ;;  %4137 = vset.pattern.permute.xlu1 %v6671_v58  ;;  %v649_v22 = vmul.f32 %v3868_v23, %v5073_v30  ;;  %v3874_v30 = vunpack.i.l.bf16 %v5080_v47 }
  0xcd   : > { %v727_v38 = vmul.f32 %v3892_v25, %v5130_v4  ;;  %4139 = vperm.xlu1 %4137, %v4814_v55  }
  0xce   : > { %674 = vst [vmem:[#allocation2 + $0x8] sm:$0xf] %v672_v14  ;;  %4357 = vset.pattern.permute.xlu0 %v6672_v16  ;;  %v5195_v14 = vrot.slane %v818_v19, %v4956_v32  ;;  %v537_v19 = vsel %vm534_vm0, %v535_v21, %v6673_v9  ;;  %v3885_v21 = vunpack.i.l.bf16 %v5111_v31  ;;  %v3880_v9 = vunpack.i.l.bf16 %v5116_v37 }
  0xcf   : > { %v5171_v49 = vpop.permute.xlu1 %3901  ;;  %v5179_v52 = vadd.f32 %v727_v38, %v713_v51  ;;  %4359 = vperm.xlu0 %4357, %v5052_v2   ;;  %v471_v38 = vadd.f32 %v469_v44, %v455_v26  ;;  %v604_v51 = vrot.slane %v597_v36, 2  ;;  %v5222_v26 = vpop.permute.xlu0 %3912  ;;  %v6674_v44 = vmov 1  }
  0xd0   : > { %v3904_v35 = vunpack.i.h.bf16 %v5171_v49  ;;  %v2670_v2 = vunpack.c.l.bf16 %v2667_v45  ;;  %v3903_v31 = vunpack.i.l.bf16 %v5171_v49  ;;  %v710_v47 = vmul.f32 %v3885_v21, %v5099_v63 }
  0xd1   : > { %4148 = vset.pattern.permute.xlu1 %v6672_v16  ;;  %v735_v39 = vrot.slane %v5179_v52, 1  ;;  %v3915_v49 = vunpack.i.h.bf16 %v5222_v26  ;;  %v665_v63 = vmul.f32 %v3874_v30, %v5084_v57 }
  0xd2   : > { %v779_v25 = vmul.f32 %v3904_v35, %v5134_v5  ;;  %4150 = vperm.xlu1 %4148, %v4814_v55   ;;  %v5211_v55 = vrot.slane %v879_v60, %v4956_v32 }
  0xd3   : > { %4376 = vperm.xlu0 %4357, %v5101_v15   ;;  %v635_v15 = vmul.f32 %v3862_v34, %v5062_v12  ;;  %v5244_v37 = vpop.permute.xlu0 %3924 }
  0xd4   : > { %v5208_v33 = vpop.permute.xlu1 %3907  ;;  %v781_v35 = vadd.f32 %v779_v25, %v765_v28  ;;  %v5235_v25 = vpack.i.bf16 %v2671_v40, %v2670_v2  ;;  %v6676_v28 = vrot.slane %v5059_v10, 2  ;;  %v3891_v40 = vunpack.i.l.bf16 %v5145_v0 }
  0xd5   : > { %v731_v62 = vld [vmem:[#allocation2 + $0x8] sm:$0xf]  ;;  %v3910_v50 = vunpack.i.h.bf16 %v5208_v33  ;;  %v5252_v10 = vrot.slane %v5176_v48, %v4951_v29  ;;  %v651_v23 = vadd.f32 %v649_v22, %v635_v15  ;;  %v696_v0 = vmul.f32 %v3880_v9, %v5114_v53 }
  0xd6   : > { %v740_v60 = vadd.f32 %v735_v39, %v731_v62  ;;  %4160 = vset.pattern.permute.xlu1 %v6674_v44  ;;  %v3897_v62 = vunpack.i.l.bf16 %v5153_v41  ;;  %6675 = vst [vmem:[#allocation13_spill] sm:$0xff] %v5235_v25  ;;  %v606_v12 = vsel %vm603_vm1, %v604_v51, %v6676_v28  ;;  %v540_v41 = vadd.f32 %v537_v19, %v471_v38  ;;  %v2735_v51 = vld [vmem:[%s5106_s16 + $0x4] sm:$0x7] }
  0xd7   : > { %v795_v36 = vmul.f32 %v3910_v50, %v5174_v17  ;;  %4162 = vperm.xlu1 %4160, %v4830_v7   ;;  %4386 = vset.pattern.permute.xlu0 %v6674_v44  ;;  %v3927_v50 = vunpack.i.h.bf16 %v5244_v37  ;;  %v778_v15 = vmul.f32 %v3903_v31, %v5134_v5  ;;  %v726_v22 = vmul.f32 %v3891_v40, %v5130_v4 }
  0xd8   : > { %742 = vst [vmem:[#allocation2 + $0x8] sm:$0xf] %v740_v60  ;;  %4388 = vperm.xlu0 %4386, %v5141_v43   ;;  %v5260_v38 = vadd.f32 %v606_v12, %v540_v41  ;;  %v764_v19 = vmul.f32 %v3897_v62, %v5148_v1  ;;  %v3909_v60 = vunpack.i.l.bf16 %v5208_v33  ;;  %v3942_v1 = vpop.permute.xlu0 %3941  ;;  %v2738_v9 = vunpack.c.l.bf16 %v2735_v51 }
  0xd9   : > { %v5242_v34 = vpop.permute.xlu1 %3918  ;;  %v5248_v2 = vadd.f32 %v795_v36, %v781_v35  ;;  %v3914_v35 = vunpack.i.l.bf16 %v5222_v26  ;;  %v2737_v36 = vunpack.c.l.bf16 %v2734_v59  ;;  %v712_v33 = vadd.f32 %v710_v47, %v696_v0 }
  0xda   : > { %v3921_v45 = vunpack.i.h.bf16 %v5242_v34  ;;  %v864_v12 = vmul.f32 %v3927_v50, %v5195_v14  ;;  %v3926_v4 = vunpack.i.l.bf16 %v5244_v37  ;;  %v780_v30 = vadd.f32 %v778_v15, %v764_v19  ;;  %v3707_v50 = vld [vmem:[%s4773_s12 + $0x24] sm:$0x3] }
  0xdb   : > { %4166 = vset.pattern.permute.xlu1 %v6672_v16  ;;  %v803_v53 = vrot.slane %v5248_v2, 2  ;;  %v794_v31 = vmul.f32 %v3909_v60, %v5174_v17  ;;  %v3944_v41 = vunpack.i.h.bf16 %v3942_v1  ;;  %v3943_v40 = vunpack.i.l.bf16 %v3942_v1  ;;  %v3706_v17 = vld [vmem:[%s4773_s12 + $0x20] sm:$0xf] }
  0xdc   : > { %4168 = vperm.xlu1 %4166, %v4830_v7   ;;  %4405 = vperm.xlu0 %4386, %v5235_v25   ;;  %v834_v7 = vmul.f32 %v3915_v49, %v5184_v61  ;;  %v848_v57 = vmul.f32 %v3921_v45, %v5188_v11  ;;  %v728_v49 = vadd.f32 %v726_v22, %v712_v33  ;;  %v3920_v47 = vunpack.i.l.bf16 %v5242_v34  ;;  %v3954_v45 = vpop.permute.xlu0 %3953 }
  0xdd   : > { %v5283_v59 = vpack.i.bf16 %v2738_v9, %v2737_v36  ;;  %v2822_v22 = vunpack.c.l.bf16 %v3707_v50  ;;  %v667_v34 = vadd.f32 %v665_v63, %v651_v23  ;;  %v833_v1 = vmul.f32 %v3914_v35, %v5184_v61 }
  0xde   : > { %v3931_v21 = vpop.permute.xlu1 %3930  ;;  %v850_v37 = vadd.f32 %v848_v57, %v834_v7  ;;  %v3956_v36 = vunpack.i.h.bf16 %v3954_v45  ;;  %v847_v57 = vmul.f32 %v3920_v47, %v5188_v11  ;;  %v925_v23 = vmul.f32 %v3944_v41, %v5211_v55 }
  0xdf   : > { %v799_v62 = vld [vmem:[#allocation2 + $0x8] sm:$0xf]  ;;  %v3933_v5 = vunpack.i.h.bf16 %v3931_v21  ;;  %v3932_v28 = vunpack.i.l.bf16 %v3931_v21  ;;  %6677 = vst [vmem:[#allocation14_spill] sm:$0xff] %v5283_v59  ;;  %v796_v21 = vadd.f32 %v794_v31, %v780_v30  ;;  %v924_v61 = vmul.f32 %v3943_v40, %v5211_v55  ;;  %v3708_v55 = vld [vmem:[%s4773_s12 + $0x20] sm:$0xf] }
  0xe0   : > { %v808_v26 = vadd.f32 %v803_v53, %v799_v62  ;;  %4177 = vset.pattern.permute.xlu1 %v6674_v44  ;;  %4415 = vset.pattern.permute.xlu0 %v6671_v58  ;;  %v3955_v62 = vunpack.i.l.bf16 %v3954_v45  ;;  %v734_v63 = vrot.slane %v728_v49, 1  ;;  %v866_v35 = vadd.f32 %v864_v12, %v850_v37 }
  0xe1   : > { %4179 = vperm.xlu1 %4177, %v4845_v18   ;;  %v895_v51 = vmul.f32 %v3933_v5, %v5200_v46  ;;  %v894_v0 = vmul.f32 %v3932_v28, %v5200_v46  ;;  %4417 = vperm.xlu0 %4415, %v5283_v59   ;;  %v2821_v18 = vunpack.c.l.bf16 %v3706_v17  ;;  %v863_v5 = vmul.f32 %v3926_v4, %v5195_v14 }
  0xe2   : > { %810 = vst [vmem:[#allocation2 + $0x8] sm:$0xf] %v808_v26  ;;  %v976_v4 = vmul.f32 %v3955_v62, %v5252_v10  ;;  %v849_v41 = vadd.f32 %v847_v57, %v833_v1  ;;  %v671_v49 = vadd.f32 %v667_v34, %v5260_v38  ;;  %v736_v37 = vsel %vm534_vm0, %v734_v63, %v735_v39 }
  0xe3   : > { %v3937_v19 = vpop.permute.xlu1 %3936  ;;  %v5296_v7 = vpack.i.bf16 %v2822_v22, %v2821_v18 }
  0xe4   : > { %v3939_v15 = vunpack.i.h.bf16 %v3937_v19  ;;  %v3938_v60 = vunpack.i.l.bf16 %v3937_v19  ;;  %v977_v19 = vmul.f32 %v3956_v36, %v5252_v10  ;;  %v991_v10 = vrot.slane %v5176_v48, %v4956_v32 }
  0xe5   : > { %4189 = vset.pattern.permute.xlu1 %v6671_v58  ;;  %6678 = vst [vmem:[#allocation15_spill] sm:$0xff] %v5296_v7  ;;  %4434 = vperm.xlu0 %4415, %v5296_v7   ;;  %v865_v18 = vadd.f32 %v863_v5, %v849_v41  ;;  %v3712_v5 = vld [vmem:[%s4773_s12 + $0x24] sm:$0x7] }
  0xe6   : > { %v909_v9 = vmul.f32 %v3939_v15, %v5203_v56  ;;  %v908_v46 = vmul.f32 %v3938_v60, %v5203_v56  ;;  %4191 = vperm.xlu1 %4189, %v4855_v27   ;;  %v802_v56 = vrot.slane %v796_v21, 2  ;;  %v739_v60 = vadd.f32 %v736_v37, %v671_v49 }
  0xe8   : > { %v910_v28 = vadd.f32 %v908_v46, %v894_v0  ;;  %v911_v33 = vadd.f32 %v909_v9, %v895_v51  ;;  %v3948_v26 = vpop.permute.xlu1 %3947  ;;  %v3709_v51 = vld [vmem:[%s4773_s12 + $0x24] sm:$0x7]  ;;  %v804_v0 = vsel %vm603_vm1, %v802_v56, %v803_v53  ;;  %v3711_v46 = vld [vmem:[%s4773_s12 + $0x20] sm:$0xe]  ;;  %v5341_v56 = vld [vmem:[%s6605_s4] ss:$0 sm:$0xff] }
  0xe9   : > { %v868_v30 = vld [vmem:[#allocation2 + $0x8] sm:$0xf]  ;;  %v3950_v31 = vunpack.i.h.bf16 %v3948_v26  ;;  %v3949_v45 = vunpack.i.l.bf16 %v3948_v26  ;;  %v2878_v48 = vunpack.c.l.bf16 %v3709_v51  ;;  %v807_v53 = vadd.f32 %v804_v0, %v739_v60  ;;  %4444 = vset.pattern.permute.xlu0 %v6672_v16  ;;  %6680 = vst [vmem:[#allocation17_spill] sm:$0xff] %v5341_v56  ;;  %v3008_v51 = vld [vmem:[%s5106_s16] sm:$0xf] }
  0xea   : > { %v870_v11 = vadd.f32 %v868_v30, %v866_v35  ;;  %v927_v47 = vadd.f32 %v925_v23, %v911_v33  ;;  %v926_v14 = vadd.f32 %v924_v61, %v910_v28  ;;  %4195 = vset.pattern.permute.xlu1 %v6674_v44  ;;  %4446 = vperm.xlu0 %4444, %v5296_v7   ;;  %v2944_v35 = vunpack.c.l.bf16 %v3711_v46  ;;  %v1033_v33 = vld [vmem:[%s6604_s3] sm:$0x3]  ;;  %v3626_v30 = vld [vmem:[%s6604_s3 + $0x2] sm:$0x3] }
  0xeb   : > { %v963_v12 = vmul.f32 %v3950_v31, %v5215_v6  ;;  %v962_v40 = vmul.f32 %v3949_v45, %v5215_v6  ;;  %4197 = vperm.xlu1 %4195, %v4855_v27   ;;  %v2877_v27 = vunpack.c.l.bf16 %v3708_v55  ;;  %v869_v62 = vadd.f32 %v865_v18, %v807_v53 }
  0xec   : > { %872 = vst [vmem:[#allocation2 + $0x8] sm:$0xf] %v870_v11  ;;  %v933_v17 = vrot.slane %v927_v47, 1  ;;  %v932_v50 = vrot.slane %v926_v14, 1  ;;  %v2945_v31 = vunpack.c.l.bf16 %v3712_v5  ;;  %v1036_v11 = vunpack.c.l.bf16 %v1033_v33 }
  0xed   : > { %v3960_v6 = vpop.permute.xlu1 %3959  ;;  %v979_v38 = vadd.f32 %v977_v19, %v963_v12  ;;  %v978_v15 = vadd.f32 %v976_v4, %v962_v40  ;;  %v5323_v34 = vpack.i.bf16 %v2878_v48, %v2877_v27  ;;  %v5346_v19 = vpop.permute.xlu0 %3970  ;;  %v1092_v4 = vunpack.c.l.bf16 %v3626_v30  ;;  %v3068_v30 = vld [vmem:[%s5106_s16] sm:$0xf] }
  0xee   : > { %v3962_v52 = vunpack.i.h.bf16 %v3960_v6  ;;  %v3961_v39 = vunpack.i.l.bf16 %v3960_v6  ;;  %v934_v21 = vsel %vm534_vm0, %v932_v50, %v933_v17  ;;  %v5361_v12 = vrot.slane %v1036_v11, %v4941_v24 }
  0xef   : > { %4206 = vset.pattern.permute.xlu1 %v6671_v58  ;;  %6679 = vst [vmem:[#allocation16_spill] sm:$0xff] %v5323_v34  ;;  %v937_v28 = vadd.f32 %v934_v21, %v869_v62  ;;  %4463 = vperm.xlu0 %4444, %v5323_v34   ;;  %v5365_v49 = vrot.slane %v1036_v11, %v4951_v29  ;;  %v3973_v37 = vunpack.i.h.bf16 %v5346_v19  ;;  %v3011_v18 = vunpack.c.l.bf16 %v3008_v51 }
  0xf0   : > { %v993_v2 = vmul.f32 %v3962_v52, %v991_v10  ;;  %v992_v22 = vmul.f32 %v3961_v39, %v991_v10  ;;  %4208 = vperm.xlu1 %4206, %v4874_v42   ;;  %v5376_v6 = vrot.slane %v1092_v4, %v4951_v29  ;;  %v5379_v27 = vrot.slane %v1092_v4, %v4941_v24 }
  0xf1   : > { %v5358_v41 = vpop.permute.xlu0 %3982  ;;  %v5394_v53 = vrot.slane %v1092_v4, %v4956_v32 }
  0xf2   : > { %v994_v1 = vadd.f32 %v992_v22, %v978_v15  ;;  %v995_v36 = vadd.f32 %v993_v2, %v979_v38  ;;  %v5326_v9 = vpop.permute.xlu1 %3965  ;;  %v3009_v38 = vld [vmem:[%s5106_s16 + $0x4] sm:$0x3]  ;;  %v3985_v60 = vunpack.i.h.bf16 %v5358_v41  ;;  %v1066_v2 = vmul.f32 %v3973_v37, %v5365_v49 }
  0xf3   : > { %v929_v57 = vld [vmem:[#allocation2 + $0x8] sm:$0xf]  ;;  %v3968_v40 = vunpack.i.h.bf16 %v5326_v9  ;;  %4473 = vset.pattern.permute.xlu0 %v6674_v44  ;;  %v3012_v22 = vunpack.c.l.bf16 %v3009_v38  ;;  %v3071_v37 = vunpack.c.l.bf16 %v3068_v30 }
  0xf4   : > { %v938_v23 = vadd.f32 %v933_v17, %v929_v57  ;;  %v1000_v61 = vrot.slane %v994_v1, 2  ;;  %v1001_v63 = vrot.slane %v995_v36, 2  ;;  %4218 = vset.pattern.permute.xlu1 %v6672_v16  ;;  %v5373_v17 = vrot.slane %v1036_v11, %v4956_v32  ;;  %v3629_v1 = vld [vmem:[%s6604_s3 + $0x4] sm:$0x3] }
  0xf5   : > { %4220 = vperm.xlu1 %4218, %v4874_v42   ;;  %v5352_v42 = vpack.i.bf16 %v2945_v31, %v2944_v35  ;;  %v1052_v48 = vmul.f32 %v3968_v40, %v5361_v12  ;;  %v1108_v46 = vmul.f32 %v3985_v60, %v5379_v27  ;;  %v5405_v57 = vpop.permute.xlu0 %3999  ;;  %v5408_v5 = vpack.i.bf16 %v3012_v22, %v3011_v18  ;;  %v3069_v31 = vld [vmem:[%s5106_s16 + $0x4] sm:$0x7]  ;;  %v3635_v18 = vld [vmem:[%s6604_s3 + $0x8] sm:$0x3] }
  0xf6   : > { %940 = vst [vmem:[#allocation2 + $0x8] sm:$0xf] %v938_v23  ;;  %v1002_v26 = vsel %vm603_vm1, %v1000_v61, %v1001_v63  ;;  %v1159_v61 = vunpack.c.l.bf16 %v3629_v1  ;;  %v4002_v11 = vunpack.i.h.bf16 %v5405_v57  ;;  %v3072_v51 = vunpack.c.l.bf16 %v3069_v31  ;;  %v3641_v31 = vld [vmem:[%s6604_s3 + $0xc] sm:$0x3] }
  0xf7   : > { %v1005_v45 = vadd.f32 %v1002_v26, %v937_v28  ;;  %v5348_v47 = vpop.permute.xlu1 %3976  ;;  %6681 = vst [vmem:[#allocation18_spill] sm:$0xff] %v5352_v42  ;;  %4475 = vperm.xlu0 %4473, %v5352_v42   ;;  %6682 = vst [vmem:[#allocation19_spill] sm:$0xff] %v5408_v5  ;;  %v1068_v23 = vadd.f32 %v1066_v2, %v1052_v48  ;;  %v3135_v2 = vld [vmem:[%s5106_s16] sm:$0xe] }
  0xf8   : > { %v3979_v52 = vunpack.i.h.bf16 %v5348_v47 }
  0xf9   : > { %v1017_v14 = vadd.f32 %v5341_v56, %v1005_v45  ;;  %4224 = vset.pattern.permute.xlu1 %v6671_v58  ;;  %v5418_v45 = vrot.slane %v1159_v61, %v4941_v24 }
  0xfa   : > { %4226 = vperm.xlu1 %4224, %v4889_v54   ;;  %v1082_v36 = vmul.f32 %v3979_v52, %v5373_v17  ;;  %v3632_v52 = vld [vmem:[%s6604_s3 + $0x6] sm:$0x3] }
  0xfb   : > { %v1019_v55 = vmax.f32 %v1017_v14, 0.0  ;;  %4492 = vperm.xlu0 %4473, %v5408_v5   ;;  %v5422_v14 = vrot.slane %v1159_v61, %v4951_v29 }
  0xfc   : > { %v5368_v10 = vpop.permute.xlu1 %3988 }
  0xfd   : > { %v997_v0 = vld [vmem:[#allocation2 + $0x8] sm:$0xf]  ;;  %v3731_v50 = vpack.c.bf16 %v1019_v55, %v1019_v55  ;;  %v3991_v39 = vunpack.i.h.bf16 %v5368_v10  ;;  %v5426_v55 = vpop.permute.xlu0 %4011 }
  0xfe   : > { %v1006_v15 = vadd.f32 %v1001_v63, %v997_v0  ;;  %4235 = vset.pattern.permute.xlu1 %v6672_v16  ;;  %v1084_v63 = vadd.f32 %v1082_v36, %v1068_v23  ;;  %v1286_v23 = vunpack.c.l.bf16 %v3635_v18 }
  0xff   : > { %1029 = vst [vmem:[%s5387_s24] sm:$0xf] %v3731_v50  ;;  %4237 = vperm.xlu1 %4235, %v4889_v54   ;;  %v1122_v54 = vmul.f32 %v3991_v39, %v5376_v6  ;;  %4502 = vset.pattern.permute.xlu0 %v6671_v58  ;;  %v1175_v50 = vmul.f32 %v4002_v11, %v5418_v45 }
 0x100   : > { %1008 = vst [vmem:[#allocation2 + $0x8] sm:$0xf] %v1006_v15  ;;  %v5437_v15 = vrot.slane %v1159_v61, %v4956_v32  ;;  %v5444_v39 = vpack.i.bf16 %v3072_v51, %v3071_v37  ;;  %v3138_v61 = vunpack.c.l.bf16 %v3135_v2  ;;  %v5496_v2 = vrot.slane %v1286_v23, %v4941_v24 }
 0x101   : > { %v5396_v21 = vpop.permute.xlu1 %3994  ;;  %v1124_v35 = vadd.f32 %v1122_v54, %v1108_v46  ;;  %v1226_v54 = vunpack.c.l.bf16 %v3632_v52  ;;  %v3136_v46 = vld [vmem:[%s5106_s16 + $0x4] sm:$0x7]  ;;  %v5470_v30 = vpop.permute.xlu0 %4028 }
 0x102   : > { %v3997_v62 = vunpack.i.h.bf16 %v5396_v21  ;;  %6683 = vst [vmem:[#allocation20_spill] sm:$0xff] %v5444_v39  ;;  %4504 = vperm.xlu0 %4502, %v5444_v39   ;;  %v4031_v39 = vunpack.i.h.bf16 %v5470_v30 }
 0x103   : > { %4247 = vset.pattern.permute.xlu1 %v6674_v44 }
 0x104   : > { %4249 = vperm.xlu1 %4247, %v4905_v3   ;;  %v1138_v28 = vmul.f32 %v3997_v62, %v5394_v53 }
 0x106   : > { %v5413_v33 = vpop.permute.xlu1 %4005  ;;  %v5429_v40 = vadd.f32 %v1138_v28, %v1124_v35  ;;  %v5468_v28 = vrot.slane %v1226_v54, %v4941_v24 }
 0x107   : > { %v1010_v26 = vld [vmem:[#allocation2 + $0x8] sm:$0xf]  ;;  %v4008_v4 = vunpack.i.h.bf16 %v5413_v33 }
 0x108   : > { %1086 = vst [vmem:[#allocation2 + $0x8] sm:$0xf] %v1084_v63  ;;  %4253 = vset.pattern.permute.xlu1 %v6672_v16  ;;  %v6622_v60 = vrot.slane %v5429_v40, 1  ;;  %v3139_v63 = vunpack.c.l.bf16 %v3136_v46  ;;  %v1018_v11 = vadd.f32 %v5341_v56, %v1010_v26  ;;  %v3644_v26 = vld [vmem:[%s6604_s3 + $0xe] sm:$0x3] }
 0x109   : > { %4255 = vperm.xlu1 %4253, %v4905_v3   ;;  %v1189_v38 = vmul.f32 %v4008_v4, %v5422_v14  ;;  %v4014_v3 = vunpack.i.h.bf16 %v5426_v55  ;;  %v5482_v4 = vrot.slane %v1226_v54, %v4951_v29 }
 0x10b   : > { %v5432_v0 = vpop.permute.xlu1 %4017  ;;  %v1191_v1 = vadd.f32 %v1189_v38, %v1175_v50  ;;  %v1205_v36 = vmul.f32 %v4014_v3, %v5437_v15  ;;  %v5486_v50 = vpack.i.bf16 %v3139_v63, %v3138_v61  ;;  %v3202_v38 = vld [vmem:[%s5478_s27] sm:$0xf]  ;;  %v3203_v3 = vld [vmem:[%s5478_s27 + $0x4] sm:$0x3]  ;;  %v1020_v63 = vmax.f32 %v1018_v11, 0.0 }
 0x10c   : > { %v4020_v52 = vunpack.i.h.bf16 %v5432_v0  ;;  %v3206_v61 = vunpack.c.l.bf16 %v3203_v3 }
 0x10d   : > { %4264 = vset.pattern.permute.xlu1 %v6674_v44  ;;  %v5465_v35 = vadd.f32 %v1205_v36, %v1191_v1  ;;  %6685 = vst [vmem:[#allocation22_spill] sm:$0xff] %v5486_v50  ;;  %v5505_v1 = vrot.slane %v1286_v23, %v4951_v29  ;;  %v1421_v36 = vunpack.c.l.bf16 %v3641_v31  ;;  %4521 = vperm.xlu0 %4502, %v5486_v50   ;;  %v1481_v31 = vunpack.c.l.bf16 %v3644_v26 }
 0x10e   : > { %4266 = vperm.xlu1 %4264, %v4916_v8   ;;  %v3638_v8 = vld [vmem:[%s6604_s3 + $0xa] sm:$0x3] }
 0x10f   : > { %v1142_v48 = vld [vmem:[#allocation2 + $0x8] sm:$0xf]  ;;  %6684 = vst [vmem:[#allocation21_spill] sm:$0xff] %v5465_v35  ;;  %v1353_v51 = vunpack.c.l.bf16 %v3638_v8  ;;  %v6636_v46 = vrot.slane %v5465_v35, 2  ;;  %v5510_v8 = vpop.permute.xlu0 %4040  ;;  %v5537_v25 = vrot.slane %v1421_v36, %v4951_v29 }
 0x110   : > { %v1151_v22 = vadd.f32 %v6622_v60, %v1142_v48  ;;  %v5457_v62 = vpop.permute.xlu1 %4023  ;;  %v5493_v48 = vrot.slane %v1226_v54, %v4956_v32  ;;  %v3205_v54 = vunpack.c.l.bf16 %v3202_v38  ;;  %v3647_v38 = vld [vmem:[%s6604_s3 + $0x10] sm:$0x3]  ;;  %v4043_v59 = vunpack.i.h.bf16 %v5510_v8 }
 0x111   : > { %v4026_v18 = vunpack.i.h.bf16 %v5457_v62  ;;  %v5518_v5 = vrot.slane %v1353_v51, %v4951_v29  ;;  %v5534_v26 = vrot.slane %v1353_v51, %v4956_v32  ;;  %6687 = vst [vmem:[#allocation24_spill] sm:$0xff] %v5537_v25  ;;  %4531 = vset.pattern.permute.xlu0 %v6672_v16 }
 0x112   : > { %1153 = vst [vmem:[#allocation2 + $0x8] sm:$0xf] %v1151_v22  ;;  %4276 = vset.pattern.permute.xlu1 %v6671_v58  ;;  %v5502_v22 = vrot.slane %v1286_v23, %v4956_v32  ;;  %v5515_v23 = vrot.slane %v1353_v51, %v4941_v24  ;;  %v5527_v3 = vpack.i.bf16 %v3206_v61, %v3205_v54  ;;  %v3984_v54 = vunpack.i.l.bf16 %v5358_v41 }
 0x113   : > { %4278 = vperm.xlu1 %4276, %v4923_v13   ;;  %v1256_v11 = vmul.f32 %v4026_v18, %v5482_v4  ;;  %v5545_v18 = vunpack.c.l.bf16 %v3647_v38  ;;  %4533 = vperm.xlu0 %4531, %v5486_v50   ;;  %v3732_v51 = vpack.c.bf16 %v1020_v63, %v1020_v63  ;;  %v4058_v61 = vpop.permute.xlu0 %4057  ;;  %v1272_v38 = vmul.f32 %v4031_v39, %v5493_v48 }
 0x114   : > { %6686 = vst [vmem:[#allocation23_spill] sm:$0xff] %v5527_v3  ;;  %v5561_v50 = vrot.slane %v1481_v31, %v4956_v32  ;;  %v3967_v41 = vunpack.i.l.bf16 %v5326_v9  ;;  %v1316_v43 = vmul.f32 %v4043_v59, %v5505_v1  ;;  %v4001_v9 = vunpack.i.l.bf16 %v5405_v57 }
 0x115   : > { %v5484_v37 = vpop.permute.xlu1 %4034  ;;  %1030 = vst [vmem:[%s5387_s24 + $0x4] sm:$0x3] %v3732_v51  ;;  %v3262_v51 = vld [vmem:[%s5478_s27] sm:$0xf]  ;;  %v4060_v35 = vunpack.i.h.bf16 %v4058_v61  ;;  %v4059_v25 = vunpack.i.l.bf16 %v4058_v61  ;;  %v4007_v61 = vunpack.i.l.bf16 %v5413_v33 }
 0x116   : > { %v4037_v34 = vunpack.i.h.bf16 %v5484_v37 }
 0x117   : > { %4282 = vset.pattern.permute.xlu1 %v6674_v44  ;;  %v4070_v59 = vpop.permute.xlu0 %4069  ;;  %4550 = vperm.xlu0 %4531, %v5527_v3  }
 0x118   : > { %4284 = vperm.xlu1 %4282, %v4923_v13   ;;  %v1242_v13 = vmul.f32 %v4020_v52, %v5468_v28  ;;  %v5543_v52 = vrot.slane %v1421_v36, %v4941_v24  ;;  %v1302_v63 = vmul.f32 %v4037_v34, %v5496_v2  ;;  %v4030_v34 = vunpack.i.l.bf16 %v5470_v30 }
 0x119   : > { %v1209_v60 = vld [vmem:[#allocation2 + $0x8] sm:$0xf] }
 0x11a   : > { %v1218_v42 = vadd.f32 %v6636_v46, %v1209_v60  ;;  %v5530_v7 = vpop.permute.xlu1 %4046  ;;  %v3972_v60 = vunpack.i.l.bf16 %v5346_v19  ;;  %v5551_v46 = vrot.slane %v1421_v36, %v4956_v32  ;;  %v5554_v19 = vrot.slane %v1481_v31, %v4941_v24 }
 0x11b   : > { %v1258_v56 = vadd.f32 %v1256_v11, %v1242_v13  ;;  %v3990_v36 = vunpack.i.l.bf16 %v5368_v10  ;;  %v4049_v39 = vunpack.i.h.bf16 %v5530_v7  ;;  %v1107_v11 = vmul.f32 %v3984_v54, %v5379_v27  ;;  %4560 = vset.pattern.permute.xlu0 %v6674_v44 }
 0x11c   : > { %1220 = vst [vmem:[#allocation2 + $0x8] sm:$0xf] %v1218_v42  ;;  %4293 = vset.pattern.permute.xlu1 %v6671_v58  ;;  %6688 = vst [vmem:[#allocation25_spill] sm:$0xff] %v5551_v46  ;;  %v5557_v42 = vrot.slane %v1481_v31, %v4951_v29  ;;  %v1065_v13 = vmul.f32 %v3972_v60, %v5365_v49  ;;  %v5574_v31 = vrot.slane %v5545_v18, %v4941_v24  ;;  %v3263_v29 = vld [vmem:[%s5478_s27 + $0x4] sm:$0x7] }
 0x11d   : > { %4295 = vperm.xlu1 %4293, %v4933_v20   ;;  %v4013_v10 = vunpack.i.l.bf16 %v5426_v55  ;;  %v1274_v49 = vadd.f32 %v1272_v38, %v1258_v56  ;;  %v4042_v60 = vunpack.i.l.bf16 %v5510_v8  ;;  %v1051_v27 = vmul.f32 %v3967_v41, %v5361_v12  ;;  %v4087_v41 = vpop.permute.xlu0 %4086 }
 0x11e   : > { %6689 = vst [vmem:[#allocation26_spill] sm:$0xff] %v5574_v31  ;;  %v1121_v57 = vmul.f32 %v3990_v36, %v5376_v6  ;;  %v3996_v55 = vunpack.i.l.bf16 %v5396_v21  ;;  %v1318_v54 = vadd.f32 %v1316_v43, %v1302_v63  ;;  %v1332_v31 = vmul.f32 %v4049_v39, %v5502_v22 }
 0x11f   : > { %v5568_v46 = vpop.permute.xlu1 %4052  ;;  %v3265_v56 = vunpack.c.l.bf16 %v3262_v51  ;;  %v3266_v38 = vunpack.c.l.bf16 %v3263_v29  ;;  %v1174_v8 = vmul.f32 %v4001_v9, %v5418_v45  ;;  %v5599_v12 = vrot.slane %v5545_v18, %v4956_v32 }
 0x120   : > { %v5602_v43 = vmul.f32 %v4030_v34, %v5493_v48  ;;  %v1315_v6 = vmul.f32 %v4042_v60, %v5505_v1  ;;  %v4055_v29 = vunpack.i.h.bf16 %v5568_v46  ;;  %v4072_v21 = vunpack.i.h.bf16 %v4070_v59  ;;  %v6690_v48 = vld [vmem:[#allocation8_spill] sm:$0xff]  ;;  %v3330_v34 = vld [vmem:[%s5478_s27 + $0x4] sm:$0x7] }
 0x121   : > { %4305 = vset.pattern.permute.xlu1 %v6672_v16  ;;  %v5608_v33 = vadd.f32 %v1065_v13, %v1051_v27  ;;  %v1383_v45 = vmul.f32 %v4060_v35, %v5518_v5  ;;  %v1123_v1 = vadd.f32 %v1121_v57, %v1107_v11  ;;  %v1137_v36 = vmul.f32 %v3996_v55, %v5394_v53  ;;  %v3329_v35 = vld [vmem:[%s5478_s27] sm:$0xe]  ;;  %v4099_v55 = vpop.permute.xlu0 %4098 }
 0x122   : > { %4307 = vperm.xlu1 %4305, %v4933_v20   ;;  %v5593_v20 = vmul.f32 %v4013_v10, %v5437_v15  ;;  %v1382_v15 = vmul.f32 %v4059_v25, %v5518_v5  ;;  %v5614_v63 = vadd.f32 %v1332_v31, %v1318_v54  ;;  %v5616_v39 = vpack.i.bf16 %v3266_v38, %v3265_v56 }
 0x123   : > { %v1276_v30 = vld [vmem:[#allocation2 + $0x8] sm:$0xf]  ;;  %v1188_v9 = vmul.f32 %v4007_v61, %v5422_v14  ;;  %v4036_v13 = vunpack.i.l.bf16 %v5484_v37  ;;  %v3978_v25 = vunpack.i.l.bf16 %v5348_v47  ;;  %v1369_v5 = vmul.f32 %v4055_v29, %v5515_v23 }
 0x124   : > { %v1278_v24 = vadd.f32 %v1276_v30, %v1274_v49  ;;  %v5595_v3 = vpop.permute.xlu1 %4063  ;;  %6691 = vst [vmem:[#allocation8_spill] sm:$0xff] %v5616_v39  ;;  %v5628_v53 = vmul.f32 %v4072_v21, %v5543_v52  ;;  %v4054_v31 = vunpack.i.l.bf16 %v5568_v46  ;;  %4562 = vperm.xlu0 %4560, %v5616_v39   ;;  %v3332_v14 = vunpack.c.l.bf16 %v3329_v35 }
 0x125   : > { %v4066_v11 = vunpack.i.h.bf16 %v5595_v3  ;;  %v3333_v37 = vunpack.c.l.bf16 %v3330_v34  ;;  %v1139_v51 = vadd.f32 %v1137_v36, %v1123_v1  ;;  %v1340_v47 = vrot.slane %v5614_v63, 1  ;;  %v6693_v36 = vld [vmem:[#allocation9_spill] sm:$0xff] }
 0x126   : > { %1280 = vst [vmem:[#allocation2 + $0x8] sm:$0xf] %v1278_v24  ;;  %4311 = vset.pattern.permute.xlu1 %v6671_v58  ;;  %v4071_v24 = vunpack.i.l.bf16 %v4070_v59  ;;  %v4089_v49 = vunpack.i.h.bf16 %v4087_v41  ;;  %v4088_v60 = vunpack.i.l.bf16 %v4087_v41  ;;  %v1190_v27 = vadd.f32 %v1188_v9, %v1174_v8 }
 0x127   : > { %4313 = vperm.xlu1 %4311, %v6690_v48   ;;  %v1301_v46 = vmul.f32 %v4036_v13, %v5496_v2  ;;  %v5640_v30 = vpack.i.bf16 %v3333_v37, %v3332_v14  ;;  %v4019_v54 = vunpack.i.l.bf16 %v5432_v0  ;;  %v1385_v38 = vadd.f32 %v1383_v45, %v1369_v5 }
 0x128   : > { %v5632_v59 = vmul.f32 %v4071_v24, %v5543_v52  ;;  %v4048_v52 = vunpack.i.l.bf16 %v5530_v7  ;;  %v1399_v61 = vmul.f32 %v4066_v11, %v5534_v26  ;;  %v1081_v8 = vmul.f32 %v3978_v25, %v5373_v17 }
 0x129   : > { %v5620_v10 = vpop.permute.xlu1 %4075  ;;  %6692 = vst [vmem:[#allocation27_spill] sm:$0xff] %v5640_v30  ;;  %v4025_v21 = vunpack.i.l.bf16 %v5457_v62  ;;  %v1368_v2 = vmul.f32 %v4054_v31, %v5515_v23  ;;  %v4065_v7 = vunpack.i.l.bf16 %v5595_v3  ;;  %v4101_v0 = vunpack.i.h.bf16 %v4099_v55  ;;  %4579 = vperm.xlu0 %4560, %v5640_v30  }
 0x12a   : > { %v4100_v24 = vunpack.i.l.bf16 %v4099_v55  ;;  %v1145_v45 = vrot.slane %v1139_v51, 1  ;;  %v1331_v41 = vmul.f32 %v4048_v52, %v5502_v22  ;;  %v1317_v1 = vadd.f32 %v1315_v6, %v1301_v46 }
 0x12b   : > { %4322 = vset.pattern.permute.xlu1 %v6672_v16  ;;  %v1206_v17 = vadd.f32 %v5593_v20, %v1190_v27  ;;  %v1241_v62 = vmul.f32 %v4019_v54, %v5468_v28  ;;  %v5658_v23 = vadd.f32 %v1399_v61, %v1385_v38  ;;  %v1496_v3 = vmul.f32 %v4088_v60, %v5554_v19 }
 0x12c   : > { %4324 = vperm.xlu1 %4322, %v6690_v48   ;;  %v1497_v48 = vmul.f32 %v4089_v49, %v5554_v19  ;;  %v1255_v9 = vmul.f32 %v4025_v21, %v5482_v4  ;;  %v1384_v13 = vadd.f32 %v1382_v15, %v1368_v2  ;;  %v1398_v35 = vmul.f32 %v4065_v7, %v5534_v26  ;;  %v4116_v15 = vpop.permute.xlu0 %4115 }
 0x12d   : > { %v1336_v57 = vld [vmem:[#allocation2 + $0x8] sm:$0xf]  ;;  %v4078_v22 = vunpack.i.h.bf16 %v5620_v10  ;;  %v1083_v34 = vadd.f32 %v1081_v8, %v5608_v33  ;;  %v1527_v28 = vmul.f32 %v4101_v0, %v5561_v50  ;;  %v6694_v5 = vrot.slane %v5429_v40, 1  ;;  %4589 = vset.pattern.permute.xlu0 %v6672_v16  ;;  %v6696_v8 = vld [vmem:[#allocation21_spill] sm:$0xff] }
 0x12e   : > { %v1345_v56 = vadd.f32 %v1340_v47, %v1336_v57  ;;  %v5646_v29 = vpop.permute.xlu1 %4081  ;;  %v1333_v11 = vadd.f32 %v1331_v41, %v1317_v1  ;;  %v4077_v31 = vunpack.i.l.bf16 %v5620_v10  ;;  %v1526_v4 = vmul.f32 %v4100_v24, %v5561_v50  ;;  %v6695_v10 = vld [vmem:[#allocation24_spill] sm:$0xff]  ;;  %v6698_v41 = vld [vmem:[#allocation25_spill] sm:$0xff] }
 0x12f   : > { %v1147_v19 = vsel %vm534_vm0, %v1145_v45, %v6694_v5  ;;  %v1212_v26 = vrot.slane %v1206_v17, 2  ;;  %v1407_v14 = vrot.slane %v5658_v23, 2  ;;  %v1257_v40 = vadd.f32 %v1255_v9, %v1241_v62  ;;  %v6700_v62 = vld [vmem:[#allocation7_spill] sm:$0xff] }
 0x130   : > { %1347 = vst [vmem:[#allocation2 + $0x8] sm:$0xf] %v1345_v56  ;;  %4334 = vset.pattern.permute.xlu1 %v6674_v44  ;;  %v1400_v49 = vadd.f32 %v1398_v35, %v1384_v13  ;;  %v1451_v60 = vmul.f32 %v4078_v22, %v6695_v10  ;;  %v4084_v50 = vunpack.i.h.bf16 %v5646_v29  ;;  %v4118_v55 = vunpack.i.h.bf16 %v4116_v15  ;;  %v6701_v22 = vld [vmem:[#allocation26_spill] sm:$0xff] }
 0x131   : > { %4336 = vperm.xlu1 %4334, %v6693_v36   ;;  %v1339_v54 = vrot.slane %v1333_v11, 1  ;;  %v1450_v56 = vmul.f32 %v4077_v31, %v6695_v10  ;;  %v4117_v38 = vunpack.i.l.bf16 %v4116_v15  ;;  %v1150_v61 = vadd.f32 %v1147_v19, %v1083_v34  ;;  %v6702_v31 = vld [vmem:[#allocation11_spill] sm:$0xff] }
 0x132   : > { %v6697_v21 = vrot.slane %v6696_v8, 2  ;;  %v1406_v24 = vrot.slane %v1400_v49, 2  ;;  %v1453_v45 = vadd.f32 %v1451_v60, %v5628_v53  ;;  %v1467_v1 = vmul.f32 %v4084_v50, %v6698_v41 }
 0x133   : > { %v4093_v6 = vpop.permute.xlu1 %4092  ;;  %v1576_v23 = vrot.slane %v5545_v18, %v6700_v62  ;;  %v1341_v13 = vsel %vm534_vm0, %v1339_v54, %v1340_v47  ;;  %v1593_v19 = vmul.f32 %v4117_v38, %v5599_v12  ;;  %v1629_v54 = vld [vmem:[%s6604_s3] sm:$0x3]  ;;  %v6704_v38 = vld [vmem:[#allocation17_spill] sm:$0xff] }
 0x134   : > { %v4095_v25 = vunpack.i.h.bf16 %v4093_v6  ;;  %v4094_v20 = vunpack.i.l.bf16 %v4093_v6  ;;  %v1214_v2 = vsel %vm603_vm1, %v1212_v26, %v6697_v21  ;;  %v1408_v18 = vsel %vm603_vm1, %v1406_v24, %v1407_v14  ;;  %v5718_v21 = vpop.permute.xlu0 %4127 }
 0x135   : > { %4340 = vset.pattern.permute.xlu1 %v6672_v16  ;;  %v1217_v9 = vadd.f32 %v1214_v2, %v1150_v61  ;;  %v1469_v5 = vadd.f32 %v1467_v1, %v1453_v45  ;;  %v4130_v1 = vunpack.i.h.bf16 %v5718_v21 }
 0x136   : > { %v1511_v33 = vmul.f32 %v4095_v25, %v5557_v42  ;;  %v1510_v37 = vmul.f32 %v4094_v20, %v5557_v42  ;;  %4342 = vperm.xlu1 %4340, %v6693_v36   ;;  %v4083_v42 = vunpack.i.l.bf16 %v5646_v29  ;;  %v6699_v36 = vld [vmem:[#allocation10_spill] sm:$0xff] }
 0x137   : > { %v1403_v51 = vld [vmem:[#allocation2 + $0x8] sm:$0xf] }
 0x138   : > { %v1412_v27 = vadd.f32 %v1407_v14, %v1403_v51  ;;  %v1512_v57 = vadd.f32 %v1510_v37, %v1496_v3  ;;  %v1513_v46 = vadd.f32 %v1511_v33, %v1497_v48  ;;  %v4105_v52 = vpop.permute.xlu1 %4104  ;;  %v1273_v48 = vadd.f32 %v5602_v43, %v1257_v40 }
 0x139   : > { %v4107_v7 = vunpack.i.h.bf16 %v4105_v52  ;;  %v4106_v0 = vunpack.i.l.bf16 %v4105_v52  ;;  %v1594_v3 = vmul.f32 %v4118_v55, %v5599_v12  ;;  %v1452_v43 = vadd.f32 %v1450_v56, %v5632_v59  ;;  %v6703_v56 = vld [vmem:[#allocation12_spill] sm:$0xff] }
 0x13a   : > { %1414 = vst [vmem:[#allocation2 + $0x8] sm:$0xf] %v1412_v27  ;;  %4351 = vset.pattern.permute.xlu1 %v6674_v44  ;;  %v1528_v29 = vadd.f32 %v1526_v4, %v1512_v57  ;;  %v1529_v17 = vadd.f32 %v1527_v28, %v1513_v46  ;;  %v1466_v53 = vmul.f32 %v4083_v42, %v6698_v41 }
 0x13b   : > { %4353 = vperm.xlu1 %4351, %v6699_v36   ;;  %v1564_v6 = vmul.f32 %v4107_v7, %v6701_v22  ;;  %v1563_v34 = vmul.f32 %v4106_v0, %v6701_v22  ;;  %v1277_v28 = vadd.f32 %v1273_v48, %v1217_v9  ;;  %v1632_v7 = vunpack.c.l.bf16 %v1629_v54  ;;  %v3656_v48 = vld [vmem:[%s6604_s3 + $0x2] sm:$0x3] }
 0x13c   : > { %v1534_v63 = vrot.slane %v1528_v29, 1  ;;  %v1535_v47 = vrot.slane %v1529_v17, 1  ;;  %v1468_v26 = vadd.f32 %v1466_v53, %v1452_v43  ;;  %v1688_v45 = vunpack.c.l.bf16 %v3656_v48  ;;  %v6705_v36 = vld [vmem:[#allocation6_spill] sm:$0xff] }
 0x13d   : > { %v4111_v35 = vpop.permute.xlu1 %4110  ;;  %v1344_v4 = vadd.f32 %v1341_v13, %v1277_v28  ;;  %v5728_v41 = vrot.slane %v1632_v7, %v6700_v62  ;;  %v5733_v29 = vrot.slane %v1632_v7, %v6705_v36  ;;  %v6706_v13 = vld [vmem:[#allocation13_spill] sm:$0xff] }
 0x13e   : > { %v4113_v25 = vunpack.i.h.bf16 %v4111_v35  ;;  %v4112_v20 = vunpack.i.l.bf16 %v4111_v35  ;;  %v1536_v12 = vsel %vm534_vm0, %v1534_v63, %v1535_v47  ;;  %v5742_v9 = vrot.slane %v1688_v45, %v6705_v36 }
 0x13f   : > { %4363 = vset.pattern.permute.xlu1 %v6671_v58  ;;  %v1411_v14 = vadd.f32 %v1408_v18, %v1344_v4  ;;  %v1662_v53 = vmul.f32 %v4130_v1, %v5728_v41  ;;  %v5747_v35 = vrot.slane %v1632_v7, %v4956_v32  ;;  %v5750_v22 = vrot.slane %v1688_v45, %v6700_v62  ;;  %v3665_v7 = vld [vmem:[%s6604_s3 + $0x8] sm:$0x3] }
 0x140   : > { %v1578_v59 = vmul.f32 %v4113_v25, %v1576_v23  ;;  %v1577_v11 = vmul.f32 %v4112_v20, %v1576_v23  ;;  %4365 = vperm.xlu1 %4363, %v6702_v31   ;;  %v5736_v23 = vpop.permute.xlu0 %4144  ;;  %v5764_v63 = vrot.slane %v1688_v45, %v4956_v32 }
 0x141   : > { %v1471_v15 = vld [vmem:[#allocation2 + $0x8] sm:$0xf]  ;;  %v1472_v60 = vadd.f32 %v1468_v26, %v1411_v14  ;;  %v6707_v14 = vld [vmem:[#allocation14_spill] sm:$0xff] }
 0x142   : > { %v1473_v33 = vadd.f32 %v1471_v15, %v1469_v5  ;;  %v1579_v37 = vadd.f32 %v1577_v11, %v1563_v34  ;;  %v1580_v40 = vadd.f32 %v1578_v59, %v1564_v6  ;;  %v5704_v51 = vpop.permute.xlu1 %4121  ;;  %v4147_v6 = vunpack.i.h.bf16 %v5736_v23  ;;  %v3659_v5 = vld [vmem:[%s6604_s3 + $0x4] sm:$0x3] }
 0x143   : > { %v1539_v57 = vadd.f32 %v1536_v12, %v1472_v60  ;;  %v4124_v17 = vunpack.i.h.bf16 %v5704_v51  ;;  %v1755_v15 = vunpack.c.l.bf16 %v3659_v5 }
 0x144   : > { %1475 = vst [vmem:[#allocation2 + $0x8] sm:$0xf] %v1473_v33  ;;  %v1596_v49 = vadd.f32 %v1594_v3, %v1580_v40  ;;  %v1595_v10 = vadd.f32 %v1593_v19, %v1579_v37  ;;  %4369 = vset.pattern.permute.xlu1 %v6674_v44  ;;  %v1718_v19 = vmul.f32 %v4147_v6, %v5750_v22  ;;  %v5770_v4 = vpop.permute.xlu0 %4156 }
 0x145   : > { %4371 = vperm.xlu1 %4369, %v6702_v31   ;;  %v1648_v25 = vmul.f32 %v4124_v17, %v5733_v29  ;;  %v5782_v60 = vrot.slane %v1755_v15, %v6705_v36  ;;  %v3668_v17 = vld [vmem:[%s6604_s3 + $0xa] sm:$0x3] }
 0x146   : > { %v1602_v50 = vrot.slane %v1596_v49, 2  ;;  %v1601_v27 = vrot.slane %v1595_v10, 2  ;;  %v5778_v49 = vrot.slane %v1755_v15, %v6700_v62  ;;  %v1949_v5 = vunpack.c.l.bf16 %v3668_v17 }
 0x147   : > { %v5709_v46 = vpop.permute.xlu1 %4133 }
 0x148   : > { %v1603_v52 = vsel %vm603_vm1, %v1601_v27, %v1602_v50  ;;  %v4136_v20 = vunpack.i.h.bf16 %v5709_v46  ;;  %v5785_v27 = vpop.permute.xlu0 %4173 }
 0x149   : > { %v1606_v55 = vadd.f32 %v1603_v52, %v1539_v57  ;;  %4380 = vset.pattern.permute.xlu1 %v6671_v58 }
 0x14a   : > { %4382 = vperm.xlu1 %4380, %v6703_v56   ;;  %v1678_v59 = vmul.f32 %v4136_v20, %v5747_v35  ;;  %v6708_v20 = vld [vmem:[#allocation15_spill] sm:$0xff] }
 0x14b   : > { %v1531_v42 = vld [vmem:[#allocation2 + $0x8] sm:$0xf]  ;;  %v1612_v61 = vadd.f32 %v6704_v38, %v1606_v55 }
 0x14c   : > { %v1540_v8 = vadd.f32 %v1535_v47, %v1531_v42  ;;  %v5720_v2 = vpop.permute.xlu1 %4139  ;;  %v1664_v47 = vadd.f32 %v1662_v53, %v1648_v25  ;;  %v3662_v42 = vld [vmem:[%s6604_s3 + $0x6] sm:$0x3]  ;;  %v5809_v1 = vpop.permute.xlu0 %4185  ;;  %v3671_v53 = vld [vmem:[%s6604_s3 + $0xc] sm:$0x3] }
 0x14d   : > { %v1614_v0 = vmax.f32 %v1612_v61, 0.0  ;;  %v4142_v28 = vunpack.i.h.bf16 %v5720_v2  ;;  %v1822_v45 = vunpack.c.l.bf16 %v3662_v42  ;;  %v6709_v42 = vld [vmem:[#allocation16_spill] sm:$0xff] }
 0x14e   : > { %1542 = vst [vmem:[#allocation2 + $0x8] sm:$0xf] %v1540_v8  ;;  %4392 = vset.pattern.permute.xlu1 %v6672_v16  ;;  %v1680_v33 = vadd.f32 %v1678_v59, %v1664_v47  ;;  %v2017_v59 = vunpack.c.l.bf16 %v3671_v53 }
 0x14f   : > { %v3733_v24 = vpack.c.bf16 %v1614_v0, %v1614_v0  ;;  %4394 = vperm.xlu1 %4392, %v6703_v56   ;;  %v1704_v11 = vmul.f32 %v4142_v28, %v5742_v9  ;;  %v5794_v56 = vrot.slane %v1755_v15, %v4956_v32  ;;  %v3674_v28 = vld [vmem:[%s6604_s3 + $0xe] sm:$0x3]  ;;  %v1866_v15 = vrot.slane %v1822_v45, %v4956_v32 }
 0x150   : > { %v5829_v47 = vpop.permute.xlu0 %4202  ;;  %v5872_v17 = vrot.slane %v2017_v59, %v6700_v62 }
 0x151   : > { %3650 = vst [vmem:[%s5387_s24 + $0x8] sm:$0xf] %v3733_v24  ;;  %v5738_v3 = vpop.permute.xlu1 %4150  ;;  %v1720_v37 = vadd.f32 %v1718_v19, %v1704_v11  ;;  %v5827_v19 = vrot.slane %v1822_v45, %v6705_v36  ;;  %v3677_v11 = vld [vmem:[%s6604_s3 + $0x10] sm:$0x3] }
 0x152   : > { %v4153_v31 = vunpack.i.h.bf16 %v5738_v3 }
 0x153   : > { %4398 = vset.pattern.permute.xlu1 %v6671_v58 }
 0x154   : > { %4400 = vperm.xlu1 %4398, %v6706_v13   ;;  %v1734_v40 = vmul.f32 %v4153_v31, %v5764_v63  ;;  %v5835_v31 = vrot.slane %v1822_v45, %v6700_v62 }
 0x155   : > { %v1598_v43 = vld [vmem:[#allocation2 + $0x8] sm:$0xf] }
 0x156   : > { %v1607_v34 = vadd.f32 %v1602_v50, %v1598_v43  ;;  %v5756_v18 = vpop.permute.xlu1 %4162  ;;  %v4159_v50 = vunpack.i.h.bf16 %v5770_v4  ;;  %v5790_v55 = vadd.f32 %v1734_v40, %v1720_v37  ;;  %v1882_v43 = vunpack.c.l.bf16 %v3665_v7  ;;  %v5864_v7 = vpop.permute.xlu0 %4214 }
 0x157   : > { %v4165_v10 = vunpack.i.h.bf16 %v5756_v18  ;;  %v2077_v40 = vunpack.c.l.bf16 %v3674_v28  ;;  %v4141_v28 = vunpack.i.l.bf16 %v5720_v2 }
 0x158   : > { %1609 = vst [vmem:[#allocation2 + $0x8] sm:$0xf] %v1607_v34  ;;  %4409 = vset.pattern.permute.xlu1 %v6672_v16  ;;  %v6652_v24 = vrot.slane %v5790_v55, 1 }
 0x159   : > { %4411 = vperm.xlu1 %4409, %v6706_v13   ;;  %v1785_v61 = vmul.f32 %v4165_v10, %v5778_v49  ;;  %v5881_v53 = vrot.slane %v2077_v40, %v6705_v36 }
 0x15a   : > { %v5903_v2 = vpop.permute.xlu0 %4231 }
 0x15b   : > { %v5772_v26 = vpop.permute.xlu1 %4168 }
 0x15c   : > { %v4171_v8 = vunpack.i.h.bf16 %v5772_v26 }
 0x15d   : > { %4421 = vset.pattern.permute.xlu1 %v6674_v44 }
 0x15e   : > { %4423 = vperm.xlu1 %4421, %v6707_v14   ;;  %v1801_v25 = vmul.f32 %v4171_v8, %v5794_v56  ;;  %v5862_v8 = vrot.slane %v1949_v5, %v4956_v32 }
 0x15f   : > { %v1611_v12 = vld [vmem:[#allocation2 + $0x8] sm:$0xf] }
 0x160   : > { %1682 = vst [vmem:[#allocation2 + $0x8] sm:$0xf] %v1680_v33  ;;  %v1613_v57 = vadd.f32 %v6704_v38, %v1611_v12  ;;  %v5788_v52 = vpop.permute.xlu1 %4179  ;;  %v1771_v38 = vmul.f32 %v4159_v50, %v5782_v60  ;;  %v5839_v33 = vrot.slane %v1882_v43, %v6705_v36  ;;  %v4146_v12 = vunpack.i.l.bf16 %v5736_v23 }
 0x161   : > { %v5848_v50 = vrot.slane %v1882_v43, %v6700_v62  ;;  %v4176_v23 = vunpack.i.h.bf16 %v5785_v27 }
 0x162   : > { %4427 = vset.pattern.permute.xlu1 %v6672_v16  ;;  %v1615_v54 = vmax.f32 %v1613_v57, 0.0  ;;  %v1787_v34 = vadd.f32 %v1785_v61, %v1771_v38  ;;  %v1926_v57 = vrot.slane %v1882_v43, %v4956_v32  ;;  %v5857_v61 = vrot.slane %v1949_v5, %v6700_v62 }
 0x163   : > { %4429 = vperm.xlu1 %4427, %v6707_v14   ;;  %v4129_v14 = vunpack.i.l.bf16 %v5718_v21  ;;  %v2144_v21 = vunpack.c.l.bf16 %v3677_v11  ;;  %v4182_v38 = vunpack.i.h.bf16 %v5788_v52  ;;  %v5878_v43 = vrot.slane %v2077_v40, %v6700_v62 }
 0x164   : > { %v3734_v0 = vpack.c.bf16 %v1615_v54, %v1615_v54  ;;  %v5845_v10 = vadd.f32 %v1801_v25, %v1787_v34  ;;  %v5853_v54 = vrot.slane %v1949_v5, %v6705_v36  ;;  %v1717_v34 = vmul.f32 %v4146_v12, %v5750_v22 }
 0x165   : > { %v5806_v48 = vpop.permute.xlu1 %4191  ;;  %v4164_v5 = vunpack.i.l.bf16 %v5756_v18  ;;  %v1838_v22 = vmul.f32 %v4176_v23, %v5827_v19  ;;  %v4175_v18 = vunpack.i.l.bf16 %v5785_v27  ;;  %v4205_v12 = vunpack.i.h.bf16 %v5829_v47 }
 0x166   : > { %3651 = vst [vmem:[%s5387_s24 + $0xc] sm:$0x3] %v3734_v0  ;;  %v5867_v0 = vrot.slane %v2017_v59, %v6705_v36  ;;  %v6655_v25 = vrot.slane %v5845_v10, 2  ;;  %v5910_v30 = vrot.slane %v2144_v21, %v6700_v62  ;;  %v4194_v23 = vunpack.i.h.bf16 %v5806_v48 }
 0x167   : > { %v1738_v13 = vld [vmem:[#allocation2 + $0x8] sm:$0xf]  ;;  %4438 = vset.pattern.permute.xlu1 %v6674_v44  ;;  %v4152_v27 = vunpack.i.l.bf16 %v5738_v3 }
 0x168   : > { %v1747_v6 = vadd.f32 %v6652_v24, %v1738_v13  ;;  %4440 = vperm.xlu1 %4438, %v6708_v20   ;;  %v5875_v13 = vrot.slane %v2017_v59, %v4956_v32  ;;  %v5889_v20 = vrot.slane %v2077_v40, %v4956_v32  ;;  %v4158_v59 = vunpack.i.l.bf16 %v5770_v4  ;;  %6711 = vst [vmem:[#allocation24_spill] sm:$0xff] %v5910_v30 }
 0x169   : > { %v5896_v24 = vrot.slane %v2144_v21, %v6705_v36  ;;  %v1852_v40 = vmul.f32 %v4182_v38, %v5835_v31  ;;  %v4187_v4 = vunpack.i.l.bf16 %v5809_v1 }
 0x16a   : > { %1749 = vst [vmem:[#allocation2 + $0x8] sm:$0xf] %v1747_v6  ;;  %v5841_v37 = vpop.permute.xlu1 %4197  ;;  %6710 = vst [vmem:[#allocation9_spill] sm:$0xff] %v5875_v13  ;;  %v5884_v6 = vmul.f32 %v4129_v14, %v5728_v41  ;;  %v4188_v14 = vunpack.i.h.bf16 %v5809_v1  ;;  %v1784_v1 = vmul.f32 %v4164_v5, %v5778_v49  ;;  %v1770_v36 = vmul.f32 %v4158_v59, %v5782_v60  ;;  %v4244_v13 = vpop.permute.xlu0 %4243 }
 0x16b   : > { %v4200_v38 = vunpack.i.h.bf16 %v5841_v37  ;;  %v1854_v62 = vadd.f32 %v1852_v40, %v1838_v22  ;;  %v5930_v3 = vmul.f32 %v4187_v4, %v1866_v15  ;;  %v1928_v49 = vmul.f32 %v4205_v12, %v1926_v57 }
 0x16c   : > { %4450 = vset.pattern.permute.xlu1 %v6671_v58  ;;  %v1868_v30 = vmul.f32 %v4188_v14, %v1866_v15  ;;  %v4216_v60 = vunpack.i.l.bf16 %v5864_v7  ;;  %v1786_v15 = vadd.f32 %v1784_v1, %v1770_v36  ;;  %v4193_v4 = vunpack.i.l.bf16 %v5806_v48 }
 0x16d   : > { %4452 = vperm.xlu1 %4450, %v6709_v42   ;;  %v1912_v5 = vmul.f32 %v4200_v38, %v5848_v50  ;;  %v4199_v12 = vunpack.i.l.bf16 %v5841_v37  ;;  %v4135_v37 = vunpack.i.l.bf16 %v5709_v46 }
 0x16f   : > { %v5869_v45 = vpop.permute.xlu1 %4208 }
 0x171   : > { %v1805_v11 = vld [vmem:[#allocation2 + $0x8] sm:$0xf]  ;;  %4456 = vset.pattern.permute.xlu1 %v6674_v44 }
 0x172   : > { %v1814_v41 = vadd.f32 %v6655_v25, %v1805_v11  ;;  %4458 = vperm.xlu1 %4456, %v6709_v42   ;;  %v4204_v11 = vunpack.i.l.bf16 %v5829_v47  ;;  %v4217_v25 = vunpack.i.h.bf16 %v5864_v7  ;;  %v1703_v42 = vmul.f32 %v4141_v28, %v5742_v9  ;;  %v6712_v28 = vld [vmem:[#allocation18_spill] sm:$0xff] }
 0x173   : > { %v5925_v47 = vrot.slane %v2144_v21, %v4956_v32  ;;  %v5928_v9 = vmul.f32 %v4175_v18, %v5827_v19  ;;  %v4123_v21 = vunpack.i.l.bf16 %v5704_v51  ;;  %v1733_v19 = vmul.f32 %v4152_v27, %v5764_v63 }
 0x174   : > { %1816 = vst [vmem:[#allocation2 + $0x8] sm:$0xf] %v1814_v41  ;;  %v5920_v39 = vpop.permute.xlu1 %4220  ;;  %v4170_v41 = vunpack.i.l.bf16 %v5772_v26  ;;  %v1898_v26 = vmul.f32 %v4194_v23, %v5839_v33  ;;  %v5936_v59 = vmul.f32 %v4204_v11, %v1926_v57  ;;  %v1979_v22 = vmul.f32 %v4217_v25, %v5857_v61 }
 0x175   : > { %v1719_v40 = vadd.f32 %v1717_v34, %v1703_v42  ;;  %v1870_v18 = vadd.f32 %v1868_v30, %v1854_v62  ;;  %v4211_v57 = vunpack.i.h.bf16 %v5869_v45  ;;  %v4210_v25 = vunpack.i.l.bf16 %v5869_v45  ;;  %v5953_v62 = vpop.permute.xlu0 %4260 }
 0x176   : > { %4467 = vset.pattern.permute.xlu1 %v6671_v58  ;;  %v1800_v7 = vmul.f32 %v4170_v41, %v5794_v56  ;;  %v1978_v51 = vmul.f32 %v4216_v60, %v5857_v61  ;;  %v4234_v34 = vunpack.i.h.bf16 %v5903_v2  ;;  %v1914_v63 = vadd.f32 %v1912_v5, %v1898_v26 }
 0x177   : > { %4469 = vperm.xlu1 %4467, %v6712_v28   ;;  %v4233_v56 = vunpack.i.l.bf16 %v5903_v2  ;;  %v4246_v30 = vunpack.i.h.bf16 %v4244_v13  ;;  %v1647_v48 = vmul.f32 %v4123_v21, %v5733_v29  ;;  %v4181_v45 = vunpack.i.l.bf16 %v5788_v52 }
 0x178   : > { %v4245_v61 = vunpack.i.l.bf16 %v4244_v13  ;;  %v1735_v38 = vadd.f32 %v1733_v19, %v1719_v40  ;;  %v1802_v11 = vadd.f32 %v1800_v7, %v1786_v15  ;;  %v1897_v42 = vmul.f32 %v4193_v4, %v5839_v33 }
 0x179   : > { %v5941_v14 = vpop.permute.xlu1 %4226  ;;  %v1911_v27 = vmul.f32 %v4199_v12, %v5848_v50  ;;  %v1965_v2 = vmul.f32 %v4211_v57, %v5853_v54  ;;  %v1964_v1 = vmul.f32 %v4210_v25, %v5853_v54  ;;  %v4223_v41 = vunpack.i.h.bf16 %v5920_v39 }
 0x17a   : > { %v4222_v29 = vunpack.i.l.bf16 %v5920_v39  ;;  %v5966_v46 = vadd.f32 %v1928_v49, %v1914_v63  ;;  %v5969_v52 = vmul.f32 %v4234_v34, %v5872_v17  ;;  %v2046_v13 = vmul.f32 %v4233_v56, %v5872_v17  ;;  %v6713_v39 = vld [vmem:[#allocation19_spill] sm:$0xff]  ;;  %v4273_v17 = vpop.permute.xlu0 %4272 }
 0x17b   : > { %v1872_v23 = vld [vmem:[#allocation2 + $0x8] sm:$0xf]  ;;  %4479 = vset.pattern.permute.xlu1 %v6672_v16  ;;  %v2093_v33 = vmul.f32 %v4246_v30, %v5881_v53  ;;  %v1663_v50 = vadd.f32 %v5884_v6, %v1647_v48  ;;  %v1851_v54 = vmul.f32 %v4181_v45, %v5835_v31  ;;  %v4263_v49 = vunpack.i.h.bf16 %v5953_v62 }
 0x17c   : > { %v1874_v36 = vadd.f32 %v1872_v23, %v1870_v18  ;;  %4481 = vperm.xlu1 %4479, %v6712_v28   ;;  %v2092_v28 = vmul.f32 %v4245_v61, %v5881_v53  ;;  %v1677_v26 = vmul.f32 %v4135_v37, %v5747_v35  ;;  %v1741_v5 = vrot.slane %v1735_v38, 1 }
 0x17d   : > { %v1808_v21 = vrot.slane %v1802_v11, 2  ;;  %v1913_v40 = vadd.f32 %v1911_v27, %v1897_v42  ;;  %v1995_v19 = vmul.f32 %v4223_v41, %v5862_v8  ;;  %v1994_v15 = vmul.f32 %v4222_v29, %v5862_v8 }
 0x17e   : > { %1876 = vst [vmem:[#allocation2 + $0x8] sm:$0xf] %v1874_v36  ;;  %v5964_v60 = vpop.permute.xlu1 %4237  ;;  %v1981_v7 = vadd.f32 %v1979_v22, %v1965_v2  ;;  %v1980_v6 = vadd.f32 %v1978_v51, %v1964_v1  ;;  %v1936_v31 = vrot.slane %v5966_v46, 1  ;;  %v4228_v53 = vunpack.i.l.bf16 %v5941_v14 }
 0x17f   : > { %v1853_v23 = vadd.f32 %v1851_v54, %v5928_v9  ;;  %v2160_v57 = vmul.f32 %v4263_v49, %v5896_v24  ;;  %v4262_v25 = vunpack.i.l.bf16 %v5953_v62  ;;  %v4275_v34 = vunpack.i.h.bf16 %v4273_v17  ;;  %v6716_v54 = vld [vmem:[#allocation20_spill] sm:$0xff] }
 0x180   : > { %4485 = vset.pattern.permute.xlu1 %v6671_v58  ;;  %v1929_v8 = vadd.f32 %v5936_v59, %v1913_v40  ;;  %v6714_v63 = vrot.slane %v5790_v55, 1  ;;  %v1997_v56 = vadd.f32 %v1995_v19, %v1981_v7  ;;  %v1996_v30 = vadd.f32 %v1994_v15, %v1980_v6 }
 0x181   : > { %4487 = vperm.xlu1 %4485, %v6713_v39   ;;  %v4274_v48 = vunpack.i.l.bf16 %v4273_v17  ;;  %v1679_v62 = vadd.f32 %v1677_v26, %v1663_v50  ;;  %v6715_v37 = vrot.slane %v5845_v10, 2  ;;  %v2032_v59 = vmul.f32 %v4228_v53, %v5867_v0  ;;  %v6717_v26 = vld [vmem:[#allocation9_spill] sm:$0xff] }
 0x182   : > { %v1743_v9 = vsel %vm534_vm0, %v1741_v5, %v6714_v63  ;;  %v4239_v61 = vunpack.i.l.bf16 %v5964_v60  ;;  %v1869_v2 = vadd.f32 %v5930_v3, %v1853_v23  ;;  %v1935_v1 = vrot.slane %v1929_v8, 1 }
 0x183   : > { %v4250_v18 = vpop.permute.xlu1 %4249  ;;  %v1810_v45 = vsel %vm603_vm1, %v1808_v21, %v6715_v37  ;;  %v1746_v27 = vadd.f32 %v1743_v9, %v1679_v62  ;;  %v4229_v41 = vunpack.i.h.bf16 %v5941_v14  ;;  %v2003_v10 = vrot.slane %v1997_v56, 2  ;;  %v6719_v56 = vld [vmem:[#allocation22_spill] sm:$0xff] }
 0x184   : > { %v4252_v4 = vunpack.i.h.bf16 %v4250_v18  ;;  %v4251_v12 = vunpack.i.l.bf16 %v4250_v18  ;;  %v2002_v29 = vrot.slane %v1996_v30, 2  ;;  %v2189_v3 = vmul.f32 %v4274_v48, %v5925_v47 }
 0x185   : > { %v1932_v35 = vld [vmem:[#allocation2 + $0x8] sm:$0xf]  ;;  %4496 = vset.pattern.permute.xlu1 %v6672_v16  ;;  %v2048_v49 = vadd.f32 %v2046_v13, %v2032_v59  ;;  %v2062_v14 = vmul.f32 %v4239_v61, %v6717_v26  ;;  %v1937_v19 = vsel %vm534_vm0, %v1935_v1, %v1936_v31  ;;  %v4240_v18 = vunpack.i.h.bf16 %v5964_v60 }
 0x186   : > { %v1941_v22 = vadd.f32 %v1936_v31, %v1932_v35  ;;  %v2107_v51 = vmul.f32 %v4252_v4, %v5878_v43  ;;  %v2106_v36 = vmul.f32 %v4251_v12, %v5878_v43  ;;  %4498 = vperm.xlu1 %4496, %v6713_v39   ;;  %v2190_v39 = vmul.f32 %v4275_v34, %v5925_v47  ;;  %v6718_v4 = vld [vmem:[#allocation24_spill] sm:$0xff] }
 0x187   : > { %v2004_v6 = vsel %vm603_vm1, %v2002_v29, %v2003_v10  ;;  %v2064_v35 = vadd.f32 %v2062_v14, %v2048_v49 }
 0x188   : > { %1943 = vst [vmem:[#allocation2 + $0x8] sm:$0xf] %v1941_v22  ;;  %v4256_v43 = vpop.permute.xlu1 %4255  ;;  %v2109_v38 = vadd.f32 %v2107_v51, %v2093_v33  ;;  %v2108_v11 = vadd.f32 %v2106_v36, %v2092_v28  ;;  %v1813_v33 = vadd.f32 %v1810_v45, %v1746_v27  ;;  %v2159_v28 = vmul.f32 %v4262_v25, %v5896_v24 }
 0x189   : > { %v4258_v42 = vunpack.i.h.bf16 %v4256_v43  ;;  %v4257_v55 = vunpack.i.l.bf16 %v4256_v43  ;;  %v2033_v24 = vmul.f32 %v4229_v41, %v5867_v0  ;;  %v2063_v22 = vmul.f32 %v4240_v18, %v6717_v26  ;;  %v6720_v43 = vld [vmem:[#allocation23_spill] sm:$0xff]  ;;  %v2225_v41 = vld [vmem:[%s6604_s3] sm:$0x3] }
 0x18a   : > { %4508 = vset.pattern.permute.xlu1 %v6674_v44  ;;  %v1873_v17 = vadd.f32 %v1869_v2, %v1813_v33  ;;  %v6723_v26 = vld [vmem:[#allocation7_spill] sm:$0xff] }
 0x18b   : > { %v2123_v46 = vmul.f32 %v4258_v42, %v5889_v20  ;;  %v2122_v50 = vmul.f32 %v4257_v55, %v5889_v20  ;;  %4510 = vperm.xlu1 %4508, %v6716_v54   ;;  %v2049_v60 = vadd.f32 %v5969_v52, %v2033_v24 }
 0x18c   : > { %v1940_v31 = vadd.f32 %v1937_v19, %v1873_v17 }
 0x18d   : > { %v2124_v5 = vadd.f32 %v2122_v50, %v2108_v11  ;;  %v2125_v21 = vadd.f32 %v2123_v46, %v2109_v38  ;;  %v4267_v40 = vpop.permute.xlu1 %4266  ;;  %v2065_v37 = vadd.f32 %v2063_v22, %v2049_v60  ;;  %v6033_v38 = vld [vmem:[%s6605_s4] ss:$0 sm:$0xff]  ;;  %v6721_v46 = vld [vmem:[#allocation8_spill] sm:$0xff]  ;;  %v2228_v50 = vunpack.c.l.bf16 %v2225_v41  ;;  %v3698_v41 = vld [vmem:[%s6604_s3 + $0xa] sm:$0x3] }
 0x18e   : > { %v4269_v15 = vunpack.i.h.bf16 %v4267_v40  ;;  %v4268_v20 = vunpack.i.l.bf16 %v4267_v40  ;;  %v2007_v0 = vadd.f32 %v2004_v6, %v1940_v31 }
 0x18f   : > { %v1999_v7 = vld [vmem:[#allocation2 + $0x8] sm:$0xf]  ;;  %v2130_v53 = vrot.slane %v2124_v5, 1  ;;  %4514 = vset.pattern.permute.xlu1 %v6672_v16  ;;  %v2131_v13 = vrot.slane %v2125_v21, 1  ;;  %v6064_v14 = vrot.slane %v2228_v50, %v6723_v26  ;;  %v2272_v19 = vrot.slane %v2228_v50, %v4956_v32 }
 0x190   : > { %v2008_v47 = vadd.f32 %v2003_v10, %v1999_v7  ;;  %v2174_v12 = vmul.f32 %v4269_v15, %v6718_v4  ;;  %v2173_v23 = vmul.f32 %v4268_v20, %v6718_v4  ;;  %4516 = vperm.xlu1 %4514, %v6716_v54   ;;  %v2068_v9 = vadd.f32 %v2064_v35, %v2007_v0  ;;  %v6046_v10 = vpop.permute.xlu0 %4289  ;;  %v3689_v4 = vld [vmem:[%s6604_s3 + $0x4] sm:$0x3] }
 0x191   : > { %v2132_v51 = vsel %vm534_vm0, %v2130_v53, %v2131_v13  ;;  %v4292_v15 = vunpack.i.h.bf16 %v6046_v10  ;;  %v2351_v60 = vunpack.c.l.bf16 %v3689_v4 }
 0x192   : > { %2010 = vst [vmem:[#allocation2 + $0x8] sm:$0xf] %v2008_v47  ;;  %v2175_v25 = vadd.f32 %v2173_v23, %v2159_v28  ;;  %v2176_v34 = vadd.f32 %v2174_v12, %v2160_v57  ;;  %v6018_v8 = vpop.permute.xlu1 %4278  ;;  %v2135_v62 = vadd.f32 %v2132_v51, %v2068_v9  ;;  %v3692_v9 = vld [vmem:[%s6604_s3 + $0x6] sm:$0x3] }
 0x193   : > { %v4281_v49 = vunpack.i.h.bf16 %v6018_v8  ;;  %v2274_v23 = vmul.f32 %v4292_v15, %v2272_v19 }
 0x194   : > { %v2191_v36 = vadd.f32 %v2189_v3, %v2175_v25  ;;  %v2192_v63 = vadd.f32 %v2190_v39, %v2176_v34  ;;  %4525 = vset.pattern.permute.xlu1 %v6674_v44  ;;  %v6056_v28 = vpop.permute.xlu0 %4301  ;;  %v6722_v39 = vld [vmem:[#allocation6_spill] sm:$0xff] }
 0x195   : > { %4527 = vperm.xlu1 %4525, %v6719_v56   ;;  %v6060_v3 = vrot.slane %v2228_v50, %v6722_v39  ;;  %v4304_v7 = vunpack.i.h.bf16 %v6056_v28 }
 0x196   : > { %v2197_v30 = vrot.slane %v2191_v36, 2  ;;  %v2198_v48 = vrot.slane %v2192_v63, 2 }
 0x197   : > { %v6025_v57 = vpop.permute.xlu1 %4284  ;;  %v2244_v18 = vmul.f32 %v4281_v49, %v6060_v3 }
 0x198   : > { %v2199_v52 = vsel %vm603_vm1, %v2197_v30, %v2198_v48  ;;  %v4287_v5 = vunpack.i.h.bf16 %v6025_v57  ;;  %v6078_v6 = vpop.permute.xlu0 %4318  ;;  %v6107_v30 = vrot.slane %v2351_v60, %v6722_v39 }
 0x199   : > { %v2067_v45 = vld [vmem:[#allocation2 + $0x8] sm:$0xf]  ;;  %v2202_v59 = vadd.f32 %v2199_v52, %v2135_v62  ;;  %4537 = vset.pattern.permute.xlu1 %v6671_v58  ;;  %v2379_v62 = vrot.slane %v2351_v60, %v6723_v26  ;;  %v4320_v15 = vunpack.i.l.bf16 %v6078_v6 }
 0x19a   : > { %v2069_v61 = vadd.f32 %v2067_v45, %v2065_v37  ;;  %4539 = vperm.xlu1 %4537, %v6720_v43   ;;  %v2258_v53 = vmul.f32 %v4287_v5, %v6064_v14  ;;  %v4321_v37 = vunpack.i.h.bf16 %v6078_v6  ;;  %v3695_v52 = vld [vmem:[%s6604_s3 + $0x8] sm:$0x3]  ;;  %v3699_v6 = vld [vmem:[%s6604_s3 + $0xc] sm:$0x3] }
 0x19b   : > { %v2208_v11 = vadd.f32 %v6033_v38, %v2202_v59  ;;  %v2418_v59 = vunpack.c.l.bf16 %v3692_v9 }
 0x19c   : > { %2071 = vst [vmem:[#allocation2 + $0x8] sm:$0xf] %v2069_v61  ;;  %v6036_v42 = vpop.permute.xlu1 %4295  ;;  %v2260_v35 = vadd.f32 %v2258_v53, %v2244_v18 }
 0x19d   : > { %v2210_v55 = vmax.f32 %v2208_v11, 0.0  ;;  %v4298_v47 = vunpack.i.h.bf16 %v6036_v42  ;;  %v4291_v11 = vunpack.i.l.bf16 %v6046_v10  ;;  %v6133_v10 = vrot.slane %v2418_v59, %v6723_v26 }
 0x19e   : > { %4543 = vset.pattern.permute.xlu1 %v6674_v44  ;;  %v3686_v44 = vld [vmem:[%s6604_s3 + $0x2] sm:$0x3]  ;;  %v2276_v51 = vadd.f32 %v2274_v23, %v2260_v35  ;;  %v2432_v49 = vrot.slane %v2418_v59, %v6722_v39 }
 0x19f   : > { %v3735_v27 = vpack.c.bf16 %v2210_v55, %v2210_v55  ;;  %4545 = vperm.xlu1 %4543, %v6720_v43   ;;  %v2284_v33 = vunpack.c.l.bf16 %v3686_v44  ;;  %v6122_v55 = vrot.slane %v2351_v60, %v4956_v32  ;;  %v6142_v18 = vmul.f32 %v4291_v11, %v2272_v19 }
 0x1a1   : > { %3680 = vst [vmem:[%s5387_s24 + $0x10] sm:$0xf] %v3735_v27  ;;  %v6041_v2 = vpop.permute.xlu1 %4307  ;;  %v6068_v21 = vrot.slane %v2284_v33, %v6722_v39  ;;  %v6075_v20 = vrot.slane %v2284_v33, %v6723_v26  ;;  %v6091_v31 = vrot.slane %v2284_v33, %v4956_v32  ;;  %v2478_v27 = vunpack.c.l.bf16 %v3695_v52 }
 0x1a2   : > { %v4310_v34 = vunpack.i.h.bf16 %v6041_v2  ;;  %v4303_v33 = vunpack.i.l.bf16 %v6056_v28  ;;  %v4309_v11 = vunpack.i.l.bf16 %v6041_v2 }
 0x1a3   : > { %v2127_v1 = vld [vmem:[#allocation2 + $0x8] sm:$0xf]  ;;  %4554 = vset.pattern.permute.xlu1 %v6671_v58  ;;  %v2300_v25 = vmul.f32 %v4298_v47, %v6068_v21  ;;  %v2314_v0 = vmul.f32 %v4304_v7, %v6075_v20  ;;  %v6139_v7 = vrot.slane %v2418_v59, %v4956_v32  ;;  %v2492_v47 = vrot.slane %v2478_v27, %v6722_v39 }
 0x1a4   : > { %v2136_v29 = vadd.f32 %v2131_v13, %v2127_v1  ;;  %4556 = vperm.xlu1 %4554, %v6721_v46   ;;  %v6724_v13 = vld [vmem:[#allocation27_spill] sm:$0xff]  ;;  %v2330_v36 = vmul.f32 %v4310_v34, %v6091_v31  ;;  %v4297_v34 = vunpack.i.l.bf16 %v6036_v42 }
 0x1a5   : > { %v2316_v63 = vadd.f32 %v2314_v0, %v2300_v25  ;;  %v2313_v0 = vmul.f32 %v4303_v33, %v6075_v20 }
 0x1a6   : > { %2138 = vst [vmem:[#allocation2 + $0x8] sm:$0xf] %v2136_v29  ;;  %v6053_v54 = vpop.permute.xlu1 %4313 }
 0x1a7   : > { %v6118_v61 = vadd.f32 %v2330_v36, %v2316_v63  ;;  %v2380_v63 = vmul.f32 %v4320_v15, %v2379_v62 }
 0x1a8   : > { %4566 = vset.pattern.permute.xlu1 %v6672_v16 }
 0x1a9   : > { %4568 = vperm.xlu1 %4566, %v6721_v46   ;;  %v2381_v46 = vmul.f32 %v4321_v37, %v2379_v62  ;;  %v2299_v62 = vmul.f32 %v4297_v34, %v6068_v21 }
 0x1ab   : > { %v6070_v40 = vpop.permute.xlu1 %4324 }
 0x1ac   : > { %v4327_v44 = vunpack.i.h.bf16 %v6070_v40 }
 0x1ad   : > { %v2194_v17 = vld [vmem:[#allocation2 + $0x8] sm:$0xf]  ;;  %4572 = vset.pattern.permute.xlu1 %v6671_v58  ;;  %v6093_v58 = vpop.permute.xlu0 %4330 }
 0x1ae   : > { %v2203_v24 = vadd.f32 %v2198_v48, %v2194_v17  ;;  %4574 = vperm.xlu1 %4572, %v6724_v13   ;;  %v2338_v17 = vrot.slane %v6118_v61, 1  ;;  %v4332_v28 = vunpack.i.l.bf16 %v6093_v58  ;;  %v2397_v19 = vmul.f32 %v4327_v44, %v6122_v55 }
 0x1af   : > { %v4333_v25 = vunpack.i.h.bf16 %v6093_v58 }
 0x1b0   : > { %2205 = vst [vmem:[#allocation2 + $0x8] sm:$0xf] %v2203_v24  ;;  %v6088_v12 = vpop.permute.xlu1 %4336  ;;  %v2545_v24 = vunpack.c.l.bf16 %v3698_v41  ;;  %v6166_v37 = vmul.f32 %v4332_v28, %v2432_v49  ;;  %v4286_v28 = vunpack.i.l.bf16 %v6025_v57 }
 0x1b1   : > { %v6109_v48 = vpop.permute.xlu0 %4347 }
 0x1b2   : > { %4583 = vset.pattern.permute.xlu1 %v6672_v16  ;;  %v4316_v16 = vunpack.i.h.bf16 %v6053_v54  ;;  %v4350_v60 = vunpack.i.h.bf16 %v6109_v48  ;;  %v4349_v9 = vunpack.i.l.bf16 %v6109_v48  ;;  %v6169_v42 = vrot.slane %v2545_v24, %v6723_v26  ;;  %v3700_v48 = vld [vmem:[%s6604_s3 + $0xe] sm:$0x3] }
 0x1b3   : > { %4585 = vperm.xlu1 %4583, %v6724_v13   ;;  %v6147_v13 = vrot.slane %v2478_v27, %v6723_v26  ;;  %v2589_v20 = vrot.slane %v2545_v24, %v4956_v32  ;;  %v2672_v2 = vunpack.c.l.bf16 %v3700_v48 }
 0x1b4   : > { %v2367_v29 = vmul.f32 %v4316_v16, %v6107_v30  ;;  %v2612_v16 = vunpack.c.l.bf16 %v3699_v6  ;;  %v6180_v41 = vmul.f32 %v4350_v60, %v2492_v47  ;;  %v2493_v44 = vmul.f32 %v4349_v9, %v2492_v47 }
 0x1b5   : > { %v6100_v22 = vpop.permute.xlu1 %4342  ;;  %v4360_v5 = vpop.permute.xlu0 %4359  ;;  %v2329_v47 = vmul.f32 %v4309_v11, %v6091_v31  ;;  %v2315_v6 = vadd.f32 %v2313_v0, %v2299_v62 }
 0x1b6   : > { %v2383_v35 = vadd.f32 %v2381_v46, %v2367_v29  ;;  %v4362_v58 = vunpack.i.h.bf16 %v4360_v5  ;;  %v4361_v59 = vunpack.i.l.bf16 %v4360_v5  ;;  %v4339_v46 = vunpack.i.h.bf16 %v6088_v12 }
 0x1b7   : > { %v2207_v56 = vld [vmem:[#allocation2 + $0x8] sm:$0xf]  ;;  %v6187_v33 = vrot.slane %v2612_v16, %v6723_v26  ;;  %v6192_v21 = vrot.slane %v2612_v16, %v4956_v32 }
 0x1b8   : > { %2278 = vst [vmem:[#allocation2 + $0x8] sm:$0xf] %v2276_v51  ;;  %v2209_v45 = vadd.f32 %v6033_v38, %v2207_v56  ;;  %v2522_v51 = vrot.slane %v2478_v27, %v4956_v32  ;;  %v6164_v56 = vrot.slane %v2545_v24, %v6722_v39  ;;  %v6172_v52 = vadd.f32 %v2397_v19, %v2383_v35 }
 0x1b9   : > { %v4377_v36 = vpop.permute.xlu0 %4376  ;;  %v4315_v27 = vunpack.i.l.bf16 %v6053_v54  ;;  %v4280_v54 = vunpack.i.l.bf16 %v6018_v8  ;;  %v4326_v8 = vunpack.i.l.bf16 %v6070_v40  ;;  %v2448_v60 = vmul.f32 %v4339_v46, %v6133_v10 }
 0x1ba   : > { %v2211_v43 = vmax.f32 %v2209_v45, 0.0  ;;  %v6124_v1 = vpop.permute.xlu1 %4353  ;;  %v2434_v45 = vmul.f32 %v4333_v25, %v2432_v49  ;;  %v6189_v49 = vmul.f32 %v4362_v58, %v2522_v51  ;;  %v4378_v5 = vunpack.i.l.bf16 %v4377_v36 }
 0x1bb   : > { %v2405_v15 = vrot.slane %v6172_v52, 2  ;;  %v6196_v24 = vmul.f32 %v4361_v59, %v2522_v51  ;;  %v4345_v51 = vunpack.i.h.bf16 %v6100_v22  ;;  %v4356_v57 = vunpack.i.h.bf16 %v6124_v1 }
 0x1bc   : > { %v3736_v50 = vpack.c.bf16 %v2211_v43, %v2211_v43  ;;  %v4379_v43 = vunpack.i.h.bf16 %v4377_v36  ;;  %v4355_v31 = vunpack.i.l.bf16 %v6124_v1  ;;  %v6214_v0 = vmul.f32 %v4378_v5, %v2589_v20 }
 0x1bd   : > { %v6205_v25 = vpop.permute.xlu0 %4388  ;;  %v2243_v36 = vmul.f32 %v4280_v54, %v6060_v3  ;;  %v2257_v58 = vmul.f32 %v4286_v28, %v6064_v14  ;;  %v2331_v59 = vadd.f32 %v2329_v47, %v2315_v6  ;;  %v2450_v11 = vadd.f32 %v2448_v60, %v2434_v45  ;;  %v3701_v3 = vld [vmem:[%s6604_s3 + $0x10] sm:$0x3] }
 0x1be   : > { %3681 = vst [vmem:[%s5387_s24 + $0x14] sm:$0x3] %v3736_v50  ;;  %v6184_v50 = vrot.slane %v2612_v16, %v6722_v39  ;;  %v2700_v16 = vrot.slane %v2672_v2, %v6723_v26  ;;  %v4338_v46 = vunpack.i.l.bf16 %v6088_v12  ;;  %v2508_v5 = vmul.f32 %v4356_v57, %v6147_v13 }
 0x1bf   : > { %v2334_v53 = vld [vmem:[#allocation2 + $0x8] sm:$0xf]  ;;  %v6149_v4 = vpop.permute.xlu1 %4365  ;;  %v2507_v14 = vmul.f32 %v4355_v31, %v6147_v13  ;;  %v6238_v6 = vunpack.c.l.bf16 %v3701_v3  ;;  %v2337_v13 = vrot.slane %v2331_v59, 1  ;;  %v4344_v60 = vunpack.i.l.bf16 %v6100_v22 }
 0x1c0   : > { %v2343_v23 = vadd.f32 %v2338_v17, %v2334_v53  ;;  %v6198_v53 = vmul.f32 %v4379_v43, %v2589_v20  ;;  %v4368_v40 = vunpack.i.h.bf16 %v6149_v4  ;;  %v4367_v43 = vunpack.i.l.bf16 %v6149_v4 }
 0x1c1   : > { %v4406_v62 = vpop.permute.xlu0 %4405  ;;  %v2396_v20 = vmul.f32 %v4326_v8, %v6122_v55  ;;  %v4390_v4 = vunpack.i.l.bf16 %v6205_v25  ;;  %v2509_v57 = vadd.f32 %v2507_v14, %v2493_v44  ;;  %v2510_v31 = vadd.f32 %v2508_v5, %v6180_v41 }
 0x1c2   : > { %2345 = vst [vmem:[#allocation2 + $0x8] sm:$0xf] %v2343_v23  ;;  %v2366_v23 = vmul.f32 %v4315_v27, %v6107_v30  ;;  %v2686_v30 = vrot.slane %v2672_v2, %v6722_v39  ;;  %v2464_v27 = vmul.f32 %v4345_v51, %v6139_v7  ;;  %v4408_v45 = vunpack.i.h.bf16 %v4406_v62 }
 0x1c3   : > { %v2560_v28 = vmul.f32 %v4367_v43, %v6164_v56  ;;  %v4407_v12 = vunpack.i.l.bf16 %v4406_v62  ;;  %v2767_v22 = vrot.slane %v6238_v6, %v6723_v26  ;;  %v2339_v41 = vsel %vm534_vm0, %v2337_v13, %v2338_v17 }
 0x1c4   : > { %v4372_v29 = vpop.permute.xlu1 %4371  ;;  %v2382_v1 = vadd.f32 %v2380_v63, %v2366_v23  ;;  %v2561_v63 = vmul.f32 %v4368_v40, %v6164_v56  ;;  %v2259_v23 = vadd.f32 %v2257_v58, %v2243_v36  ;;  %v2466_v8 = vadd.f32 %v2464_v27, %v2450_v11 }
 0x1c5   : > { %v4374_v9 = vunpack.i.h.bf16 %v4372_v29  ;;  %v4373_v48 = vunpack.i.l.bf16 %v4372_v29  ;;  %v2716_v29 = vrot.slane %v2672_v2, %v4956_v32  ;;  %v2702_v36 = vmul.f32 %v4408_v45, %v2700_v16  ;;  %v4418_v11 = vpop.permute.xlu0 %4417 }
 0x1c6   : > { %v2701_v58 = vmul.f32 %v4407_v12, %v2700_v16  ;;  %v2275_v59 = vadd.f32 %v6142_v18, %v2259_v23  ;;  %v2525_v16 = vadd.f32 %v6196_v24, %v2509_v57  ;;  %v2526_v18 = vadd.f32 %v6189_v49, %v2510_v31 }
 0x1c7   : > { %v2575_v55 = vmul.f32 %v4374_v9, %v6169_v42  ;;  %v2574_v47 = vmul.f32 %v4373_v48, %v6169_v42  ;;  %v2641_v48 = vmul.f32 %v4390_v4, %v6187_v33  ;;  %v4419_v4 = vunpack.i.l.bf16 %v4418_v11 }
 0x1c8   : > { %v2342_v24 = vadd.f32 %v2339_v41, %v2275_v59  ;;  %v2532_v45 = vrot.slane %v2526_v18, 1  ;;  %v2531_v12 = vrot.slane %v2525_v16, 1 }
 0x1c9   : > { %v2401_v35 = vld [vmem:[#allocation2 + $0x8] sm:$0xf]  ;;  %v6203_v19 = vpop.permute.xlu1 %4382  ;;  %v2577_v56 = vadd.f32 %v2575_v55, %v2561_v63  ;;  %v2576_v43 = vadd.f32 %v2574_v47, %v2560_v28 }
 0x1ca   : > { %v2410_v34 = vadd.f32 %v2405_v15, %v2401_v35  ;;  %v2398_v35 = vadd.f32 %v2396_v20, %v2382_v1  ;;  %v2463_v20 = vmul.f32 %v4344_v60, %v6139_v7  ;;  %v2753_v7 = vrot.slane %v6238_v6, %v6722_v39 }
 0x1cb   : > { %v6255_v27 = vadd.f32 %v6198_v53, %v2577_v56  ;;  %v2592_v61 = vadd.f32 %v6214_v0, %v2576_v43  ;;  %v2783_v43 = vrot.slane %v6238_v6, %v4956_v32 }
 0x1cc   : > { %2412 = vst [vmem:[#allocation2 + $0x8] sm:$0xf] %v2410_v34  ;;  %v2447_v34 = vmul.f32 %v4338_v46, %v6133_v10  ;;  %v2404_v44 = vrot.slane %v2398_v35, 2  ;;  %v2754_v57 = vmul.f32 %v4419_v4, %v2753_v7 }
 0x1cd   : > { %v2599_v23 = vrot.slane %v6255_v27, 2  ;;  %v2598_v13 = vrot.slane %v2592_v61, 2 }
 0x1ce   : > { %v6230_v54 = vpop.permute.xlu1 %4394  ;;  %v2449_v1 = vadd.f32 %v2447_v34, %v6166_v37  ;;  %v4420_v37 = vunpack.i.h.bf16 %v4418_v11  ;;  %v2406_v49 = vsel %vm603_vm1, %v2404_v44, %v2405_v15 }
 0x1cf   : > { %v4396_v28 = vunpack.i.l.bf16 %v6230_v54 }
 0x1d0   : > { %v2465_v55 = vadd.f32 %v2463_v20, %v2449_v1 }
 0x1d1   : > { %v2657_v31 = vmul.f32 %v4396_v28, %v6192_v21 }
 0x1d3   : > { %v2468_v51 = vld [vmem:[#allocation2 + $0x8] sm:$0xf]  ;;  %v4401_v2 = vpop.permute.xlu1 %4400 }
 0x1d4   : > { %v2470_v40 = vadd.f32 %v2468_v51, %v2466_v8  ;;  %v4403_v9 = vunpack.i.h.bf16 %v4401_v2  ;;  %v4402_v42 = vunpack.i.l.bf16 %v4401_v2  ;;  %v2409_v51 = vadd.f32 %v2406_v49, %v2342_v24 }
 0x1d6   : > { %2472 = vst [vmem:[#allocation2 + $0x8] sm:$0xf] %v2470_v40  ;;  %v2688_v10 = vmul.f32 %v4403_v9, %v2686_v30  ;;  %v2687_v62 = vmul.f32 %v4402_v42, %v2686_v30  ;;  %v4384_v30 = vunpack.i.l.bf16 %v6203_v19  ;;  %v2533_v9 = vsel %vm534_vm0, %v2531_v12, %v2532_v45 }
 0x1d7   : > { %v4391_v42 = vunpack.i.h.bf16 %v6205_v25 }
 0x1d8   : > { %v4412_v3 = vpop.permute.xlu1 %4411  ;;  %v2703_v46 = vadd.f32 %v2701_v58, %v2687_v62  ;;  %v2704_v14 = vadd.f32 %v2702_v36, %v2688_v10  ;;  %v2627_v0 = vmul.f32 %v4384_v30, %v6184_v50  ;;  %v2469_v36 = vadd.f32 %v2465_v55, %v2409_v51  ;;  %v3710_v51 = vld [vmem:[%s6604_s3 + $0x2] sm:$0x3] }
 0x1d9   : > { %v4414_v17 = vunpack.i.h.bf16 %v4412_v3  ;;  %v4413_v5 = vunpack.i.l.bf16 %v4412_v3  ;;  %v2600_v58 = vsel %vm603_vm1, %v2598_v13, %v2599_v23  ;;  %v2642_v6 = vmul.f32 %v4391_v42, %v6187_v33 }
 0x1da   : > { %v2643_v2 = vadd.f32 %v2641_v48, %v2627_v0  ;;  %v2536_v20 = vadd.f32 %v2533_v9, %v2469_v36 }
 0x1db   : > { %v2718_v53 = vmul.f32 %v4414_v17, %v2716_v29  ;;  %v2717_v63 = vmul.f32 %v4413_v5, %v2716_v29  ;;  %v2755_v29 = vmul.f32 %v4420_v37, %v2753_v7 }
 0x1dc   : > { %v2659_v11 = vadd.f32 %v2657_v31, %v2643_v2  ;;  %v2603_v18 = vadd.f32 %v2600_v58, %v2536_v20 }
 0x1dd   : > { %v2528_v47 = vld [vmem:[#allocation2 + $0x8] sm:$0xf]  ;;  %v2719_v35 = vadd.f32 %v2717_v63, %v2703_v46  ;;  %v4424_v8 = vpop.permute.xlu1 %4423  ;;  %v6267_v60 = vadd.f32 %v2718_v53, %v2704_v14  ;;  %v6279_v46 = vpop.permute.xlu0 %4434 }
 0x1de   : > { %v2537_v34 = vadd.f32 %v2532_v45, %v2528_v47  ;;  %v4426_v52 = vunpack.i.h.bf16 %v4424_v8  ;;  %v4425_v15 = vunpack.i.l.bf16 %v4424_v8  ;;  %v2663_v7 = vadd.f32 %v2659_v11, %v2603_v18  ;;  %v2820_v8 = vld [vmem:[%s6604_s3] sm:$0x3] }
 0x1df   : > { %v2725_v59 = vrot.slane %v2719_v35, 1  ;;  %v2726_v10 = vrot.slane %v6267_v60, 1  ;;  %v4436_v18 = vunpack.i.l.bf16 %v6279_v46 }
 0x1e0   : > { %2539 = vst [vmem:[#allocation2 + $0x8] sm:$0xf] %v2537_v34  ;;  %v2769_v40 = vmul.f32 %v4426_v52, %v2767_v22  ;;  %v2768_v56 = vmul.f32 %v4425_v15, %v2767_v22  ;;  %v4385_v22 = vunpack.i.h.bf16 %v6203_v19  ;;  %v4397_v19 = vunpack.i.h.bf16 %v6230_v54 }
 0x1e1   : > { %v2727_v30 = vsel %vm534_vm0, %v2725_v59, %v2726_v10  ;;  %v6289_v45 = vpop.permute.xlu0 %4446  ;;  %v2823_v15 = vunpack.c.l.bf16 %v2820_v8  ;;  %v3714_v59 = vld [vmem:[%s6604_s3 + $0x6] sm:$0x3] }
 0x1e2   : > { %v4430_v62 = vpop.permute.xlu1 %4429  ;;  %v2771_v41 = vadd.f32 %v2769_v40, %v2755_v29  ;;  %v2770_v44 = vadd.f32 %v2768_v56, %v2754_v57  ;;  %v2628_v14 = vmul.f32 %v4385_v22, %v6184_v50  ;;  %v2730_v24 = vadd.f32 %v2727_v30, %v2663_v7 }
 0x1e3   : > { %v4432_v1 = vunpack.i.h.bf16 %v4430_v62  ;;  %v4431_v48 = vunpack.i.l.bf16 %v4430_v62  ;;  %v2658_v49 = vmul.f32 %v4397_v19, %v6192_v21  ;;  %v2879_v57 = vunpack.c.l.bf16 %v3710_v51 }
 0x1e4   : > { %v2644_v53 = vadd.f32 %v2642_v6, %v2628_v14  ;;  %v2837_v2 = vrot.slane %v2823_v15, %v6722_v39  ;;  %v4437_v40 = vunpack.i.h.bf16 %v6279_v46  ;;  %v6318_v9 = vrot.slane %v2823_v15, %v6723_v26 }
 0x1e5   : > { %v2785_v16 = vmul.f32 %v4432_v1, %v2783_v43  ;;  %v2784_v25 = vmul.f32 %v4431_v48, %v2783_v43  ;;  %v6294_v13 = vpop.permute.xlu0 %4463  ;;  %v3713_v43 = vld [vmem:[%s6604_s3 + $0x4] sm:$0x3]  ;;  %v6325_v36 = vrot.slane %v2879_v57, %v6722_v39  ;;  %v6328_v58 = vrot.slane %v2879_v57, %v6723_v26  ;;  %v3715_v48 = vld [vmem:[%s6604_s3 + $0x8] sm:$0x3] }
 0x1e6   : > { %v2660_v0 = vadd.f32 %v2658_v49, %v2644_v53  ;;  %v2839_v62 = vmul.f32 %v4437_v40, %v2837_v2  ;;  %v2946_v1 = vunpack.c.l.bf16 %v3713_v43  ;;  %v4466_v6 = vunpack.i.h.bf16 %v6294_v13  ;;  %v3716_v53 = vld [vmem:[%s6604_s3 + $0xa] sm:$0x3] }
 0x1e7   : > { %v2595_v27 = vld [vmem:[#allocation2 + $0x8] sm:$0xf]  ;;  %v2786_v3 = vadd.f32 %v2784_v25, %v2770_v44  ;;  %v2787_v61 = vadd.f32 %v2785_v16, %v2771_v41  ;;  %v6281_v17 = vpop.permute.xlu1 %4440  ;;  %v2867_v41 = vrot.slane %v2823_v15, %v4956_v32  ;;  %v4449_v44 = vunpack.i.h.bf16 %v6289_v45 }
 0x1e8   : > { %v2604_v5 = vadd.f32 %v2599_v23, %v2595_v27  ;;  %v4443_v42 = vunpack.i.h.bf16 %v6281_v17  ;;  %v2923_v27 = vrot.slane %v2879_v57, %v4956_v32  ;;  %v3013_v30 = vunpack.c.l.bf16 %v3714_v59 }
 0x1e9   : > { %v2792_v37 = vrot.slane %v2786_v3, 2  ;;  %v2793_v4 = vrot.slane %v2787_v61, 2  ;;  %v6299_v35 = vpop.permute.xlu0 %4475  ;;  %v4448_v61 = vunpack.i.l.bf16 %v6289_v45  ;;  %v2869_v14 = vmul.f32 %v4449_v44, %v2867_v41 }
 0x1ea   : > { %2606 = vst [vmem:[#allocation2 + $0x8] sm:$0xf] %v2604_v5  ;;  %v2853_v22 = vmul.f32 %v4443_v42, %v6318_v9  ;;  %v3073_v5 = vunpack.c.l.bf16 %v3715_v48  ;;  %v4465_v19 = vunpack.i.l.bf16 %v6294_v13  ;;  %v2974_v7 = vrot.slane %v2946_v1, %v6723_v26  ;;  %v3718_v48 = vld [vmem:[%s6604_s3 + $0xe] sm:$0x3] }
 0x1eb   : > { %v2794_v33 = vsel %vm603_vm1, %v2792_v37, %v2793_v4  ;;  %v4478_v37 = vunpack.i.h.bf16 %v6299_v35  ;;  %v2925_v45 = vmul.f32 %v4466_v6, %v2923_v27  ;;  %v6372_v13 = vmul.f32 %v4448_v61, %v2867_v41 }
 0x1ec   : > { %v2797_v63 = vadd.f32 %v2794_v33, %v2730_v24  ;;  %v6287_v55 = vpop.permute.xlu1 %4452  ;;  %v4477_v33 = vunpack.i.l.bf16 %v6299_v35  ;;  %v6374_v35 = vmul.f32 %v4465_v19, %v2923_v27  ;;  %v6384_v43 = vrot.slane %v3013_v30, %v4956_v32 }
 0x1ed   : > { %v6309_v29 = vpop.permute.xlu0 %4492  ;;  %v4455_v11 = vunpack.i.h.bf16 %v6287_v55  ;;  %v2976_v8 = vmul.f32 %v4478_v37, %v2974_v7  ;;  %v6387_v59 = vrot.slane %v3073_v5, %v6723_v26 }
 0x1ee   : > { %v2803_v50 = vadd.f32 %v6033_v38, %v2797_v63  ;;  %v6360_v63 = vmul.f32 %v4436_v18, %v2837_v2  ;;  %v6376_v57 = vmul.f32 %v4477_v33, %v2974_v7  ;;  %v6379_v2 = vrot.slane %v3013_v30, %v6722_v39 }
 0x1ef   : > { %v2895_v46 = vmul.f32 %v4455_v11, %v6325_v36 }
 0x1f0   : > { %v2805_v54 = vmax.f32 %v2803_v50, 0.0  ;;  %v3041_v50 = vrot.slane %v3013_v30, %v6723_v26 }
 0x1f1   : > { %v2662_v28 = vld [vmem:[#allocation2 + $0x8] sm:$0xf]  ;;  %v6292_v47 = vpop.permute.xlu1 %4458  ;;  %v6315_v56 = vpop.permute.xlu0 %4504 }
 0x1f2   : > { %v2664_v12 = vadd.f32 %v2662_v28, %v2660_v0  ;;  %v3737_v23 = vpack.c.bf16 %v2805_v54, %v2805_v54  ;;  %v4461_v16 = vunpack.i.h.bf16 %v6292_v47  ;;  %v4494_v0 = vunpack.i.l.bf16 %v6309_v29 }
 0x1f3   : > { %v6365_v54 = vrot.slane %v2946_v1, %v6722_v39  ;;  %v6368_v28 = vrot.slane %v2946_v1, %v4956_v32  ;;  %v4506_v1 = vunpack.i.l.bf16 %v6315_v56  ;;  %v4460_v11 = vunpack.i.l.bf16 %v6292_v47 }
 0x1f4   : > { %2666 = vst [vmem:[#allocation2 + $0x8] sm:$0xf] %v2664_v12  ;;  %3704 = vst [vmem:[%s5387_s24 + $0x18] sm:$0xf] %v3737_v23  ;;  %v2909_v24 = vmul.f32 %v4461_v16, %v6328_v58  ;;  %v3087_v12 = vrot.slane %v3073_v5, %v6722_v39  ;;  %v4507_v23 = vunpack.i.h.bf16 %v6315_v56  ;;  %v6381_v42 = vmul.f32 %v4494_v0, %v3041_v50 }
 0x1f5   : > { %v6346_v3 = vpop.permute.xlu0 %4521 }
 0x1f6   : > { %v6297_v21 = vpop.permute.xlu1 %4469  ;;  %v2911_v51 = vadd.f32 %v2909_v24, %v2895_v46  ;;  %v6395_v44 = vmul.f32 %v4507_v23, %v3087_v12  ;;  %v4524_v18 = vunpack.i.h.bf16 %v6346_v3  ;;  %v4523_v56 = vunpack.i.l.bf16 %v6346_v3 }
 0x1f7   : > { %v4472_v41 = vunpack.i.h.bf16 %v6297_v21  ;;  %v6418_v37 = vmul.f32 %v4506_v1, %v3087_v12  ;;  %v2908_v46 = vmul.f32 %v4460_v11, %v6328_v58  ;;  %v4471_v0 = vunpack.i.l.bf16 %v6297_v21  ;;  %v3719_v1 = vld [vmem:[%s6604_s3 + $0x10] sm:$0x3] }
 0x1f8   : > { %v6408_v6 = vadd.f32 %v2925_v45, %v2911_v51 }
 0x1f9   : > { %v2962_v19 = vmul.f32 %v4472_v41, %v6365_v54 }
 0x1fa   : > { %v2933_v45 = vrot.slane %v6408_v6, 1 }
 0x1fb   : > { %v2722_v34 = vld [vmem:[#allocation2 + $0x8] sm:$0xf]  ;;  %v6304_v60 = vpop.permute.xlu1 %4481  ;;  %v2978_v21 = vadd.f32 %v2976_v8, %v2962_v19 }
 0x1fc   : > { %v2731_v52 = vadd.f32 %v2726_v10, %v2722_v34  ;;  %v3140_v34 = vunpack.c.l.bf16 %v3716_v53  ;;  %v4484_v7 = vunpack.i.h.bf16 %v6304_v60  ;;  %v4483_v8 = vunpack.i.l.bf16 %v6304_v60 }
 0x1fe   : > { %2733 = vst [vmem:[#allocation2 + $0x8] sm:$0xf] %v2731_v52  ;;  %v4534_v52 = vpop.permute.xlu0 %4533  ;;  %v3154_v16 = vrot.slane %v3140_v34, %v6722_v39  ;;  %v3184_v30 = vrot.slane %v3140_v34, %v4956_v32  ;;  %v3168_v24 = vrot.slane %v3140_v34, %v6723_v26 }
 0x1ff   : > { %v4536_v47 = vunpack.i.h.bf16 %v4534_v52 }
 0x200   : > { %v6311_v31 = vpop.permute.xlu1 %4487  ;;  %v6425_v23 = vmul.f32 %v4524_v18, %v3154_v16 }
 0x202   : > { %v6406_v27 = vpop.permute.xlu0 %4550 }
 0x205   : > { %v2789_v10 = vld [vmem:[#allocation2 + $0x8] sm:$0xf]  ;;  %v6341_v25 = vpop.permute.xlu1 %4498 }
 0x206   : > { %v2798_v20 = vadd.f32 %v2793_v4, %v2789_v10  ;;  %v2855_v4 = vadd.f32 %v2853_v22, %v2839_v62  ;;  %v6390_v10 = vrot.slane %v3073_v5, %v4956_v32  ;;  %v4454_v22 = vunpack.i.l.bf16 %v6287_v55 }
 0x207   : > { %v4495_v55 = vunpack.i.h.bf16 %v6309_v29  ;;  %v4535_v5 = vunpack.i.l.bf16 %v4534_v52  ;;  %v4563_v29 = vpop.permute.xlu0 %4562  ;;  %v6427_v52 = vmul.f32 %v4523_v56, %v3154_v16  ;;  %v2961_v16 = vmul.f32 %v4471_v0, %v6365_v54 }
 0x208   : > { %2800 = vst [vmem:[#allocation2 + $0x8] sm:$0xf] %v2798_v20  ;;  %v2871_v15 = vadd.f32 %v2869_v14, %v2855_v4  ;;  %v3267_v14 = vunpack.c.l.bf16 %v3718_v48  ;;  %v2894_v4 = vmul.f32 %v4454_v22, %v6325_v36  ;;  %v6432_v36 = vmul.f32 %v4536_v47, %v3184_v30 }
 0x209   : > { %v6434_v58 = vmul.f32 %v4535_v5, %v3184_v30  ;;  %v4565_v41 = vunpack.i.h.bf16 %v4563_v29  ;;  %v4564_v56 = vunpack.i.l.bf16 %v4563_v29  ;;  %v4489_v29 = vunpack.i.l.bf16 %v6311_v31 }
 0x20a   : > { %v6355_v49 = vpop.permute.xlu1 %4510  ;;  %v3295_v34 = vrot.slane %v3267_v14, %v6723_v26  ;;  %v2910_v48 = vadd.f32 %v2908_v46, %v2894_v4  ;;  %v3281_v47 = vrot.slane %v3267_v14, %v6722_v39  ;;  %v6466_v54 = vrot.slane %v3267_v14, %v4956_v32 }
 0x20b   : > { %v4512_v30 = vunpack.i.l.bf16 %v6355_v49  ;;  %v2977_v4 = vadd.f32 %v6376_v57, %v2961_v16  ;;  %v4490_v46 = vunpack.i.h.bf16 %v6311_v31 }
 0x20c   : > { %v3297_v60 = vmul.f32 %v4565_v41, %v3295_v34  ;;  %v2926_v19 = vadd.f32 %v6374_v35, %v2910_v48  ;;  %v3028_v48 = vmul.f32 %v4489_v29, %v6379_v2 }
 0x20d   : > { %v3102_v14 = vmul.f32 %v4512_v30, %v6387_v59 }
 0x20f   : > { %v2802_v40 = vld [vmem:[#allocation2 + $0x8] sm:$0xf]  ;;  %v6392_v62 = vpop.permute.xlu1 %4516  ;;  %v3104_v16 = vadd.f32 %v3102_v14, %v6418_v37 }
 0x210   : > { %2873 = vst [vmem:[#allocation2 + $0x8] sm:$0xf] %v2871_v15  ;;  %v2804_v20 = vadd.f32 %v6033_v38, %v2802_v40  ;;  %v3717_v38 = vld [vmem:[%s6604_s3 + $0xc] sm:$0x3]  ;;  %v6430_v15 = vmul.f32 %v4495_v55, %v3041_v50  ;;  %v2992_v40 = vmul.f32 %v4484_v7, %v6368_v28  ;;  %v4442_v50 = vunpack.i.l.bf16 %v6281_v17 }
 0x211   : > { %v3207_v53 = vunpack.c.l.bf16 %v3717_v38  ;;  %v4513_v17 = vunpack.i.h.bf16 %v6355_v49  ;;  %v4552_v38 = vunpack.i.l.bf16 %v6406_v27  ;;  %v2991_v49 = vmul.f32 %v4483_v8, %v6368_v28 }
 0x212   : > { %v2806_v61 = vmax.f32 %v2804_v20, 0.0  ;;  %v6462_v55 = vadd.f32 %v2992_v40, %v2978_v21  ;;  %v2852_v5 = vmul.f32 %v4442_v50, %v6318_v9  ;;  %v4519_v28 = vunpack.i.h.bf16 %v6392_v62  ;;  %v4580_v50 = vpop.permute.xlu0 %4579 }
 0x213   : > { %v6445_v20 = vrot.slane %v3207_v53, %v6722_v39  ;;  %v6450_v11 = vrot.slane %v3207_v53, %v6723_v26  ;;  %v6455_v18 = vrot.slane %v3207_v53, %v4956_v32  ;;  %v3296_v53 = vmul.f32 %v4564_v56, %v3295_v34 }
 0x214   : > { %v3738_v3 = vpack.c.bf16 %v2806_v61, %v2806_v61  ;;  %v4528_v33 = vpop.permute.xlu1 %4527  ;;  %v6460_v61 = vunpack.c.l.bf16 %v3719_v1  ;;  %v3103_v0 = vmul.f32 %v4513_v17, %v6387_v59  ;;  %v3000_v35 = vrot.slane %v6462_v55, 2 }
 0x215   : > { %v4530_v7 = vunpack.i.h.bf16 %v4528_v33  ;;  %v4518_v57 = vunpack.i.l.bf16 %v6392_v62  ;;  %v2854_v31 = vadd.f32 %v2852_v5, %v6360_v63  ;;  %v2932_v34 = vrot.slane %v2926_v19, 1 }
 0x216   : > { %3705 = vst [vmem:[%s5387_s24 + $0x1c] sm:$0x3] %v3738_v3  ;;  %v4529_v3 = vunpack.i.l.bf16 %v4528_v33  ;;  %v6480_v9 = vrot.slane %v6460_v61, %v6722_v39  ;;  %v6487_v33 = vrot.slane %v6460_v61, %v6723_v26  ;;  %v2993_v21 = vadd.f32 %v2991_v49, %v2977_v4 }
 0x217   : > { %v2929_v12 = vld [vmem:[#allocation2 + $0x8] sm:$0xf]  ;;  %v3029_v39 = vmul.f32 %v4490_v46, %v6379_v2  ;;  %v4501_v1 = vunpack.i.h.bf16 %v6341_v25  ;;  %v4500_v62 = vunpack.i.l.bf16 %v6341_v25  ;;  %v3105_v26 = vadd.f32 %v3103_v0, %v6395_v44 }
 0x218   : > { %v2938_v51 = vadd.f32 %v2933_v45, %v2929_v12  ;;  %v3169_v40 = vmul.f32 %v4529_v3, %v3168_v24  ;;  %v3119_v8 = vmul.f32 %v4519_v28, %v6390_v10  ;;  %v2870_v30 = vadd.f32 %v6372_v13, %v2854_v31 }
 0x219   : > { %v6447_v22 = vpop.permute.xlu1 %4539  ;;  %v4582_v5 = vunpack.i.h.bf16 %v4580_v50  ;;  %v3045_v25 = vadd.f32 %v6430_v15, %v3029_v39  ;;  %v3059_v44 = vmul.f32 %v4501_v1, %v6384_v43  ;;  %v3044_v3 = vadd.f32 %v6381_v42, %v3028_v48 }
 0x21a   : > { %2940 = vst [vmem:[#allocation2 + $0x8] sm:$0xf] %v2938_v51  ;;  %v3170_v51 = vmul.f32 %v4530_v7, %v3168_v24  ;;  %v3118_v24 = vmul.f32 %v4518_v57, %v6390_v10  ;;  %v3171_v55 = vadd.f32 %v3169_v40, %v6427_v52  ;;  %v2934_v7 = vsel %vm534_vm0, %v2932_v34, %v2933_v45 }
 0x21b   : > { %v2999_v10 = vrot.slane %v2993_v21, 2  ;;  %v3058_v13 = vmul.f32 %v4500_v62, %v6384_v43  ;;  %v3121_v52 = vadd.f32 %v3119_v8, %v3105_v26  ;;  %v3061_v45 = vadd.f32 %v3059_v44, %v3045_v25 }
 0x21c   : > { %v3172_v2 = vadd.f32 %v3170_v51, %v6425_v23  ;;  %v3120_v49 = vadd.f32 %v3118_v24, %v3104_v16  ;;  %v4541_v23 = vunpack.i.l.bf16 %v6447_v22  ;;  %v3187_v46 = vadd.f32 %v6434_v58, %v3171_v55 }
 0x21d   : > { %v4581_v42 = vunpack.i.l.bf16 %v4580_v50  ;;  %v2937_v28 = vadd.f32 %v2934_v7, %v2870_v30  ;;  %v3001_v43 = vsel %vm603_vm1, %v2999_v10, %v3000_v35  ;;  %v3127_v21 = vrot.slane %v3121_v52, 1 }
 0x21e   : > { %v6476_v12 = vpop.permute.xlu1 %4545  ;;  %v3222_v58 = vmul.f32 %v4541_v23, %v6445_v20  ;;  %v3126_v40 = vrot.slane %v3120_v49, 1  ;;  %v3364_v48 = vmul.f32 %v4582_v5, %v6487_v33 }
 0x21f   : > { %v4547_v4 = vunpack.i.l.bf16 %v6476_v12  ;;  %v3363_v62 = vmul.f32 %v4581_v42, %v6487_v33  ;;  %v3004_v26 = vadd.f32 %v3001_v43, %v2937_v28  ;;  %v4553_v42 = vunpack.i.h.bf16 %v6406_v27 }
 0x220   : > { %v3128_v24 = vsel %vm534_vm0, %v3126_v40, %v3127_v21 }
 0x221   : > { %v2996_v59 = vld [vmem:[#allocation2 + $0x8] sm:$0xf] }
 0x222   : > { %v3005_v41 = vadd.f32 %v3000_v35, %v2996_v59  ;;  %v3060_v59 = vadd.f32 %v3058_v13, %v3044_v3 }
 0x223   : > { %v4557_v63 = vpop.permute.xlu1 %4556 }
 0x224   : > { %3007 = vst [vmem:[#allocation2 + $0x8] sm:$0xf] %v3005_v41  ;;  %v4559_v56 = vunpack.i.h.bf16 %v4557_v63  ;;  %v4558_v17 = vunpack.i.l.bf16 %v4557_v63  ;;  %v3193_v41 = vrot.slane %v3187_v46, 2 }
 0x226   : > { %v3283_v37 = vmul.f32 %v4559_v56, %v3281_v47  ;;  %v3282_v19 = vmul.f32 %v4558_v17, %v3281_v47  ;;  %v6512_v47 = vadd.f32 %v6432_v36, %v3172_v2  ;;  %v3236_v36 = vmul.f32 %v4547_v4, %v6450_v11 }
 0x227   : > { %v3378_v56 = vrot.slane %v6460_v61, %v4956_v32  ;;  %v3064_v17 = vadd.f32 %v3060_v59, %v3004_v26 }
 0x228   : > { %v4569_v15 = vpop.permute.xlu1 %4568  ;;  %v3299_v0 = vadd.f32 %v3297_v60, %v3283_v37  ;;  %v3298_v14 = vadd.f32 %v3296_v53, %v3282_v19  ;;  %v3194_v60 = vrot.slane %v6512_v47, 2  ;;  %v3238_v16 = vadd.f32 %v3236_v36, %v3222_v58 }
 0x229   : > { %v4571_v6 = vunpack.i.h.bf16 %v4569_v15  ;;  %v4570_v29 = vunpack.i.l.bf16 %v4569_v15  ;;  %v3131_v37 = vadd.f32 %v3128_v24, %v3064_v17  ;;  %v4542_v47 = vunpack.i.h.bf16 %v6447_v22 }
 0x22a   : > { %v3195_v30 = vsel %vm603_vm1, %v3193_v41, %v3194_v60 }
 0x22b   : > { %v3063_v57 = vld [vmem:[#allocation2 + $0x8] sm:$0xf]  ;;  %v3313_v31 = vmul.f32 %v4571_v6, %v6466_v54  ;;  %v3312_v34 = vmul.f32 %v4570_v29, %v6466_v54  ;;  %v3252_v54 = vmul.f32 %v4552_v38, %v6455_v18  ;;  %v3198_v13 = vadd.f32 %v3195_v30, %v3131_v37 }
 0x22c   : > { %v3065_v51 = vadd.f32 %v3063_v57, %v3061_v45  ;;  %v4548_v6 = vunpack.i.h.bf16 %v6476_v12  ;;  %v4591_v45 = vld [vmem:[%s6605_s4] ss:$0 sm:$0xff]  ;;  %v3223_v43 = vmul.f32 %v4542_v47, %v6445_v20  ;;  %v3253_v12 = vmul.f32 %v4553_v42, %v6455_v18 }
 0x22d   : > { %v4575_v53 = vpop.permute.xlu1 %4574  ;;  %v3315_v39 = vadd.f32 %v3313_v31, %v3299_v0  ;;  %v3314_v35 = vadd.f32 %v3312_v34, %v3298_v14  ;;  %v3254_v19 = vadd.f32 %v3252_v54, %v3238_v16 }
 0x22e   : > { %3067 = vst [vmem:[#allocation2 + $0x8] sm:$0xf] %v3065_v51  ;;  %v4577_v1 = vunpack.i.h.bf16 %v4575_v53  ;;  %v4576_v50 = vunpack.i.l.bf16 %v4575_v53  ;;  %v3237_v57 = vmul.f32 %v4548_v6, %v6450_v11 }
 0x22f   : > { %v3321_v55 = vrot.slane %v3315_v39, 1  ;;  %v3320_v38 = vrot.slane %v3314_v35, 1  ;;  %v3258_v52 = vadd.f32 %v3254_v19, %v3198_v13 }
 0x230   : > { %v3350_v63 = vmul.f32 %v4577_v1, %v6480_v9  ;;  %v3349_v8 = vmul.f32 %v4576_v50, %v6480_v9  ;;  %v3239_v22 = vadd.f32 %v3237_v57, %v3223_v43 }
 0x231   : > { %v3322_v49 = vsel %vm534_vm0, %v3320_v38, %v3321_v55 }
 0x232   : > { %v4586_v2 = vpop.permute.xlu1 %4585  ;;  %v3366_v5 = vadd.f32 %v3364_v48, %v3350_v63  ;;  %v3365_v25 = vadd.f32 %v3363_v62, %v3349_v8  ;;  %v3325_v15 = vadd.f32 %v3322_v49, %v3258_v52  ;;  %v3255_v59 = vadd.f32 %v3253_v12, %v3239_v22 }
 0x233   : > { %v4588_v33 = vunpack.i.h.bf16 %v4586_v2  ;;  %v4587_v44 = vunpack.i.l.bf16 %v4586_v2 }
 0x235   : > { %v3123_v7 = vld [vmem:[#allocation2 + $0x8] sm:$0xf]  ;;  %v3380_v10 = vmul.f32 %v4588_v33, %v3378_v56  ;;  %v3379_v9 = vmul.f32 %v4587_v44, %v3378_v56 }
 0x236   : > { %v3132_v3 = vadd.f32 %v3127_v21, %v3123_v7 }
 0x237   : > { %v3381_v32 = vadd.f32 %v3379_v9, %v3365_v25  ;;  %v3382_v61 = vadd.f32 %v3380_v10, %v3366_v5 }
 0x238   : > { %3134 = vst [vmem:[#allocation2 + $0x8] sm:$0xf] %v3132_v3 }
 0x239   : > { %v3387_v23 = vrot.slane %v3381_v32, 2  ;;  %v3388_v4 = vrot.slane %v3382_v61, 2 }
 0x23b   : > { %v3389_v46 = vsel %vm603_vm1, %v3387_v23, %v3388_v4 }
 0x23c   : > { %v3392_v29 = vadd.f32 %v3389_v46, %v3325_v15 }
 0x23e   : > { %v3398_v0 = vadd.f32 %v4591_v45, %v3392_v29 }
 0x23f   : > { %v3190_v14 = vld [vmem:[#allocation2 + $0x8] sm:$0xf] }
 0x240   : > { %v3199_v28 = vadd.f32 %v3194_v60, %v3190_v14  ;;  %v3400_v31 = vmax.f32 %v3398_v0, 0.0 }
 0x242   : > { %3201 = vst [vmem:[#allocation2 + $0x8] sm:$0xf] %v3199_v28  ;;  %v3739_v34 = vpack.c.bf16 %v3400_v31, %v3400_v31 }
 0x244   : > { %3722 = vst [vmem:[%s5387_s24 + $0x20] sm:$0xf] %v3739_v34 }
 0x249   : > { %v3257_v51 = vld [vmem:[#allocation2 + $0x8] sm:$0xf] }
 0x24a   : > { %v3259_v58 = vadd.f32 %v3257_v51, %v3255_v59 }
 0x24c   : > { %3261 = vst [vmem:[#allocation2 + $0x8] sm:$0xf] %v3259_v58 }
 0x253   : > { %v3317_v27 = vld [vmem:[#allocation2 + $0x8] sm:$0xf] }
 0x254   : > { %v3326_v36 = vadd.f32 %v3321_v55, %v3317_v27 }
 0x256   : > { %3328 = vst [vmem:[#allocation2 + $0x8] sm:$0xf] %v3326_v36 }
 0x25d   : > { %v3384_v20 = vld [vmem:[#allocation2 + $0x8] sm:$0xf] }
 0x25e   : > { %v3393_v11 = vadd.f32 %v3388_v4, %v3384_v20 }
 0x260   : > { %3395 = vst [vmem:[#allocation2 + $0x8] sm:$0xf] %v3393_v11 }
 0x267   : > { %v3397_v40 = vld [vmem:[#allocation2 + $0x8] sm:$0xf] }
 0x268   : > { %v3399_v21 = vadd.f32 %v4591_v45, %v3397_v40 }
 0x26a   : > { %v3401_v41 = vmax.f32 %v3399_v21, 0.0 }
 0x26c   : > { %v3740_v18 = vpack.c.bf16 %v3401_v41, %v3401_v41 }
 0x26e   : > { %3723 = vst [vmem:[%s5387_s24 + $0x24] sm:$0x3] %v3740_v18 }
 0x26f   : > { %4605 = shalt.err (!%p4602_p7)
}
 0x270   : > { %s4606_s11 = scalar_lea.hbm %s6550_s8, 640  ;;  %s4610_s14 = scalar_lea.hbm %s6606_s5, 1280 }
 0x271   : > { %p4607_p9 = scmp.ne.s32.totalorder %s6550_s8, %s4606_s11  ;;  %p4611_p12 = scmp.lt.u32.totalorder %s6550_s8, %s6606_s5 }
 0x272   : > { %p4612_p13 = scmp.lt.u32.totalorder %s4610_s14, %s4606_s11  ;;  %p4614_p1 = scmp.lt.u32.totalorder %s4606_s11, %s6550_s8 }
 0x273   : > { %p4608_p10 = pnand %p4607_p9, %p4748_p4 }
 0x274   : > { %p4613_p0 = por %p4612_p13, %p4611_p12 }
 0x275   : > { %p4609_p11 = pneg %p4608_p10 }
 0x276   : > { %p4615_p2 = por %p4614_p1, %p4613_p0 }
 0x278   : > { %p4616_p3 = pnand %p4615_p2, %p4609_p11 }
 0x27a   : > { %4619 = shalt.err (!%p4616_p3)
}
 0x27b   : > { %s4676_s17 = smov 64   ;;  %s4677_s27 = smov 4  }
 0x27c   : > { %3745 = dma.vmem_to_hbm [thread:$0]  (%p4748_p4), %s6545_s25, 640, %s6550_s8, %s6555_s9, %s4676_s17, %s4676_s17, %s4677_s27  }
 0x27d PF: > { %p3751_p5 = scmp.ge.s32.totalorder %s4670_s23, 2  ;;  %s3446_s29 = sand.u32 1, %s4650_s18  }
 0x27e   : > { %s3447_s10 = scalar_lea.sflag [#allocation4], %s3446_s29 }
 0x27f   : > { %p3748_p6 = pnand %p3751_p5, %p4755_p8 }
 0x281   : > { %4645 = dma.done.wait (!%p3748_p6), %s3447_s10, 640  }
 0x282   : > { %4647 = vsyncadd (!%p3748_p6), %s3447_s10, 4294966656  ;;  %s18_s23 = sadd.s32 1, %s4670_s23   ;;  %s6725_s18 = smov %s4654_s19 }
 0x283   : > { %p15_p7 = scmp.ge.s32.totalorder %s18_s23, 4   ;;  %s6726_s19 = smov %s4658_s20 }
 0x284   : > { %s6727_s20 = smov %s4761_s6  ;;  %s6728_s21 = smov %s4666_s22 }
 0x285   : > { %s6729_s22 = smov %s6731_s26  ;;  %17 = sbr.rel (!%p15_p7) target bundleno = 4 (0x4), region = 103 }
 0x28c   :  { %3452 = vsyncpa [#allocation4], 1 }
 0x28d   :  { %3454 = vsyncpa [#allocation4 + $0x1], 1 }

</bundles_post_ra>
